<compile_context>
chip_gen: v5e
topology: v5e:2x2
jax: 0.10.0
libtpu: 0.0.40
codegen_flags: <defaults>
</compile_context>

<pallas_src>
import jax
import jax.numpy as jnp
from jax.experimental import pallas as pl
from jax.experimental.pallas import tpu as pltpu

# ----------------------------- sizes (small, consistent with forward) --------
CF = 8       # image-encoder feature channels
CV = 10      # view-feature channels (position, distance, ...)
CAGG = 32    # aggregated per-point channels
HID = 64     # hidden width of the MLP stand-ins
CIMP = 29    # implicit-condition channels (so concat with coords -> 32)
DEN_OUT = 4  # denoiser output channels (xyz + intensity)


# ----------------------------- fused Pallas kernel ---------------------------
def _fused_forward_kernel(
    projs_ref, uv_ref, vf_ref, gc_ref, lc_ref, nx_ref, ts_ref,
    w_img_e_ref, b_img_ref,
    w_agg_v_ref, w_agg_f_ref, b_agg_ref,
    w_i1_a_ref, w_i1_g_ref, w_i1_l_ref, b_i1_ref,
    w_i2_ref, b_i2_ref,
    w_d1_x_ref, w_d1_g_ref, w_d1_p_ref, w_d1_t_ref, b_d1_ref,
    w_d2_ref, b_d2_ref,
    loss_ref,
):
    _, M, Cimg, W, H = projs_ref.shape
    N = uv_ref.shape[2]
    HCF = w_img_e_ref.shape[2]        # CF * H ; expanded lane layout l = c*H + h
    f32 = jnp.float32

    # ---- lane-index helpers, built once and reused across views -------------
    xcol = jax.lax.broadcasted_iota(jnp.int32, (N, W), 1)          # w index per lane
    hlane = jax.lax.broadcasted_iota(jnp.int32, (N, HCF), 1) % H   # h index per expanded lane

    # Conv weights are pre-folded into the lane-expansion matrix outside the
    # kernel:  w_img_e[ci, h', c*H+h] = w_img[ci, c] * (h' == h).
    w_img_e = w_img_e_ref[...]        # (Cimg, H, CF*H)
    b_img = b_img_ref[...]            # (1, CF*H)
    w_agg_v = w_agg_v_ref[...]        # (CV, CAGG)
    w_agg_f = w_agg_f_ref[...]        # (CF*H, CAGG): point-feat weights pre-tiled over h
    b_agg = b_agg_ref[...]            # (1, CAGG)

    projs = projs_ref[0]              # (M, Cimg, W, H)
    uv_all = uv_ref[0]                # (M, N, 2)
    vf_all = vf_ref[0]                # (M, N, CV)

    agg = None
    for m in range(M):
        # ---- image_wise_encoder stand-in ------------------------------------
        # TODO(synk): UNet(**image_encoder_config) is unspecified; stand-in is a
        # 1x1 conv + ReLU, done as one MXU matmul per input channel with the
        # conv weight folded into the lane-expansion matrix.
        pre = jnp.dot(projs[m, 0], w_img_e[0], preferred_element_type=f32)   # (W, CF*H)
        for ci in range(1, Cimg):
            pre = pre + jnp.dot(projs[m, ci], w_img_e[ci], preferred_element_type=f32)
        feat = jnp.maximum(pre + b_img, 0.0)                        # (W, CF*H)

        # ---- project_points_ : index_2d / grid_sample (exact semantics) -----
        # Separable bilinear: x-side as a sparse (N, W) one-hot matmul on the MXU,
        # y-side as lane-wise weights; OOB corners never match -> zeros padding.
        uvm = uv_all[m]                                             # (N, 2)
        u = uvm[:, 0:1]                                             # grid x -> w axis
        v = uvm[:, 1:2]                                             # grid y -> h axis
        px = (u + 1.0) * 0.5 * (W - 1)
        py = (v + 1.0) * 0.5 * (H - 1)
        x0f = jnp.floor(px)
        y0f = jnp.floor(py)
        x0 = x0f.astype(jnp.int32)
        y0 = y0f.astype(jnp.int32)
        wx1 = px - x0f
        wx0 = 1.0 - wx1
        wy1 = py - y0f
        wy0 = 1.0 - wy1
        wx_mat = (jnp.where(xcol == x0, wx0, 0.0)
                  + jnp.where(xcol == x0 + 1, wx1, 0.0))            # (N, W)
        wy_mat = (jnp.where(hlane == y0, wy0, 0.0)
                  + jnp.where(hlane == y0 + 1, wy1, 0.0))           # (N, CF*H)
        g = jnp.dot(wx_mat, feat, preferred_element_type=f32)       # (N, CF*H)
        p_exp = g * wy_mat   # expanded sampled point features; the sum over h is
                             # folded into the pre-tiled w_agg_f matmul below.

        # ---- aggregation_points_f -------------------------------------------
        # TODO(synk): ViewPoints_Aggregation unspecified; stand-in = per-view
        # linear+ReLU (split weights avoid the concat), max over views.
        vf_m = vf_all[m]                                            # (N, CV)
        h_m = (jnp.dot(vf_m, w_agg_v, preferred_element_type=f32)
               + jnp.dot(p_exp, w_agg_f, preferred_element_type=f32)
               + b_agg)
        h_m = jnp.maximum(h_m, 0.0)
        agg = h_m if agg is None else jnp.maximum(agg, h_m)         # (N, CAGG)

    gc = gc_ref[0]                                                  # (N, 3)
    lc = lc_ref[0]                                                  # (N, 3)

    # ---- points_wise_forward ------------------------------------------------
    # TODO(synk): MultiScale_Points_Volume_Encoder / Multi_Scale_Triplane_Encoder /
    # TriplaneImplictDecoder unspecified; stand-in = fused 2-layer MLP on
    # [aggregated feats, global coords, local coords] (split-weight dots).
    h1 = (jnp.dot(agg, w_i1_a_ref[...], preferred_element_type=f32)
          + jnp.dot(gc, w_i1_g_ref[...], preferred_element_type=f32)
          + jnp.dot(lc, w_i1_l_ref[...], preferred_element_type=f32)
          + b_i1_ref[...])
    h1 = jnp.maximum(h1, 0.0)
    pts_imp = jnp.dot(h1, w_i2_ref[...], preferred_element_type=f32) + b_i2_ref[...]  # (N, CIMP)

    # ---- points_denoised_model(pointcloud=noised_x, condition=[coords, implicit], ts)
    # TODO(synk): PointNet2CloudCondition unspecified; stand-in = conditional
    # point-wise MLP + mean-square loss (accumulated in-kernel).
    nx = nx_ref[0]                                                  # (N, DEN_OUT)
    t = ts_ref[0]                                                   # (1, 1)
    h2 = (jnp.dot(nx, w_d1_x_ref[...], preferred_element_type=f32)
          + jnp.dot(gc, w_d1_g_ref[...], preferred_element_type=f32)
          + jnp.dot(pts_imp, w_d1_p_ref[...], preferred_element_type=f32)
          + t * w_d1_t_ref[...]
          + b_d1_ref[...])
    h2 = jnp.maximum(h2, 0.0)
    pred = jnp.dot(h2, w_d2_ref[...], preferred_element_type=f32) + b_d2_ref[...]      # (N, DEN_OUT)

    loss_ref[...] = jnp.sum(pred * pred).reshape(1, 1, 1)           # per-batch partial sum


def _batch_spec(a):
    nd = a.ndim
    return pl.BlockSpec((1,) + a.shape[1:],
                        lambda b, _nd=nd: (b,) + (0,) * (_nd - 1))


def _const_spec(a):
    nd = a.ndim
    return pl.BlockSpec(a.shape, lambda b, _nd=nd: (0,) * _nd)


def fused_forward(data, weights):
    B = data[0].shape[0]
    in_specs = [_batch_spec(a) for a in data] + [_const_spec(w) for w in weights]
    return pl.pallas_call(
        _fused_forward_kernel,
        out_shape=jax.ShapeDtypeStruct((B, 1, 1), jnp.float32),
        grid=(B,),
        in_specs=in_specs,
        out_specs=pl.BlockSpec((1, 1, 1), lambda b: (b, 0, 0)),
        compiler_params=pltpu.CompilerParams(dimension_semantics=("parallel",)),
    )(*data, *weights)


# ----------------------------- parameters ------------------------------------
def init_params(key):
    ks = jax.random.split(key, 6)
    s = 0.1
    return dict(
        w_img=jax.random.normal(ks[0], (1, CF), jnp.float32) * s,
        b_img=jnp.zeros((1, CF), jnp.float32),
        w_agg=jax.random.normal(ks[1], (CV + CF, CAGG), jnp.float32) * s,
        b_agg=jnp.zeros((1, CAGG), jnp.float32),
        w_imp1=jax.random.normal(ks[2], (CAGG + 6, HID), jnp.float32) * s,
        b_imp1=jnp.zeros((1, HID), jnp.float32),
        w_imp2=jax.random.normal(ks[3], (HID, CIMP), jnp.float32) * s,
        b_imp2=jnp.zeros((1, CIMP), jnp.float32),
        w_den1=jax.random.normal(ks[4], (DEN_OUT + 3 + CIMP + 1, HID), jnp.float32) * s,
        b_den1=jnp.zeros((1, HID), jnp.float32),
        w_den2=jax.random.normal(ks[5], (HID, DEN_OUT), jnp.float32) * s,
        b_den2=jnp.zeros((1, DEN_OUT), jnp.float32),
    )


# ----------------------------- forward (mirrors the PyTorch module) ----------
def forward(params, projs, global_coords, points_proj, view_feature,
            local_coords, noised_x, ts):
    B, M, Cimg, W, H = projs.shape
    N = global_coords.shape[1]

    # Kernel-facing weight layout plumbing (plain JAX, one-time, outside kernel).
    # Expanded lane layout l = c*H + h, so the kernel never reshapes lane dims.
    # Fold the 1x1-conv weight into the lane-expansion matrix:
    #   w_img_e[ci, h', c*H + h] = w_img[ci, c] * (h' == h)
    eyeH = jnp.eye(H, dtype=jnp.float32)                                  # (H, H)
    w_img_e = (params["w_img"][:, None, :, None]
               * eyeH[None, :, None, :]).reshape(Cimg, H, CF * H)         # (Cimg, H, CF*H)
    b_img_exp = jnp.repeat(params["b_img"], H, axis=1)                    # (1, CF*H)
    w_agg_v = params["w_agg"][:CV]                                        # (CV, CAGG)
    w_agg_f = jnp.repeat(params["w_agg"][CV:], H, axis=0)                 # (CF*H, CAGG)
    w_i1_a = params["w_imp1"][:CAGG]
    w_i1_g = params["w_imp1"][CAGG:CAGG + 3]
    w_i1_l = params["w_imp1"][CAGG + 3:]
    w_d1_x = params["w_den1"][:DEN_OUT]
    w_d1_g = params["w_den1"][DEN_OUT:DEN_OUT + 3]
    w_d1_p = params["w_den1"][DEN_OUT + 3:DEN_OUT + 3 + CIMP]
    w_d1_t = params["w_den1"][DEN_OUT + 3 + CIMP:]
    ts3 = ts[:, :1].reshape(B, 1, 1)

    data = (projs, points_proj, view_feature, global_coords, local_coords,
            noised_x, ts3)
    weights = (w_img_e, b_img_exp,
               w_agg_v, w_agg_f, params["b_agg"],
               w_i1_a, w_i1_g, w_i1_l, params["b_imp1"],
               params["w_imp2"], params["b_imp2"],
               w_d1_x, w_d1_g, w_d1_p, w_d1_t, params["b_den1"],
               params["w_den2"], params["b_den2"])

    partial = fused_forward(data, weights)                      # (B, 1, 1) sum(pred^2)
    loss = jnp.sum(partial) / (B * N * DEN_OUT)                 # mean-square loss
    return loss


# ----------------------------- main -------------------------------------------
if __name__ == "__main__":
    B, M, Cimg, W, H = 2, 2, 1, 16, 16
    N = 128

    key = jax.random.PRNGKey(0)
    ks = jax.random.split(key, 8)
    projs = jax.random.normal(ks[0], (B, M, Cimg, W, H), jnp.float32)
    global_coords = jax.random.uniform(ks[1], (B, N, 3), jnp.float32, -1.0, 1.0)
    local_coords = jax.random.uniform(ks[2], (B, N, 3), jnp.float32, -1.0, 1.0)
    points_proj = jax.random.uniform(ks[3], (B, M, N, 2), jnp.float32, -1.0, 1.0)
    view_feature = jax.random.normal(ks[4], (B, M, N, CV), jnp.float32)
    noised_x = jax.random.normal(ks[5], (B, N, DEN_OUT), jnp.float32)
    ts = jax.random.uniform(ks[6], (B, 1), jnp.float32, 0.0, 1.0)

    params = init_params(jax.random.PRNGKey(42))

    loss = forward(params, projs, global_coords, points_proj, view_feature,
                   local_coords, noised_x, ts)
    jax.block_until_ready(loss)
    assert loss.shape == () and jnp.isfinite(loss)
    print("KERNEL_OK")
</pallas_src>

<mosaic_0001>
module attributes {stable_mosaic.version = 11 : i64} {
  func.func @_fused_forward_kernel(%arg0: i32, %arg1: memref<1x2x1x16x16xf32, #tpu.memory_space<vmem>>, %arg2: memref<1x2x128x2xf32, #tpu.memory_space<vmem>>, %arg3: memref<1x2x128x10xf32, #tpu.memory_space<vmem>>, %arg4: memref<1x128x3xf32, #tpu.memory_space<vmem>>, %arg5: memref<1x128x3xf32, #tpu.memory_space<vmem>>, %arg6: memref<1x128x4xf32, #tpu.memory_space<vmem>>, %arg7: memref<1x1x1xf32, #tpu.memory_space<vmem>>, %arg8: memref<1x16x128xf32, #tpu.memory_space<vmem>>, %arg9: memref<1x128xf32, #tpu.memory_space<vmem>>, %arg10: memref<10x32xf32, #tpu.memory_space<vmem>>, %arg11: memref<128x32xf32, #tpu.memory_space<vmem>>, %arg12: memref<1x32xf32, #tpu.memory_space<vmem>>, %arg13: memref<32x64xf32, #tpu.memory_space<vmem>>, %arg14: memref<3x64xf32, #tpu.memory_space<vmem>>, %arg15: memref<3x64xf32, #tpu.memory_space<vmem>>, %arg16: memref<1x64xf32, #tpu.memory_space<vmem>>, %arg17: memref<64x29xf32, #tpu.memory_space<vmem>>, %arg18: memref<1x29xf32, #tpu.memory_space<vmem>>, %arg19: memref<4x64xf32, #tpu.memory_space<vmem>>, %arg20: memref<3x64xf32, #tpu.memory_space<vmem>>, %arg21: memref<29x64xf32, #tpu.memory_space<vmem>>, %arg22: memref<1x64xf32, #tpu.memory_space<vmem>>, %arg23: memref<1x64xf32, #tpu.memory_space<vmem>>, %arg24: memref<64x4xf32, #tpu.memory_space<vmem>>, %arg25: memref<1x4xf32, #tpu.memory_space<vmem>>, %arg26: memref<1x1x1xf32, #tpu.memory_space<vmem>>) attributes {dimension_semantics = [#tpu.dimension_semantics<parallel>], iteration_bounds = array<i64: 2>, scalar_prefetch = 0 : i64, scratch_operands = 0 : i64, tpu.core_type = #tpu.core_type<tc>, window_params = [{transform_indices = @transform_0, window_bounds = array<i64: 1, 2, 1, 16, 16>}, {transform_indices = @transform_1, window_bounds = array<i64: 1, 2, 128, 2>}, {transform_indices = @transform_2, window_bounds = array<i64: 1, 2, 128, 10>}, {transform_indices = @transform_3, window_bounds = array<i64: 1, 128, 3>}, {transform_indices = @transform_4, window_bounds = array<i64: 1, 128, 3>}, {transform_indices = @transform_5, window_bounds = array<i64: 1, 128, 4>}, {transform_indices = @transform_6, window_bounds = array<i64: 1, 1, 1>}, {pipeline_mode = #tpu.pipeline_mode<synchronous>, transform_indices = @transform_7, window_bounds = array<i64: 1, 16, 128>}, {pipeline_mode = #tpu.pipeline_mode<synchronous>, transform_indices = @transform_8, window_bounds = array<i64: 1, 128>}, {pipeline_mode = #tpu.pipeline_mode<synchronous>, transform_indices = @transform_9, window_bounds = array<i64: 10, 32>}, {pipeline_mode = #tpu.pipeline_mode<synchronous>, transform_indices = @transform_10, window_bounds = array<i64: 128, 32>}, {pipeline_mode = #tpu.pipeline_mode<synchronous>, transform_indices = @transform_11, window_bounds = array<i64: 1, 32>}, {pipeline_mode = #tpu.pipeline_mode<synchronous>, transform_indices = @transform_12, window_bounds = array<i64: 32, 64>}, {pipeline_mode = #tpu.pipeline_mode<synchronous>, transform_indices = @transform_13, window_bounds = array<i64: 3, 64>}, {pipeline_mode = #tpu.pipeline_mode<synchronous>, transform_indices = @transform_14, window_bounds = array<i64: 3, 64>}, {pipeline_mode = #tpu.pipeline_mode<synchronous>, transform_indices = @transform_15, window_bounds = array<i64: 1, 64>}, {pipeline_mode = #tpu.pipeline_mode<synchronous>, transform_indices = @transform_16, window_bounds = array<i64: 64, 29>}, {pipeline_mode = #tpu.pipeline_mode<synchronous>, transform_indices = @transform_17, window_bounds = array<i64: 1, 29>}, {pipeline_mode = #tpu.pipeline_mode<synchronous>, transform_indices = @transform_18, window_bounds = array<i64: 4, 64>}, {pipeline_mode = #tpu.pipeline_mode<synchronous>, transform_indices = @transform_19, window_bounds = array<i64: 3, 64>}, {pipeline_mode = #tpu.pipeline_mode<synchronous>, transform_indices = @transform_20, window_bounds = array<i64: 29, 64>}, {pipeline_mode = #tpu.pipeline_mode<synchronous>, transform_indices = @transform_21, window_bounds = array<i64: 1, 64>}, {pipeline_mode = #tpu.pipeline_mode<synchronous>, transform_indices = @transform_22, window_bounds = array<i64: 1, 64>}, {pipeline_mode = #tpu.pipeline_mode<synchronous>, transform_indices = @transform_23, window_bounds = array<i64: 64, 4>}, {pipeline_mode = #tpu.pipeline_mode<synchronous>, transform_indices = @transform_24, window_bounds = array<i64: 1, 4>}, {transform_indices = @transform_25, window_bounds = array<i64: 1, 1, 1>}]} {
    %0 = tpu.iota {dimensions = array<i32: 1>} : vector<128x16xi32>
    %1 = tpu.iota {dimensions = array<i32: 1>} : vector<128x128xi32>
    %c16_i32 = arith.constant 16 : i32
    %c0_i32 = arith.constant 0 : i32
    %2 = arith.cmpi eq, %c16_i32, %c0_i32 : i32
    %c1_i32 = arith.constant 1 : i32
    %3 = arith.select %2, %c1_i32, %c16_i32 : i32
    %4 = vector.broadcast %3 : i32 to vector<128x128xi32>
    %5 = arith.remsi %1, %4 : vector<128x128xi32>
    %c0_i32_0 = arith.constant 0 : i32
    %6 = vector.broadcast %c0_i32_0 : i32 to vector<128x128xi32>
    %7 = arith.cmpi ne, %5, %6 : vector<128x128xi32>
    %c0_i32_1 = arith.constant 0 : i32
    %8 = vector.broadcast %c0_i32_1 : i32 to vector<128x128xi32>
    %9 = arith.cmpi slt, %5, %8 : vector<128x128xi32>
    %c0_i32_2 = arith.constant 0 : i32
    %10 = arith.cmpi slt, %3, %c0_i32_2 : i32
    %11 = vector.broadcast %10 : i1 to vector<128x128xi1>
    %12 = vector.broadcast %11 : vector<128x128xi1> to vector<128x128xi1>
    %13 = arith.xori %9, %12 : vector<128x128xi1>
    %14 = arith.andi %13, %7 : vector<128x128xi1>
    %15 = vector.broadcast %3 : i32 to vector<128x128xi32>
    %16 = arith.addi %5, %15 : vector<128x128xi32>
    %17 = arith.select %14, %16, %5 : vector<128x128xi1>, vector<128x128xi32>
    %c0 = arith.constant 0 : index
    %c0_3 = arith.constant 0 : index
    %c0_4 = arith.constant 0 : index
    %18 = vector.load %arg8[%c0, %c0_3, %c0_4] : memref<1x16x128xf32, #tpu.memory_space<vmem>>, vector<1x16x128xf32>
    %c0_5 = arith.constant 0 : index
    %c0_6 = arith.constant 0 : index
    %19 = vector.load %arg9[%c0_5, %c0_6] : memref<1x128xf32, #tpu.memory_space<vmem>>, vector<1x128xf32>
    %c0_7 = arith.constant 0 : index
    %c0_8 = arith.constant 0 : index
    %20 = vector.load %arg10[%c0_7, %c0_8] : memref<10x32xf32, #tpu.memory_space<vmem>>, vector<10x32xf32>
    %c0_9 = arith.constant 0 : index
    %c0_10 = arith.constant 0 : index
    %21 = vector.load %arg11[%c0_9, %c0_10] : memref<128x32xf32, #tpu.memory_space<vmem>>, vector<128x32xf32>
    %c0_11 = arith.constant 0 : index
    %c0_12 = arith.constant 0 : index
    %22 = vector.load %arg12[%c0_11, %c0_12] : memref<1x32xf32, #tpu.memory_space<vmem>>, vector<1x32xf32>
    %c0_13 = arith.constant 0 : index
    %c0_14 = arith.constant 0 : index
    %c0_15 = arith.constant 0 : index
    %c0_16 = arith.constant 0 : index
    %c0_17 = arith.constant 0 : index
    %23 = vector.load %arg1[%c0_13, %c0_14, %c0_15, %c0_16, %c0_17] : memref<1x2x1x16x16xf32, #tpu.memory_space<vmem>>, vector<1x2x1x16x16xf32>
    %24 = vector.shape_cast %23 : vector<1x2x1x16x16xf32> to vector<2x1x16x16xf32>
    %c0_18 = arith.constant 0 : index
    %c0_19 = arith.constant 0 : index
    %c0_20 = arith.constant 0 : index
    %c0_21 = arith.constant 0 : index
    %25 = vector.load %arg2[%c0_18, %c0_19, %c0_20, %c0_21] : memref<1x2x128x2xf32, #tpu.memory_space<vmem>>, vector<1x2x128x2xf32>
    %26 = vector.shape_cast %25 : vector<1x2x128x2xf32> to vector<2x128x2xf32>
    %c0_22 = arith.constant 0 : index
    %c0_23 = arith.constant 0 : index
    %c0_24 = arith.constant 0 : index
    %c0_25 = arith.constant 0 : index
    %27 = vector.load %arg3[%c0_22, %c0_23, %c0_24, %c0_25] : memref<1x2x128x10xf32, #tpu.memory_space<vmem>>, vector<1x2x128x10xf32>
    %28 = vector.shape_cast %27 : vector<1x2x128x10xf32> to vector<2x128x10xf32>
    %29 = vector.extract_strided_slice %24 {offsets = [0, 0, 0, 0], sizes = [1, 1, 16, 16], strides = [1, 1, 1, 1]} : vector<2x1x16x16xf32> to vector<1x1x16x16xf32>
    %30 = vector.shape_cast %29 : vector<1x1x16x16xf32> to vector<16x16xf32>
    %31 = vector.shape_cast %18 : vector<1x16x128xf32> to vector<16x128xf32>
    %cst = arith.constant dense<0.000000e+00> : vector<16x128xf32>
    %32 = tpu.matmul %30, %31, %cst {dimension_numbers = #tpu.dot_dimension_numbers<[1], [0], [0], [1], [0, 0, 1, 1], [], []>} : vector<16x16xf32>, vector<16x128xf32>, vector<16x128xf32> -> vector<16x128xf32>
    %33 = vector.broadcast %19 : vector<1x128xf32> to vector<16x128xf32>
    %34 = arith.addf %32, %33 : vector<16x128xf32>
    %cst_26 = arith.constant 0.000000e+00 : f32
    %35 = vector.broadcast %cst_26 : f32 to vector<16x128xf32>
    %36 = arith.maximumf %34, %35 : vector<16x128xf32>
    %37 = vector.extract_strided_slice %26 {offsets = [0, 0, 0], sizes = [1, 128, 2], strides = [1, 1, 1]} : vector<2x128x2xf32> to vector<1x128x2xf32>
    %38 = vector.shape_cast %37 : vector<1x128x2xf32> to vector<128x2xf32>
    %39 = vector.extract_strided_slice %38 {offsets = [0, 0], sizes = [128, 1], strides = [1, 1]} : vector<128x2xf32> to vector<128x1xf32>
    %40 = vector.extract_strided_slice %38 {offsets = [0, 1], sizes = [128, 1], strides = [1, 1]} : vector<128x2xf32> to vector<128x1xf32>
    %cst_27 = arith.constant 1.000000e+00 : f32
    %41 = vector.broadcast %cst_27 : f32 to vector<128x1xf32>
    %42 = arith.addf %39, %41 : vector<128x1xf32>
    %cst_28 = arith.constant 5.000000e-01 : f32
    %43 = vector.broadcast %cst_28 : f32 to vector<128x1xf32>
    %44 = arith.mulf %42, %43 : vector<128x1xf32>
    %cst_29 = arith.constant 1.500000e+01 : f32
    %45 = vector.broadcast %cst_29 : f32 to vector<128x1xf32>
    %46 = arith.mulf %44, %45 : vector<128x1xf32>
    %cst_30 = arith.constant 1.000000e+00 : f32
    %47 = vector.broadcast %cst_30 : f32 to vector<128x1xf32>
    %48 = arith.addf %40, %47 : vector<128x1xf32>
    %cst_31 = arith.constant 5.000000e-01 : f32
    %49 = vector.broadcast %cst_31 : f32 to vector<128x1xf32>
    %50 = arith.mulf %48, %49 : vector<128x1xf32>
    %cst_32 = arith.constant 1.500000e+01 : f32
    %51 = vector.broadcast %cst_32 : f32 to vector<128x1xf32>
    %52 = arith.mulf %50, %51 : vector<128x1xf32>
    %53 = math.floor %46 : vector<128x1xf32>
    %54 = math.floor %52 : vector<128x1xf32>
    %55 = arith.fptosi %53 : vector<128x1xf32> to vector<128x1xi32>
    %56 = arith.fptosi %54 : vector<128x1xf32> to vector<128x1xi32>
    %57 = arith.subf %46, %53 : vector<128x1xf32>
    %cst_33 = arith.constant 1.000000e+00 : f32
    %58 = vector.broadcast %cst_33 : f32 to vector<128x1xf32>
    %59 = arith.subf %58, %57 : vector<128x1xf32>
    %60 = arith.subf %52, %54 : vector<128x1xf32>
    %cst_34 = arith.constant 1.000000e+00 : f32
    %61 = vector.broadcast %cst_34 : f32 to vector<128x1xf32>
    %62 = arith.subf %61, %60 : vector<128x1xf32>
    %63 = vector.broadcast %55 : vector<128x1xi32> to vector<128x16xi32>
    %64 = arith.cmpi eq, %0, %63 : vector<128x16xi32>
    %cst_35 = arith.constant 0.000000e+00 : f32
    %65 = vector.shape_cast %59 : vector<128x1xf32> to vector<128x1xf32>
    %66 = vector.broadcast %65 : vector<128x1xf32> to vector<128x16xf32>
    %67 = vector.broadcast %cst_35 : f32 to vector<128x16xf32>
    %68 = arith.select %64, %66, %67 : vector<128x16xi1>, vector<128x16xf32>
    %c1_i32_36 = arith.constant 1 : i32
    %69 = vector.broadcast %c1_i32_36 : i32 to vector<128x1xi32>
    %70 = arith.addi %55, %69 : vector<128x1xi32>
    %71 = vector.broadcast %70 : vector<128x1xi32> to vector<128x16xi32>
    %72 = arith.cmpi eq, %0, %71 : vector<128x16xi32>
    %cst_37 = arith.constant 0.000000e+00 : f32
    %73 = vector.shape_cast %57 : vector<128x1xf32> to vector<128x1xf32>
    %74 = vector.broadcast %73 : vector<128x1xf32> to vector<128x16xf32>
    %75 = vector.broadcast %cst_37 : f32 to vector<128x16xf32>
    %76 = arith.select %72, %74, %75 : vector<128x16xi1>, vector<128x16xf32>
    %77 = arith.addf %68, %76 : vector<128x16xf32>
    %78 = vector.broadcast %56 : vector<128x1xi32> to vector<128x128xi32>
    %79 = arith.cmpi eq, %17, %78 : vector<128x128xi32>
    %cst_38 = arith.constant 0.000000e+00 : f32
    %80 = vector.shape_cast %62 : vector<128x1xf32> to vector<128x1xf32>
    %81 = vector.broadcast %80 : vector<128x1xf32> to vector<128x128xf32>
    %82 = vector.broadcast %cst_38 : f32 to vector<128x128xf32>
    %83 = arith.select %79, %81, %82 : vector<128x128xi1>, vector<128x128xf32>
    %c1_i32_39 = arith.constant 1 : i32
    %84 = vector.broadcast %c1_i32_39 : i32 to vector<128x1xi32>
    %85 = arith.addi %56, %84 : vector<128x1xi32>
    %86 = vector.broadcast %85 : vector<128x1xi32> to vector<128x128xi32>
    %87 = arith.cmpi eq, %17, %86 : vector<128x128xi32>
    %cst_40 = arith.constant 0.000000e+00 : f32
    %88 = vector.shape_cast %60 : vector<128x1xf32> to vector<128x1xf32>
    %89 = vector.broadcast %88 : vector<128x1xf32> to vector<128x128xf32>
    %90 = vector.broadcast %cst_40 : f32 to vector<128x128xf32>
    %91 = arith.select %87, %89, %90 : vector<128x128xi1>, vector<128x128xf32>
    %92 = arith.addf %83, %91 : vector<128x128xf32>
    %cst_41 = arith.constant dense<0.000000e+00> : vector<128x128xf32>
    %93 = tpu.matmul %77, %36, %cst_41 {dimension_numbers = #tpu.dot_dimension_numbers<[1], [0], [0], [1], [0, 0, 1, 1], [], []>} : vector<128x16xf32>, vector<16x128xf32>, vector<128x128xf32> -> vector<128x128xf32>
    %94 = arith.mulf %93, %92 : vector<128x128xf32>
    %95 = vector.extract_strided_slice %28 {offsets = [0, 0, 0], sizes = [1, 128, 10], strides = [1, 1, 1]} : vector<2x128x10xf32> to vector<1x128x10xf32>
    %96 = vector.shape_cast %95 : vector<1x128x10xf32> to vector<128x10xf32>
    %cst_42 = arith.constant dense<0.000000e+00> : vector<128x32xf32>
    %97 = tpu.matmul %96, %20, %cst_42 {dimension_numbers = #tpu.dot_dimension_numbers<[1], [0], [0], [1], [0, 0, 1, 1], [], []>} : vector<128x10xf32>, vector<10x32xf32>, vector<128x32xf32> -> vector<128x32xf32>
    %cst_43 = arith.constant dense<0.000000e+00> : vector<128x32xf32>
    %98 = tpu.matmul %94, %21, %cst_43 {dimension_numbers = #tpu.dot_dimension_numbers<[1], [0], [0], [1], [0, 0, 1, 1], [], []>} : vector<128x128xf32>, vector<128x32xf32>, vector<128x32xf32> -> vector<128x32xf32>
    %99 = arith.addf %97, %98 : vector<128x32xf32>
    %100 = vector.broadcast %22 : vector<1x32xf32> to vector<128x32xf32>
    %101 = arith.addf %99, %100 : vector<128x32xf32>
    %cst_44 = arith.constant 0.000000e+00 : f32
    %102 = vector.broadcast %cst_44 : f32 to vector<128x32xf32>
    %103 = arith.maximumf %101, %102 : vector<128x32xf32>
    %104 = vector.extract_strided_slice %24 {offsets = [1, 0, 0, 0], sizes = [1, 1, 16, 16], strides = [1, 1, 1, 1]} : vector<2x1x16x16xf32> to vector<1x1x16x16xf32>
    %105 = vector.shape_cast %104 : vector<1x1x16x16xf32> to vector<16x16xf32>
    %106 = vector.shape_cast %18 : vector<1x16x128xf32> to vector<16x128xf32>
    %cst_45 = arith.constant dense<0.000000e+00> : vector<16x128xf32>
    %107 = tpu.matmul %105, %106, %cst_45 {dimension_numbers = #tpu.dot_dimension_numbers<[1], [0], [0], [1], [0, 0, 1, 1], [], []>} : vector<16x16xf32>, vector<16x128xf32>, vector<16x128xf32> -> vector<16x128xf32>
    %108 = vector.broadcast %19 : vector<1x128xf32> to vector<16x128xf32>
    %109 = arith.addf %107, %108 : vector<16x128xf32>
    %cst_46 = arith.constant 0.000000e+00 : f32
    %110 = vector.broadcast %cst_46 : f32 to vector<16x128xf32>
    %111 = arith.maximumf %109, %110 : vector<16x128xf32>
    %112 = vector.extract_strided_slice %26 {offsets = [1, 0, 0], sizes = [1, 128, 2], strides = [1, 1, 1]} : vector<2x128x2xf32> to vector<1x128x2xf32>
    %113 = vector.shape_cast %112 : vector<1x128x2xf32> to vector<128x2xf32>
    %114 = vector.extract_strided_slice %113 {offsets = [0, 0], sizes = [128, 1], strides = [1, 1]} : vector<128x2xf32> to vector<128x1xf32>
    %115 = vector.extract_strided_slice %113 {offsets = [0, 1], sizes = [128, 1], strides = [1, 1]} : vector<128x2xf32> to vector<128x1xf32>
    %cst_47 = arith.constant 1.000000e+00 : f32
    %116 = vector.broadcast %cst_47 : f32 to vector<128x1xf32>
    %117 = arith.addf %114, %116 : vector<128x1xf32>
    %cst_48 = arith.constant 5.000000e-01 : f32
    %118 = vector.broadcast %cst_48 : f32 to vector<128x1xf32>
    %119 = arith.mulf %117, %118 : vector<128x1xf32>
    %cst_49 = arith.constant 1.500000e+01 : f32
    %120 = vector.broadcast %cst_49 : f32 to vector<128x1xf32>
    %121 = arith.mulf %119, %120 : vector<128x1xf32>
    %cst_50 = arith.constant 1.000000e+00 : f32
    %122 = vector.broadcast %cst_50 : f32 to vector<128x1xf32>
    %123 = arith.addf %115, %122 : vector<128x1xf32>
    %cst_51 = arith.constant 5.000000e-01 : f32
    %124 = vector.broadcast %cst_51 : f32 to vector<128x1xf32>
    %125 = arith.mulf %123, %124 : vector<128x1xf32>
    %cst_52 = arith.constant 1.500000e+01 : f32
    %126 = vector.broadcast %cst_52 : f32 to vector<128x1xf32>
    %127 = arith.mulf %125, %126 : vector<128x1xf32>
    %128 = math.floor %121 : vector<128x1xf32>
    %129 = math.floor %127 : vector<128x1xf32>
    %130 = arith.fptosi %128 : vector<128x1xf32> to vector<128x1xi32>
    %131 = arith.fptosi %129 : vector<128x1xf32> to vector<128x1xi32>
    %132 = arith.subf %121, %128 : vector<128x1xf32>
    %cst_53 = arith.constant 1.000000e+00 : f32
    %133 = vector.broadcast %cst_53 : f32 to vector<128x1xf32>
    %134 = arith.subf %133, %132 : vector<128x1xf32>
    %135 = arith.subf %127, %129 : vector<128x1xf32>
    %cst_54 = arith.constant 1.000000e+00 : f32
    %136 = vector.broadcast %cst_54 : f32 to vector<128x1xf32>
    %137 = arith.subf %136, %135 : vector<128x1xf32>
    %138 = vector.broadcast %130 : vector<128x1xi32> to vector<128x16xi32>
    %139 = arith.cmpi eq, %0, %138 : vector<128x16xi32>
    %cst_55 = arith.constant 0.000000e+00 : f32
    %140 = vector.shape_cast %134 : vector<128x1xf32> to vector<128x1xf32>
    %141 = vector.broadcast %140 : vector<128x1xf32> to vector<128x16xf32>
    %142 = vector.broadcast %cst_55 : f32 to vector<128x16xf32>
    %143 = arith.select %139, %141, %142 : vector<128x16xi1>, vector<128x16xf32>
    %c1_i32_56 = arith.constant 1 : i32
    %144 = vector.broadcast %c1_i32_56 : i32 to vector<128x1xi32>
    %145 = arith.addi %130, %144 : vector<128x1xi32>
    %146 = vector.broadcast %145 : vector<128x1xi32> to vector<128x16xi32>
    %147 = arith.cmpi eq, %0, %146 : vector<128x16xi32>
    %cst_57 = arith.constant 0.000000e+00 : f32
    %148 = vector.shape_cast %132 : vector<128x1xf32> to vector<128x1xf32>
    %149 = vector.broadcast %148 : vector<128x1xf32> to vector<128x16xf32>
    %150 = vector.broadcast %cst_57 : f32 to vector<128x16xf32>
    %151 = arith.select %147, %149, %150 : vector<128x16xi1>, vector<128x16xf32>
    %152 = arith.addf %143, %151 : vector<128x16xf32>
    %153 = vector.broadcast %131 : vector<128x1xi32> to vector<128x128xi32>
    %154 = arith.cmpi eq, %17, %153 : vector<128x128xi32>
    %cst_58 = arith.constant 0.000000e+00 : f32
    %155 = vector.shape_cast %137 : vector<128x1xf32> to vector<128x1xf32>
    %156 = vector.broadcast %155 : vector<128x1xf32> to vector<128x128xf32>
    %157 = vector.broadcast %cst_58 : f32 to vector<128x128xf32>
    %158 = arith.select %154, %156, %157 : vector<128x128xi1>, vector<128x128xf32>
    %c1_i32_59 = arith.constant 1 : i32
    %159 = vector.broadcast %c1_i32_59 : i32 to vector<128x1xi32>
    %160 = arith.addi %131, %159 : vector<128x1xi32>
    %161 = vector.broadcast %160 : vector<128x1xi32> to vector<128x128xi32>
    %162 = arith.cmpi eq, %17, %161 : vector<128x128xi32>
    %cst_60 = arith.constant 0.000000e+00 : f32
    %163 = vector.shape_cast %135 : vector<128x1xf32> to vector<128x1xf32>
    %164 = vector.broadcast %163 : vector<128x1xf32> to vector<128x128xf32>
    %165 = vector.broadcast %cst_60 : f32 to vector<128x128xf32>
    %166 = arith.select %162, %164, %165 : vector<128x128xi1>, vector<128x128xf32>
    %167 = arith.addf %158, %166 : vector<128x128xf32>
    %cst_61 = arith.constant dense<0.000000e+00> : vector<128x128xf32>
    %168 = tpu.matmul %152, %111, %cst_61 {dimension_numbers = #tpu.dot_dimension_numbers<[1], [0], [0], [1], [0, 0, 1, 1], [], []>} : vector<128x16xf32>, vector<16x128xf32>, vector<128x128xf32> -> vector<128x128xf32>
    %169 = arith.mulf %168, %167 : vector<128x128xf32>
    %170 = vector.extract_strided_slice %28 {offsets = [1, 0, 0], sizes = [1, 128, 10], strides = [1, 1, 1]} : vector<2x128x10xf32> to vector<1x128x10xf32>
    %171 = vector.shape_cast %170 : vector<1x128x10xf32> to vector<128x10xf32>
    %cst_62 = arith.constant dense<0.000000e+00> : vector<128x32xf32>
    %172 = tpu.matmul %171, %20, %cst_62 {dimension_numbers = #tpu.dot_dimension_numbers<[1], [0], [0], [1], [0, 0, 1, 1], [], []>} : vector<128x10xf32>, vector<10x32xf32>, vector<128x32xf32> -> vector<128x32xf32>
    %cst_63 = arith.constant dense<0.000000e+00> : vector<128x32xf32>
    %173 = tpu.matmul %169, %21, %cst_63 {dimension_numbers = #tpu.dot_dimension_numbers<[1], [0], [0], [1], [0, 0, 1, 1], [], []>} : vector<128x128xf32>, vector<128x32xf32>, vector<128x32xf32> -> vector<128x32xf32>
    %174 = arith.addf %172, %173 : vector<128x32xf32>
    %175 = vector.broadcast %22 : vector<1x32xf32> to vector<128x32xf32>
    %176 = arith.addf %174, %175 : vector<128x32xf32>
    %cst_64 = arith.constant 0.000000e+00 : f32
    %177 = vector.broadcast %cst_64 : f32 to vector<128x32xf32>
    %178 = arith.maximumf %176, %177 : vector<128x32xf32>
    %179 = arith.maximumf %103, %178 : vector<128x32xf32>
    %c0_65 = arith.constant 0 : index
    %c0_66 = arith.constant 0 : index
    %c0_67 = arith.constant 0 : index
    %180 = vector.load %arg4[%c0_65, %c0_66, %c0_67] : memref<1x128x3xf32, #tpu.memory_space<vmem>>, vector<1x128x3xf32>
    %181 = vector.shape_cast %180 : vector<1x128x3xf32> to vector<128x3xf32>
    %c0_68 = arith.constant 0 : index
    %c0_69 = arith.constant 0 : index
    %c0_70 = arith.constant 0 : index
    %182 = vector.load %arg5[%c0_68, %c0_69, %c0_70] : memref<1x128x3xf32, #tpu.memory_space<vmem>>, vector<1x128x3xf32>
    %183 = vector.shape_cast %182 : vector<1x128x3xf32> to vector<128x3xf32>
    %c0_71 = arith.constant 0 : index
    %c0_72 = arith.constant 0 : index
    %184 = vector.load %arg13[%c0_71, %c0_72] : memref<32x64xf32, #tpu.memory_space<vmem>>, vector<32x64xf32>
    %cst_73 = arith.constant dense<0.000000e+00> : vector<128x64xf32>
    %185 = tpu.matmul %179, %184, %cst_73 {dimension_numbers = #tpu.dot_dimension_numbers<[1], [0], [0], [1], [0, 0, 1, 1], [], []>} : vector<128x32xf32>, vector<32x64xf32>, vector<128x64xf32> -> vector<128x64xf32>
    %c0_74 = arith.constant 0 : index
    %c0_75 = arith.constant 0 : index
    %186 = vector.load %arg14[%c0_74, %c0_75] : memref<3x64xf32, #tpu.memory_space<vmem>>, vector<3x64xf32>
    %cst_76 = arith.constant dense<0.000000e+00> : vector<128x64xf32>
    %187 = tpu.matmul %181, %186, %cst_76 {dimension_numbers = #tpu.dot_dimension_numbers<[1], [0], [0], [1], [0, 0, 1, 1], [], []>} : vector<128x3xf32>, vector<3x64xf32>, vector<128x64xf32> -> vector<128x64xf32>
    %188 = arith.addf %185, %187 : vector<128x64xf32>
    %c0_77 = arith.constant 0 : index
    %c0_78 = arith.constant 0 : index
    %189 = vector.load %arg15[%c0_77, %c0_78] : memref<3x64xf32, #tpu.memory_space<vmem>>, vector<3x64xf32>
    %cst_79 = arith.constant dense<0.000000e+00> : vector<128x64xf32>
    %190 = tpu.matmul %183, %189, %cst_79 {dimension_numbers = #tpu.dot_dimension_numbers<[1], [0], [0], [1], [0, 0, 1, 1], [], []>} : vector<128x3xf32>, vector<3x64xf32>, vector<128x64xf32> -> vector<128x64xf32>
    %191 = arith.addf %188, %190 : vector<128x64xf32>
    %c0_80 = arith.constant 0 : index
    %c0_81 = arith.constant 0 : index
    %192 = vector.load %arg16[%c0_80, %c0_81] : memref<1x64xf32, #tpu.memory_space<vmem>>, vector<1x64xf32>
    %193 = vector.broadcast %192 : vector<1x64xf32> to vector<128x64xf32>
    %194 = arith.addf %191, %193 : vector<128x64xf32>
    %cst_82 = arith.constant 0.000000e+00 : f32
    %195 = vector.broadcast %cst_82 : f32 to vector<128x64xf32>
    %196 = arith.maximumf %194, %195 : vector<128x64xf32>
    %c0_83 = arith.constant 0 : index
    %c0_84 = arith.constant 0 : index
    %197 = vector.load %arg17[%c0_83, %c0_84] : memref<64x29xf32, #tpu.memory_space<vmem>>, vector<64x29xf32>
    %cst_85 = arith.constant dense<0.000000e+00> : vector<128x29xf32>
    %198 = tpu.matmul %196, %197, %cst_85 {dimension_numbers = #tpu.dot_dimension_numbers<[1], [0], [0], [1], [0, 0, 1, 1], [], []>} : vector<128x64xf32>, vector<64x29xf32>, vector<128x29xf32> -> vector<128x29xf32>
    %c0_86 = arith.constant 0 : index
    %c0_87 = arith.constant 0 : index
    %199 = vector.load %arg18[%c0_86, %c0_87] : memref<1x29xf32, #tpu.memory_space<vmem>>, vector<1x29xf32>
    %200 = vector.broadcast %199 : vector<1x29xf32> to vector<128x29xf32>
    %201 = arith.addf %198, %200 : vector<128x29xf32>
    %c0_88 = arith.constant 0 : index
    %c0_89 = arith.constant 0 : index
    %c0_90 = arith.constant 0 : index
    %202 = vector.load %arg6[%c0_88, %c0_89, %c0_90] : memref<1x128x4xf32, #tpu.memory_space<vmem>>, vector<1x128x4xf32>
    %203 = vector.shape_cast %202 : vector<1x128x4xf32> to vector<128x4xf32>
    %c0_91 = arith.constant 0 : index
    %c0_92 = arith.constant 0 : index
    %c0_93 = arith.constant 0 : index
    %204 = vector.load %arg7[%c0_91, %c0_92, %c0_93] : memref<1x1x1xf32, #tpu.memory_space<vmem>>, vector<1x1x1xf32>
    %205 = vector.shape_cast %204 : vector<1x1x1xf32> to vector<1x1xf32>
    %c0_94 = arith.constant 0 : index
    %c0_95 = arith.constant 0 : index
    %206 = vector.load %arg19[%c0_94, %c0_95] : memref<4x64xf32, #tpu.memory_space<vmem>>, vector<4x64xf32>
    %cst_96 = arith.constant dense<0.000000e+00> : vector<128x64xf32>
    %207 = tpu.matmul %203, %206, %cst_96 {dimension_numbers = #tpu.dot_dimension_numbers<[1], [0], [0], [1], [0, 0, 1, 1], [], []>} : vector<128x4xf32>, vector<4x64xf32>, vector<128x64xf32> -> vector<128x64xf32>
    %c0_97 = arith.constant 0 : index
    %c0_98 = arith.constant 0 : index
    %208 = vector.load %arg20[%c0_97, %c0_98] : memref<3x64xf32, #tpu.memory_space<vmem>>, vector<3x64xf32>
    %cst_99 = arith.constant dense<0.000000e+00> : vector<128x64xf32>
    %209 = tpu.matmul %181, %208, %cst_99 {dimension_numbers = #tpu.dot_dimension_numbers<[1], [0], [0], [1], [0, 0, 1, 1], [], []>} : vector<128x3xf32>, vector<3x64xf32>, vector<128x64xf32> -> vector<128x64xf32>
    %210 = arith.addf %207, %209 : vector<128x64xf32>
    %c0_100 = arith.constant 0 : index
    %c0_101 = arith.constant 0 : index
    %211 = vector.load %arg21[%c0_100, %c0_101] : memref<29x64xf32, #tpu.memory_space<vmem>>, vector<29x64xf32>
    %cst_102 = arith.constant dense<0.000000e+00> : vector<128x64xf32>
    %212 = tpu.matmul %201, %211, %cst_102 {dimension_numbers = #tpu.dot_dimension_numbers<[1], [0], [0], [1], [0, 0, 1, 1], [], []>} : vector<128x29xf32>, vector<29x64xf32>, vector<128x64xf32> -> vector<128x64xf32>
    %213 = arith.addf %210, %212 : vector<128x64xf32>
    %c0_103 = arith.constant 0 : index
    %c0_104 = arith.constant 0 : index
    %214 = vector.load %arg22[%c0_103, %c0_104] : memref<1x64xf32, #tpu.memory_space<vmem>>, vector<1x64xf32>
    %215 = vector.broadcast %205 : vector<1x1xf32> to vector<1x64xf32>
    %216 = arith.mulf %215, %214 : vector<1x64xf32>
    %217 = vector.broadcast %216 : vector<1x64xf32> to vector<128x64xf32>
    %218 = arith.addf %213, %217 : vector<128x64xf32>
    %c0_105 = arith.constant 0 : index
    %c0_106 = arith.constant 0 : index
    %219 = vector.load %arg23[%c0_105, %c0_106] : memref<1x64xf32, #tpu.memory_space<vmem>>, vector<1x64xf32>
    %220 = vector.broadcast %219 : vector<1x64xf32> to vector<128x64xf32>
    %221 = arith.addf %218, %220 : vector<128x64xf32>
    %cst_107 = arith.constant 0.000000e+00 : f32
    %222 = vector.broadcast %cst_107 : f32 to vector<128x64xf32>
    %223 = arith.maximumf %221, %222 : vector<128x64xf32>
    %c0_108 = arith.constant 0 : index
    %c0_109 = arith.constant 0 : index
    %224 = vector.load %arg24[%c0_108, %c0_109] : memref<64x4xf32, #tpu.memory_space<vmem>>, vector<64x4xf32>
    %cst_110 = arith.constant dense<0.000000e+00> : vector<128x4xf32>
    %225 = tpu.matmul %223, %224, %cst_110 {dimension_numbers = #tpu.dot_dimension_numbers<[1], [0], [0], [1], [0, 0, 1, 1], [], []>} : vector<128x64xf32>, vector<64x4xf32>, vector<128x4xf32> -> vector<128x4xf32>
    %c0_111 = arith.constant 0 : index
    %c0_112 = arith.constant 0 : index
    %226 = vector.load %arg25[%c0_111, %c0_112] : memref<1x4xf32, #tpu.memory_space<vmem>>, vector<1x4xf32>
    %227 = vector.broadcast %226 : vector<1x4xf32> to vector<128x4xf32>
    %228 = arith.addf %225, %227 : vector<128x4xf32>
    %229 = arith.mulf %228, %228 : vector<128x4xf32>
    %230 = vector.shape_cast %229 : vector<128x4xf32> to vector<1x128x4xf32>
    %cst_113 = arith.constant dense<0.000000e+00> : vector<1xf32>
    %231 = vector.multi_reduction <add>, %230, %cst_113 [1, 2] : vector<1x128x4xf32> to vector<1xf32>
    %232 = vector.shape_cast %231 : vector<1xf32> to vector<1x1x1xf32>
    %233 = vector.extract %232[0, 0, 0] : f32 from vector<1x1x1xf32>
    %234 = vector.broadcast %233 : f32 to vector<1x1x1xf32>
    %c0_114 = arith.constant 0 : index
    %c0_115 = arith.constant 0 : index
    %c0_116 = arith.constant 0 : index
    %235 = vector.load %arg26[%c0_114, %c0_115, %c0_116] : memref<1x1x1xf32, #tpu.memory_space<vmem>>, vector<1x1x1xf32>
    tpu.vector_store %arg26[%c0_114, %c0_115, %c0_116], %234 {strides = array<i32>} : memref<1x1x1xf32, #tpu.memory_space<vmem>>, vector<1x1x1xf32>,
    return
  }
  func.func @transform_0(%arg0: i32) -> (i32, i32, i32, i32, i32) {
    %c0_i32 = arith.constant 0 : i32
    %c0_i32_0 = arith.constant 0 : i32
    %c0_i32_1 = arith.constant 0 : i32
    %c0_i32_2 = arith.constant 0 : i32
    %c0_i32_3 = arith.constant 0 : i32
    return %arg0, %c0_i32, %c0_i32_0, %c0_i32_1, %c0_i32_2 : i32, i32, i32, i32, i32
  }
  func.func @transform_1(%arg0: i32) -> (i32, i32, i32, i32) {
    %c0_i32 = arith.constant 0 : i32
    %c0_i32_0 = arith.constant 0 : i32
    %c0_i32_1 = arith.constant 0 : i32
    %c0_i32_2 = arith.constant 0 : i32
    return %arg0, %c0_i32, %c0_i32_0, %c0_i32_1 : i32, i32, i32, i32
  }
  func.func @transform_2(%arg0: i32) -> (i32, i32, i32, i32) {
    %c0_i32 = arith.constant 0 : i32
    %c0_i32_0 = arith.constant 0 : i32
    %c0_i32_1 = arith.constant 0 : i32
    %c0_i32_2 = arith.constant 0 : i32
    return %arg0, %c0_i32, %c0_i32_0, %c0_i32_1 : i32, i32, i32, i32
  }
  func.func @transform_3(%arg0: i32) -> (i32, i32, i32) {
    %c0_i32 = arith.constant 0 : i32
    %c0_i32_0 = arith.constant 0 : i32
    %c0_i32_1 = arith.constant 0 : i32
    return %arg0, %c0_i32, %c0_i32_0 : i32, i32, i32
  }
  func.func @transform_4(%arg0: i32) -> (i32, i32, i32) {
    %c0_i32 = arith.constant 0 : i32
    %c0_i32_0 = arith.constant 0 : i32
    %c0_i32_1 = arith.constant 0 : i32
    return %arg0, %c0_i32, %c0_i32_0 : i32, i32, i32
  }
  func.func @transform_5(%arg0: i32) -> (i32, i32, i32) {
    %c0_i32 = arith.constant 0 : i32
    %c0_i32_0 = arith.constant 0 : i32
    %c0_i32_1 = arith.constant 0 : i32
    return %arg0, %c0_i32, %c0_i32_0 : i32, i32, i32
  }
  func.func @transform_6(%arg0: i32) -> (i32, i32, i32) {
    %c0_i32 = arith.constant 0 : i32
    %c0_i32_0 = arith.constant 0 : i32
    %c0_i32_1 = arith.constant 0 : i32
    return %arg0, %c0_i32, %c0_i32_0 : i32, i32, i32
  }
  func.func @transform_7(%arg0: i32) -> (i32, i32, i32) {
    %c0_i32 = arith.constant 0 : i32
    %c0_i32_0 = arith.constant 0 : i32
    %c0_i32_1 = arith.constant 0 : i32
    %c0_i32_2 = arith.constant 0 : i32
    return %c0_i32, %c0_i32_0, %c0_i32_1 : i32, i32, i32
  }
  func.func @transform_8(%arg0: i32) -> (i32, i32) {
    %c0_i32 = arith.constant 0 : i32
    %c0_i32_0 = arith.constant 0 : i32
    %c0_i32_1 = arith.constant 0 : i32
    return %c0_i32, %c0_i32_0 : i32, i32
  }
  func.func @transform_9(%arg0: i32) -> (i32, i32) {
    %c0_i32 = arith.constant 0 : i32
    %c0_i32_0 = arith.constant 0 : i32
    %c0_i32_1 = arith.constant 0 : i32
    return %c0_i32, %c0_i32_0 : i32, i32
  }
  func.func @transform_10(%arg0: i32) -> (i32, i32) {
    %c0_i32 = arith.constant 0 : i32
    %c0_i32_0 = arith.constant 0 : i32
    %c0_i32_1 = arith.constant 0 : i32
    return %c0_i32, %c0_i32_0 : i32, i32
  }
  func.func @transform_11(%arg0: i32) -> (i32, i32) {
    %c0_i32 = arith.constant 0 : i32
    %c0_i32_0 = arith.constant 0 : i32
    %c0_i32_1 = arith.constant 0 : i32
    return %c0_i32, %c0_i32_0 : i32, i32
  }
  func.func @transform_12(%arg0: i32) -> (i32, i32) {
    %c0_i32 = arith.constant 0 : i32
    %c0_i32_0 = arith.constant 0 : i32
    %c0_i32_1 = arith.constant 0 : i32
    return %c0_i32, %c0_i32_0 : i32, i32
  }
  func.func @transform_13(%arg0: i32) -> (i32, i32) {
    %c0_i32 = arith.constant 0 : i32
    %c0_i32_0 = arith.constant 0 : i32
    %c0_i32_1 = arith.constant 0 : i32
    return %c0_i32, %c0_i32_0 : i32, i32
  }
  func.func @transform_14(%arg0: i32) -> (i32, i32) {
    %c0_i32 = arith.constant 0 : i32
    %c0_i32_0 = arith.constant 0 : i32
    %c0_i32_1 = arith.constant 0 : i32
    return %c0_i32, %c0_i32_0 : i32, i32
  }
  func.func @transform_15(%arg0: i32) -> (i32, i32) {
    %c0_i32 = arith.constant 0 : i32
    %c0_i32_0 = arith.constant 0 : i32
    %c0_i32_1 = arith.constant 0 : i32
    return %c0_i32, %c0_i32_0 : i32, i32
  }
  func.func @transform_16(%arg0: i32) -> (i32, i32) {
    %c0_i32 = arith.constant 0 : i32
    %c0_i32_0 = arith.constant 0 : i32
    %c0_i32_1 = arith.constant 0 : i32
    return %c0_i32, %c0_i32_0 : i32, i32
  }
  func.func @transform_17(%arg0: i32) -> (i32, i32) {
    %c0_i32 = arith.constant 0 : i32
    %c0_i32_0 = arith.constant 0 : i32
    %c0_i32_1 = arith.constant 0 : i32
    return %c0_i32, %c0_i32_0 : i32, i32
  }
  func.func @transform_18(%arg0: i32) -> (i32, i32) {
    %c0_i32 = arith.constant 0 : i32
    %c0_i32_0 = arith.constant 0 : i32
    %c0_i32_1 = arith.constant 0 : i32
    return %c0_i32, %c0_i32_0 : i32, i32
  }
  func.func @transform_19(%arg0: i32) -> (i32, i32) {
    %c0_i32 = arith.constant 0 : i32
    %c0_i32_0 = arith.constant 0 : i32
    %c0_i32_1 = arith.constant 0 : i32
    return %c0_i32, %c0_i32_0 : i32, i32
  }
  func.func @transform_20(%arg0: i32) -> (i32, i32) {
    %c0_i32 = arith.constant 0 : i32
    %c0_i32_0 = arith.constant 0 : i32
    %c0_i32_1 = arith.constant 0 : i32
    return %c0_i32, %c0_i32_0 : i32, i32
  }
  func.func @transform_21(%arg0: i32) -> (i32, i32) {
    %c0_i32 = arith.constant 0 : i32
    %c0_i32_0 = arith.constant 0 : i32
    %c0_i32_1 = arith.constant 0 : i32
    return %c0_i32, %c0_i32_0 : i32, i32
  }
  func.func @transform_22(%arg0: i32) -> (i32, i32) {
    %c0_i32 = arith.constant 0 : i32
    %c0_i32_0 = arith.constant 0 : i32
    %c0_i32_1 = arith.constant 0 : i32
    return %c0_i32, %c0_i32_0 : i32, i32
  }
  func.func @transform_23(%arg0: i32) -> (i32, i32) {
    %c0_i32 = arith.constant 0 : i32
    %c0_i32_0 = arith.constant 0 : i32
    %c0_i32_1 = arith.constant 0 : i32
    return %c0_i32, %c0_i32_0 : i32, i32
  }
  func.func @transform_24(%arg0: i32) -> (i32, i32) {
    %c0_i32 = arith.constant 0 : i32
    %c0_i32_0 = arith.constant 0 : i32
    %c0_i32_1 = arith.constant 0 : i32
    return %c0_i32, %c0_i32_0 : i32, i32
  }
  func.func @transform_25(%arg0: i32) -> (i32, i32, i32) {
    %c0_i32 = arith.constant 0 : i32
    %c0_i32_0 = arith.constant 0 : i32
    %c0_i32_1 = arith.constant 0 : i32
    return %arg0, %c0_i32, %c0_i32_0 : i32, i32, i32
  }
}

</mosaic_0001>

<bundles_post_ra>
// kernel: tpu_custom_call.1
= control target key start
LH: loop header
LB: loop body
LE: loop exit
PB: predicated region body
PF: predicated region fallthrough
CT: control target
= control target key end

     0   :  { %s5018_s29 = smov 0   ;;  %s7117_s0 = inlined_call_operand.vmem [shape: f32[2,2,1,16,16], index: 0, kind: input, shape index: {}]   ;;  %s7118_s1 = inlined_call_operand.vmem [shape: f32[2,2,128,2], index: 1, kind: input, shape index: {}]   ;;  %s7119_s2 = inlined_call_operand.vmem [shape: f32[2,2,128,10], index: 2, kind: input, shape index: {}]   ;;  %s7120_s3 = inlined_call_operand.vmem [shape: f32[2,128,3], index: 3, kind: input, shape index: {}]   ;;  %s7121_s4 = inlined_call_operand.vmem [shape: f32[2,128,3], index: 4, kind: input, shape index: {}]   ;;  %s7122_s5 = inlined_call_operand.vmem [shape: f32[2,128,4], index: 5, kind: input, shape index: {}]   ;;  %s7123_s6 = inlined_call_operand.vmem [shape: f32[2,1,1], index: 6, kind: input, shape index: {}]   ;;  %s7124_s7 = inlined_call_operand.vmem [shape: f32[1,16,128], index: 7, kind: input, shape index: {}]   ;;  %s7125_s8 = inlined_call_operand.vmem [shape: f32[1,128], index: 8, kind: input, shape index: {}]   ;;  %s7126_s9 = inlined_call_operand.vmem [shape: f32[10,32], index: 9, kind: input, shape index: {}]   ;;  %s7127_s10 = inlined_call_operand.vmem [shape: f32[128,32], index: 10, kind: input, shape index: {}]   ;;  %s7128_s11 = inlined_call_operand.vmem [shape: f32[1,32], index: 11, kind: input, shape index: {}]   ;;  %s7129_s12 = inlined_call_operand.vmem [shape: f32[32,64], index: 12, kind: input, shape index: {}]   ;;  %s7130_s13 = inlined_call_operand.vmem [shape: f32[3,64], index: 13, kind: input, shape index: {}]   ;;  %s7131_s14 = inlined_call_operand.vmem [shape: f32[3,64], index: 14, kind: input, shape index: {}]   ;;  %s7132_s15 = inlined_call_operand.vmem [shape: f32[1,64], index: 15, kind: input, shape index: {}]   ;;  %s7133_s16 = inlined_call_operand.vmem [shape: f32[64,29], index: 16, kind: input, shape index: {}]   ;;  %s7134_s17 = inlined_call_operand.vmem [shape: f32[1,29], index: 17, kind: input, shape index: {}]   ;;  %s7135_s18 = inlined_call_operand.vmem [shape: f32[4,64], index: 18, kind: input, shape index: {}]   ;;  %s7136_s19 = inlined_call_operand.vmem [shape: f32[3,64], index: 19, kind: input, shape index: {}]   ;;  %s7137_s20 = inlined_call_operand.vmem [shape: f32[29,64], index: 20, kind: input, shape index: {}]   ;;  %s7138_s21 = inlined_call_operand.vmem [shape: f32[1,64], index: 21, kind: input, shape index: {}]   ;;  %s7139_s22 = inlined_call_operand.vmem [shape: f32[1,64], index: 22, kind: input, shape index: {}]   ;;  %s7140_s23 = inlined_call_operand.vmem [shape: f32[64,4], index: 23, kind: input, shape index: {}]   ;;  %s7141_s24 = inlined_call_operand.vmem [shape: f32[1,4], index: 24, kind: input, shape index: {}]   ;;  %s7142_s25 = inlined_call_operand.vmem [shape: f32[2,1,1], index: 25, kind: output, shape index: {}]  }
   0x1   :  { %7267 = sst [smem:[#allocation73_spill]] %s7117_s0 }
   0x2   :  { %7268 = sst [smem:[#allocation74_spill]] %s7118_s1 }
   0x3   :  { %7269 = sst [smem:[#allocation75_spill]] %s7119_s2 }
   0x4   :  { %7270 = sst [smem:[#allocation76_spill]] %s7120_s3 }
   0x5   :  { %7271 = sst [smem:[#allocation77_spill]] %s7121_s4 }
   0x6   :  { %7272 = sst [smem:[#allocation78_spill]] %s7122_s5 }
   0x7   :  { %7273 = sst [smem:[#allocation79_spill]] %s7123_s6 }
   0x8   :  { %7274 = sst [smem:[#allocation80_spill]] %s7124_s7 }
   0x9   :  { %7275 = sst [smem:[#allocation81_spill]] %s7125_s8 }
   0xa   :  { %7276 = sst [smem:[#allocation82_spill]] %s7126_s9 }
   0xb LB: > { %s4553_s2 = sadd.s32 4294967295, %s4884_s29   ;;  %p4557_p0 = scmp.ge.s32.totalorder %s4884_s29, 1  ;;  %s4884_s29 = sphi %s5018_s29, %s35_s29  }
   0xc   : > { %p745_p1 = scmp.lt.s32.totalorder %s4884_s29, 3 }
   0xe   : > { %p746_p2 = pnand %p4557_p0, %p745_p1 }
  0x10   : > { %749 = sbr.rel (%p746_p2) target bundleno = 1705 (0x6a9), region = 120 }
  0x15   : > { %p839_p3 = scmp.lt.s32.totalorder %s4553_s2, 1  ;;  %v7160_v0 = vmov 0   ;;  %s7277_s3 = sld [smem:[#allocation74_spill]]  ;;  %vm982_vm0 = vcmask 130048   ;;  %vm2025_vm1 = vcmask 1041408   ;;  %vm1976_vm2 = vcmask 80896  }
  0x16   : > { %4863 = vset.pattern.permute.xlu2 %v7160_v0  ;;  %4862 = vset.pattern.permute.xlu1 %v7160_v0  ;;  %s7293_s27 = sld [smem:[#allocation80_spill]] }
  0x17   : > { %4861 = vset.pattern.permute.xlu0 %v7160_v0  ;;  %s7495_s2 = smov (!%p839_p3, %s4553_s2), 1  ;;  %s7296_s5 = sld [smem:[#allocation73_spill]] }
  0x18   : > { %s4776_s6 = sshll.u32 %s7495_s2, 8  ;;  %s4775_s4 = sshll.u32 %s7495_s2, 5 }
  0x19   : > { %s7313_s8 = sld [smem:[#allocation82_spill]] }
  0x1a   : > { %s7315_s9 = sld [smem:[#allocation75_spill]] }
  0x1b   : > { %s5037_s26 = scalar_lea.vmem %s7277_s3, %s4776_s6  ;;  %s7332_s3 = sld [smem:[#allocation81_spill]] }
  0x1c   : > { %v919_v1 = vld [vmem:[%s5037_s26 + $0x20] sm:$0xff]  ;;  %v917_v2 = vld [vmem:[%s5037_s26 + $0x10] sm:$0xff]  ;;  %v920_v7 = vld [vmem:[%s5037_s26 + $0x28] sm:$0xff] }
  0x1d   : > { %v915_v3 = vld [vmem:[%s5037_s26] sm:$0xff]  ;;  %v1018_v4 = vadd.f32 1.0, %v919_v1  ;;  %v1016_v5 = vadd.f32 1.0, %v917_v2  ;;  %v918_v8 = vld [vmem:[%s5037_s26 + $0x18] sm:$0xff]  ;;  %v916_v9 = vld [vmem:[%s5037_s26 + $0x8] sm:$0xff]  ;;  %v1019_v10 = vadd.f32 1.0, %v920_v7  ;;  %s5248_s0 = scalar_lea.vmem %s7296_s5, %s4775_s4 }
  0x1e   : > { %v1014_v6 = vadd.f32 1.0, %v915_v3  ;;  %v1017_v11 = vadd.f32 1.0, %v918_v8  ;;  %v1015_v12 = vadd.f32 1.0, %v916_v9  ;;  %v923_v16 = vld [vmem:[%s5037_s26 + $0x40] sm:$0xff]  ;;  %v922_v17 = vld [vmem:[%s5037_s26 + $0x38] sm:$0xff]  ;;  %v921_v34 = vld [vmem:[%s5037_s26 + $0x30] sm:$0xff] }
  0x1f   : > { %v1034_v13 = vmul.f32 0.5, %v1018_v4  ;;  %v1032_v14 = vmul.f32 0.5, %v1016_v5  ;;  %v1035_v18 = vmul.f32 0.5, %v1019_v10  ;;  %v1022_v25 = vadd.f32 1.0, %v923_v16  ;;  %v926_v42 = vld [vmem:[%s5037_s26 + $0x58] sm:$0xff]  ;;  %v925_v43 = vld [vmem:[%s5037_s26 + $0x50] sm:$0xff] }
  0x20   : > { %v1030_v15 = vmul.f32 0.5, %v1014_v6  ;;  %v1033_v19 = vmul.f32 0.5, %v1017_v11  ;;  %v1031_v20 = vmul.f32 0.5, %v1015_v12  ;;  %v1021_v26 = vadd.f32 1.0, %v922_v17  ;;  %v924_v44 = vld [vmem:[%s5037_s26 + $0x48] sm:$0xff]  ;;  %v929_v59 = vld [vmem:[%s5037_s26 + $0x70] sm:$0xff]  ;;  %s5356_s5 = scalar_lea.vmem %s7315_s9, %s4776_s6 }
  0x21   : > { %v5047_v21 = vmul.f32 15.0, %v1034_v13  ;;  %v5049_v22 = vmul.f32 15.0, %v1032_v14  ;;  %v5053_v24 = vmul.f32 15.0, %v1035_v18  ;;  %v1038_v37 = vmul.f32 0.5, %v1022_v25  ;;  %v928_v60 = vld [vmem:[%s5037_s26 + $0x68] sm:$0xff]  ;;  %v927_v63 = vld [vmem:[%s5037_s26 + $0x60] sm:$0xff] }
  0x22   : > { %v5051_v23 = vmul.f32 15.0, %v1030_v15  ;;  %v5058_v30 = vmul.f32 15.0, %v1033_v19  ;;  %v5060_v31 = vmul.f32 15.0, %v1031_v20  ;;  %v1037_v38 = vmul.f32 0.5, %v1021_v26  ;;  %v930_v16 = vld [vmem:[%s5037_s26 + $0x78] sm:$0xff]  ;;  %s6643_s6 = sshll.u32 %s7495_s2, 7 }
  0x23   : > { %v1066_v27 = vfloor.f32 %v5047_v21  ;;  %v1064_v28 = vfloor.f32 %v5049_v22  ;;  %v1067_v36 = vfloor.f32 %v5053_v24  ;;  %v1020_v41 = vadd.f32 1.0, %v921_v34  ;;  %s7491_s9 = sld [smem:[#allocation77_spill]] }
  0x24   : > { %v1062_v29 = vfloor.f32 %v5051_v23  ;;  %v1065_v39 = vfloor.f32 %v5058_v30  ;;  %v1063_v40 = vfloor.f32 %v5060_v31  ;;  %v5088_v46 = vmul.f32 15.0, %v1038_v37  ;;  %s7493_s4 = sld [smem:[#allocation79_spill]] }
  0x25   : > { %v5064_v32 = vcvt.f32.s32 %v1066_v27  ;;  %v5068_v33 = vcvt.f32.s32 %v1064_v28  ;;  %v5086_v45 = vcvt.f32.s32 %v1067_v36  ;;  %v5090_v47 = vmul.f32 15.0, %v1037_v38 }
  0x26   : > { %v5073_v35 = vcvt.f32.s32 %v1062_v29  ;;  %v5094_v48 = vcvt.f32.s32 %v1065_v39  ;;  %v1036_v49 = vmul.f32 0.5, %v1020_v41  ;;  %v1025_v50 = vadd.f32 1.0, %v926_v42 }
  0x27   : > { %7278 = vst [vmem:[#allocation2_spill] sm:$0xff] %v5068_v33  ;;  %1139 = vperm.xlu2 %4863, %v5064_v32   ;;  %1133 = vperm.xlu1 %4862, %v5068_v33   ;;  %v1024_v51 = vadd.f32 1.0, %v925_v43  ;;  %v5098_v52 = vcvt.f32.s32 %v1063_v40  ;;  %v1023_v53 = vadd.f32 1.0, %v924_v44  ;;  %v1070_v55 = vfloor.f32 %v5088_v46 }
  0x28   : > { %1127 = vperm.xlu0 %4861, %v5073_v35   ;;  %v5100_v54 = vmul.f32 15.0, %v1036_v49  ;;  %v1069_v56 = vfloor.f32 %v5090_v47  ;;  %v1041_v57 = vmul.f32 0.5, %v1025_v50  ;;  %v1028_v1 = vadd.f32 1.0, %v929_v59 }
  0x29   : > { %v1040_v58 = vmul.f32 0.5, %v1024_v51  ;;  %v1039_v62 = vmul.f32 0.5, %v1023_v53  ;;  %v1027_v2 = vadd.f32 1.0, %v928_v60  ;;  %v5113_v3 = vcvt.f32.s32 %v1070_v55  ;;  %s6665_s30 = scalar_lea.vmem %s7491_s9, %s6643_s6 }
  0x2a   : > { %v1068_v61 = vfloor.f32 %v5100_v54  ;;  %v5117_v4 = vcvt.f32.s32 %v1069_v56  ;;  %v5119_v5 = vmul.f32 15.0, %v1041_v57  ;;  %v1026_v9 = vadd.f32 1.0, %v927_v63  ;;  %s871_s28 = scalar_lea.vmem %s7493_s4, %s7495_s2 }
  0x2b   : > { %v1056_v6 = vmul.f32 15.0, %v1040_v58  ;;  %v1055_v8 = vmul.f32 15.0, %v1039_v62  ;;  %v1044_v12 = vmul.f32 0.5, %v1028_v1  ;;  %v1043_v13 = vmul.f32 0.5, %v1027_v2 }
  0x2c   : > { %7279 = vst [vmem:[#allocation3_spill] sm:$0xff] %v5117_v4  ;;  %v5121_v7 = vcvt.f32.s32 %v1068_v61  ;;  %v1073_v10 = vfloor.f32 %v5119_v5  ;;  %v1042_v15 = vmul.f32 0.5, %v1026_v9  ;;  %v1029_v34 = vadd.f32 1.0, %v930_v16 }
  0x2d   : > { %v1072_v11 = vfloor.f32 %v1056_v6  ;;  %v1071_v14 = vfloor.f32 %v1055_v8  ;;  %v5134_v19 = vmul.f32 15.0, %v1044_v12  ;;  %v1059_v20 = vmul.f32 15.0, %v1043_v13  ;;  %v912_v13 = vld [vmem:[%s5248_s0 + $0x8] sm:$0xff] }
  0x2e   : > { %v5130_v17 = vcvt.f32.s32 %v1073_v10  ;;  %v1058_v26 = vmul.f32 15.0, %v1042_v15  ;;  %v1045_v42 = vmul.f32 0.5, %v1029_v34  ;;  %v5153_v51 = vsub.f32 %v5051_v23, %v1062_v29 }
  0x2f   : > { %1142 = vperm.xlu2 %4863, %v5086_v45   ;;  %1136 = vperm.xlu1 %4862, %v5094_v48   ;;  %v5132_v18 = vcvt.f32.s32 %v1072_v11  ;;  %v5136_v25 = vcvt.f32.s32 %v1071_v14  ;;  %v1076_v37 = vfloor.f32 %v5134_v19  ;;  %v1075_v38 = vfloor.f32 %v1059_v20 }
  0x30   : > { %1130 = vperm.xlu0 %4861, %v5098_v52   ;;  %v1074_v41 = vfloor.f32 %v1058_v26  ;;  %v1061_v50 = vmul.f32 15.0, %v1045_v42  ;;  %7282 = vst [vmem:[#allocation6_spill] sm:$0xff] %v5153_v51  ;;  %v5158_v53 = vsub.f32 %v5060_v31, %v1063_v40  ;;  %v7159_v59 = vsub.f32 1.0, %v5153_v51 }
  0x31   : > { %7280 = vst [vmem:[#allocation4_spill] sm:$0xff] %v5132_v18  ;;  %v5144_v43 = vcvt.f32.s32 %v1076_v37  ;;  %v5146_v44 = vcvt.f32.s32 %v1075_v38  ;;  %v5170_v23 = vsub.f32 %v5047_v21, %v1066_v27  ;;  %v5175_v29 = vsub.f32 %v5058_v30, %v1065_v39 }
  0x32   : > { %v5148_v49 = vcvt.f32.s32 %v1074_v41  ;;  %7283 = vst [vmem:[#allocation7_spill] sm:$0xff] %v5158_v53  ;;  %v1077_v57 = vfloor.f32 %v1061_v50  ;;  %v7162_v58 = vsub.f32 1.0, %v5158_v53  ;;  %v5184_v31 = vsub.f32 %v5049_v22, %v1064_v28 }
  0x33   : > { %7281 = vst [vmem:[#allocation5_spill] sm:$0xff] %v5146_v44  ;;  %v7155_v21 = vsub.f32 1.0, %v5170_v23  ;;  %v7158_v27 = vsub.f32 1.0, %v5175_v29  ;;  %v5193_v39 = vsub.f32 %v5090_v47, %v1069_v56  ;;  %v5196_v40 = vsub.f32 %v5100_v54, %v1068_v61 }
  0x34   : > { %v5165_v60 = vcvt.f32.s32 %v1077_v57  ;;  %7284 = vst [vmem:[#allocation8_spill] sm:$0xff] %v5170_v23  ;;  %v7157_v30 = vsub.f32 1.0, %v5184_v31  ;;  %v5205_v22 = vsub.f32 %v5053_v24, %v1067_v36  ;;  %v5212_v56 = vsub.f32 %v1056_v6, %v1072_v11  ;;  %v5230_v36 = vld [vmem:[%s7293_s27 + $0x8] sm:$0xff]  ;;  %v5260_v6 = vld [vmem:[%s7293_s27] sm:$0xff] }
  0x35   : > { %7285 = vst [vmem:[#allocation9_spill] sm:$0xff] %v5175_v29  ;;  %v7152_v28 = vsub.f32 1.0, %v5193_v39  ;;  %v7156_v47 = vsub.f32 1.0, %v5196_v40  ;;  %v5214_v61 = vsub.f32 %v1055_v8, %v1071_v14  ;;  %v5223_v24 = vsub.f32 %v5088_v46, %v1070_v55  ;;  %1003 = vmatpush.msra.mxu2 %v5230_v36  ;;  %v911_v8 = vld [vmem:[%s5248_s0] sm:$0xff] }
  0x36   : > { %7286 = vst [vmem:[#allocation10_spill] sm:$0xff] %v5184_v31  ;;  %v7154_v54 = vsub.f32 1.0, %v5205_v22  ;;  %v7149_v62 = vsub.f32 1.0, %v5212_v56  ;;  %v5237_v2 = vsub.f32 %v1059_v20, %v1075_v38  ;;  %v5239_v46 = vsub.f32 %v1058_v26, %v1074_v41 }
  0x37   : > { %1151 = vperm.xlu2 %4863, %v5113_v3   ;;  %1148 = vperm.xlu1 %4862, %v5117_v4   ;;  %7287 = vst [vmem:[#allocation11_spill] sm:$0xff] %v5193_v39  ;;  %v7153_v63 = vsub.f32 1.0, %v5214_v61  ;;  %v7151_v1 = vsub.f32 1.0, %v5223_v24  ;;  %v5253_v55 = vsub.f32 %v5119_v5, %v1073_v10  ;;  %v5268_v10 = vsub.f32 %v1061_v50, %v1077_v57 }
  0x38   : > { %1145 = vperm.xlu0 %4861, %v5121_v7   ;;  %7288 = vst [vmem:[#allocation12_spill] sm:$0xff] %v5196_v40  ;;  %1004 = vmatpush.msra.mxu2 %v5260_v6  ;;  %v7146_v9 = vsub.f32 1.0, %v5237_v2  ;;  %v7150_v11 = vsub.f32 1.0, %v5239_v46  ;;  %v5277_v12 = vsub.f32 %v5134_v19, %v1076_v37  ;;  %v5284_v15 = vadd.s32 1, %v5073_v35 }
  0x39   : > { %7289 = vst [vmem:[#allocation13_spill] sm:$0xff] %v5205_v22  ;;  %4570 = vmatmul.msk.f32.vlgmr.msra.gmra.mxu2 %vm982_vm0, %v911_v8  ;;  %v7148_v5 = vsub.f32 1.0, %v5253_v55  ;;  %v7147_v14 = vsub.f32 1.0, %v5268_v10  ;;  %v5294_v19 = vadd.s32 1, %v5068_v33  ;;  %v5297_v20 = vadd.s32 1, %v5094_v48 }
  0x3a   : > { %7290 = vst [vmem:[#allocation14_spill] sm:$0xff] %v5212_v56  ;;  %v7145_v16 = vsub.f32 1.0, %v5277_v12  ;;  %v5300_v26 = vadd.s32 1, %v5098_v52  ;;  %v5308_v37 = vadd.s32 1, %v5086_v45  ;;  %v5311_v38 = vadd.s32 1, %v5121_v7 }
  0x3b   : > { %7291 = vst [vmem:[#allocation15_spill] sm:$0xff] %v5214_v61  ;;  %v5314_v41 = vadd.s32 1, %v5064_v32  ;;  %v5322_v50 = vadd.s32 1, %v5113_v3  ;;  %v5325_v57 = vadd.s32 1, %v5136_v25  ;;  %v5328_v8 = vadd.s32 1, %v5117_v4 }
  0x3c   : > { %7292 = vst [vmem:[#allocation16_spill] sm:$0xff] %v5223_v24 }
  0x3d   : > { %7294 = vst [vmem:[#allocation17_spill] sm:$0xff] %v5237_v2 }
  0x3e   : > { %7295 = vst [vmem:[#allocation18_spill] sm:$0xff] %v5239_v46 }
  0x3f   : > { %1160 = vperm.xlu2 %4863, %v5130_v17   ;;  %1157 = vperm.xlu1 %4862, %v5132_v18   ;;  %7297 = vst [vmem:[#allocation19_spill] sm:$0xff] %v5253_v55 }
  0x40   : > { %1154 = vperm.xlu0 %4861, %v5136_v25   ;;  %7298 = vst [vmem:[#allocation20_spill] sm:$0xff] %v5268_v10 }
  0x41   : > { %7299 = vst [vmem:[#allocation21_spill] sm:$0xff] %v5277_v12  ;;  %4571 = vmatmul.msk.f32.gmra.mxu2 %vm982_vm0, %v912_v13 }
  0x42   : > { %7300 = vst [vmem:[#allocation22_spill] sm:$0xff] %v5284_v15 }
  0x43   : > { %7301 = vst [vmem:[#allocation23_spill] sm:$0xff] %v5294_v19 }
  0x44   : > { %7302 = vst [vmem:[#allocation24_spill] sm:$0xff] %v5297_v20 }
  0x45   : > { %7303 = vst [vmem:[#allocation25_spill] sm:$0xff] %v5300_v26 }
  0x46   : > { %7304 = vst [vmem:[#allocation26_spill] sm:$0xff] %v5308_v37 }
  0x47   : > { %1169 = vperm.xlu2 %4863, %v5144_v43   ;;  %1166 = vperm.xlu1 %4862, %v5146_v44   ;;  %7305 = vst [vmem:[#allocation27_spill] sm:$0xff] %v5311_v38 }
  0x48   : > { %1163 = vperm.xlu0 %4861, %v5148_v49   ;;  %7306 = vst [vmem:[#allocation28_spill] sm:$0xff] %v5314_v41 }
  0x49   : > { %7307 = vst [vmem:[#allocation29_spill] sm:$0xff] %v5322_v50 }
  0x4a   : > { %7308 = vst [vmem:[#allocation30_spill] sm:$0xff] %v5325_v57 }
  0x4b   : > { %7309 = vst [vmem:[#allocation31_spill] sm:$0xff] %v5328_v8 }
  0x4f   : > { %1197 = vperm.xlu2 %4863, %v7162_v58   ;;  %1192 = vperm.xlu1 %4862, %v7159_v59   ;;  %v949_v59 = vld [vmem:[%s5356_s5 + $0x10] sm:$0xff] }
  0x50   : > { %1172 = vperm.xlu0 %4861, %v5165_v60  }
  0x57   : > { %1212 = vperm.xlu2 %4863, %v7155_v21   ;;  %1207 = vperm.xlu1 %4862, %v7158_v27   ;;  %v5375_v21 = vadd.s32 1, %v5165_v60 }
  0x58   : > { %1202 = vperm.xlu0 %4861, %v7157_v30  }
  0x59   : > { %7317 = vst [vmem:[#allocation37_spill] sm:$0xff] %v5375_v21 }
  0x5f   : > { %1227 = vperm.xlu2 %4863, %v7152_v28   ;;  %1222 = vperm.xlu1 %4862, %v7156_v47   ;;  %v5379_v47 = vadd.s32 1, %v5146_v44 }
  0x60   : > { %1217 = vperm.xlu0 %4861, %v7154_v54   ;;  %v5372_v54 = vadd.s32 1, %v5144_v43 }
  0x61   : > { %7318 = vst [vmem:[#allocation38_spill] sm:$0xff] %v5379_v47 }
  0x62   : > { %7316 = vst [vmem:[#allocation36_spill] sm:$0xff] %v5372_v54 }
  0x67   : > { %1242 = vperm.xlu2 %4863, %v7149_v62   ;;  %1237 = vperm.xlu1 %4862, %v7153_v63   ;;  %v892_v62 = vld [vmem:[%s7313_s8] sm:$0xff] }
  0x68   : > { %1232 = vperm.xlu0 %4861, %v7151_v1   ;;  %v947_v63 = vld [vmem:[%s5356_s5] sm:$0xff] }
  0x6f   : > { %1257 = vperm.xlu2 %4863, %v7146_v9   ;;  %1252 = vperm.xlu1 %4862, %v7150_v11   ;;  %v5339_v9 = vadd.s32 1, %v5148_v49 }
  0x70   : > { %1247 = vperm.xlu0 %4861, %v7148_v5   ;;  %v5345_v5 = vadd.s32 1, %v5132_v18 }
  0x71   : > { %7312 = vst [vmem:[#allocation34_spill] sm:$0xff] %v5339_v9 }
  0x72   : > { %7314 = vst [vmem:[#allocation35_spill] sm:$0xff] %v5345_v5 }
  0x77   : > { %1267 = vperm.xlu1 %4862, %v7147_v14   ;;  %1303 = vperm.xlu2 %4863, %v5284_v15   ;;  %v893_v14 = vld [vmem:[%s7313_s8 + $0x8] sm:$0x3] }
  0x78   : > { %1262 = vperm.xlu0 %4861, %v7145_v16   ;;  %v5336_v16 = vadd.s32 1, %v5130_v17  ;;  %4588 = vmatpush.msk.msra.mxu0 %vm2025_vm1, %v893_v14 }
  0x79   : > { %4783 = vmatpush.msk.msra.mxu3 %vm2025_vm1, %v893_v14 }
  0x7a   : > { %7311 = vst [vmem:[#allocation33_spill] sm:$0xff] %v5336_v16  ;;  %2044 = vmatpush.msra.mxu0 %v892_v62 }
  0x7b   : > { %4784 = vmatpush.msra.mxu3 %v892_v62  ;;  %4589 = vmatmul.msk.f32.vlgmr.msra.gmra.mxu0 %vm1976_vm2, %v947_v63  ;;  %v948_v63 = vld [vmem:[%s5356_s5 + $0x8] sm:$0xff] }
  0x7c   : > { %2149 = vmatpush.msrb.mxu0 %v5230_v36 }
  0x7d   : > { %4623 = vmatpush.msk.msrb.mxu3 %vm2025_vm1, %v893_v14 }
  0x7e   : > { %2150 = vmatpush.msrb.mxu0 %v5260_v6 }
  0x7f   : > { %1309 = vperm.xlu1 %4862, %v5294_v19   ;;  %1312 = vperm.xlu2 %4863, %v5297_v20  }
  0x80   : > { %1306 = vperm.xlu0 %4861, %v5300_v26   ;;  %3185 = vmatpush.msrb.mxu3 %v892_v62  ;;  %v936_v26 = vld [vmem:[%s5037_s26 + $0xa8] sm:$0xff] }
  0x81   : > { %v5305_v34 = vpop.permute.xlu2 %1139 }
  0x83   : > { %4590 = vmatmul.msk.f32.gmra.mxu0 %vm1976_vm2, %v948_v63 }
  0x87   : > { %1318 = vperm.xlu1 %4862, %v5308_v37   ;;  %1321 = vperm.xlu2 %4863, %v5311_v38   ;;  %v953_v37 = vld [vmem:[%s5356_s5 + $0x30] sm:$0xff] }
  0x88   : > { %1315 = vperm.xlu0 %4861, %v5314_v41   ;;  %v935_v41 = vld [vmem:[%s5037_s26 + $0xa0] sm:$0xff] }
  0x89   : > { %v5319_v42 = vpop.permute.xlu2 %1142 }
  0x8b   : > { %4591 = vmatmul.msk.f32.gmra.mxu0 %vm1976_vm2, %v949_v59 }
  0x8f   : > { %1327 = vperm.xlu1 %4862, %v5322_v50   ;;  %1330 = vperm.xlu2 %4863, %v5325_v57  }
  0x90   : > { %1324 = vperm.xlu0 %4861, %v5328_v8  }
  0x91   : > { %v5333_v13 = vpop.permute.xlu2 %1151 }
  0x92   : > { %7310 = vst [vmem:[#allocation32_spill] sm:$0xff] %v5333_v13 }
  0x97   : > { %1336 = vperm.xlu1 %4862, %v5336_v16   ;;  %1339 = vperm.xlu2 %4863, %v5339_v9   ;;  %v951_v16 = vld [vmem:[%s5356_s5 + $0x20] sm:$0xff] }
  0x98   : > { %1333 = vperm.xlu0 %4861, %v5345_v5  }
  0x99   : > { %v5362_v11 = vpop.permute.xlu2 %1160  ;;  %v5364_v1 = vpop.permute.xlu1 %1133 }
  0x9a   : > { %v5366_v28 = vpop.permute.xlu0 %1127 }
  0x9f   : > { %1345 = vperm.xlu1 %4862, %v5372_v54   ;;  %1348 = vperm.xlu2 %4863, %v5375_v21   ;;  %v950_v21 = vld [vmem:[%s5356_s5 + $0x18] sm:$0xff] }
  0xa0   : > { %1342 = vperm.xlu0 %4861, %v5379_v47   ;;  %4592 = vmatmul.msk.f32.gmra.mxu0 %vm1976_vm2, %v950_v21  ;;  %v931_v47 = vld [vmem:[%s5037_s26 + $0x80] sm:$0xff] }
  0xa1   : > { %v5385_v36 = vpop.permute.xlu2 %1169  ;;  %v5387_v14 = vpop.permute.xlu1 %1136  ;;  %v2160_v21 = vadd.f32 1.0, %v931_v47 }
  0xa2   : > { %7319 = vst [vmem:[#allocation39_spill] sm:$0xff] %v5385_v36  ;;  %v5389_v30 = vpop.permute.xlu0 %1130  ;;  %v939_v36 = vld [vmem:[%s5037_s26 + $0xc0] sm:$0xff] }
  0xa3   : > { %v2168_v13 = vadd.f32 1.0, %v939_v36 }
  0xa7   : > { %1373 = vperm.xlu1 %4862, %v5158_v53   ;;  %1378 = vperm.xlu2 %4863, %v5184_v31  }
  0xa8   : > { %1368 = vperm.xlu0 %4861, %v5153_v51   ;;  %4593 = vmatmul.msk.f32.gmra.mxu0 %vm1976_vm2, %v951_v16  ;;  %v2176_v16 = vmul.f32 0.5, %v2160_v21 }
  0xa9   : > { %v5396_v62 = vpop.permute.xlu1 %1148  ;;  %v5398_v6 = vpop.permute.xlu2 %1197 }
  0xaa   : > { %v5400_v27 = vpop.permute.xlu0 %1145  ;;  %v5442_v47 = vmul.f32 15.0, %v2176_v16 }
  0xaf   : > { %1388 = vperm.xlu1 %4862, %v5170_v23   ;;  %1393 = vperm.xlu2 %4863, %v5205_v22   ;;  %v934_v23 = vld [vmem:[%s5037_s26 + $0x98] sm:$0xff] }
  0xb0   : > { %1383 = vperm.xlu0 %4861, %v5175_v29   ;;  %v2163_v22 = vadd.f32 1.0, %v934_v23 }
  0xb1   : > { %v5407_v63 = vpop.permute.xlu1 %1157  ;;  %v5409_v0 = vpop.permute.xlu2 %1212 }
  0xb2   : > { %v5411_v58 = vpop.permute.xlu0 %1154 }
  0xb7   : > { %1403 = vperm.xlu1 %4862, %v5193_v39   ;;  %1408 = vperm.xlu2 %4863, %v5223_v24   ;;  %v952_v39 = vld [vmem:[%s5356_s5 + $0x28] sm:$0xff] }
  0xb8   : > { %1398 = vperm.xlu0 %4861, %v5196_v40   ;;  %4594 = vmatmul.msk.f32.gmra.mxu0 %vm1976_vm2, %v952_v39  ;;  %v932_v24 = vld [vmem:[%s5037_s26 + $0x88] sm:$0xff]  ;;  %v7193_v39 = vfloor.f32 %v5442_v47 }
  0xb9   : > { %v5418_v59 = vpop.permute.xlu1 %1166  ;;  %v5420_v54 = vpop.permute.xlu2 %1227 }
  0xba   : > { %7320 = vst [vmem:[#allocation40_spill] sm:$0xff] %v5418_v59  ;;  %v5422_v9 = vpop.permute.xlu0 %1163 }
  0xbb   : > { %7321 = vst [vmem:[#allocation41_spill] sm:$0xff] %v5420_v54 }
  0xbf   : > { %1418 = vperm.xlu1 %4862, %v5212_v56   ;;  %1423 = vperm.xlu2 %4863, %v5253_v55   ;;  %v2161_v56 = vadd.f32 1.0, %v932_v24  ;;  %v5460_v24 = vcvt.f32.s32 %v7193_v39 }
  0xc0   : > { %1413 = vperm.xlu0 %4861, %v5214_v61   ;;  %4595 = vmatmul.msk.f32.gmra.mxu0 %vm1976_vm2, %v953_v37 }
  0xc1   : > { %v5430_v57 = vpop.permute.xlu2 %1242  ;;  %v5432_v50 = vpop.permute.xlu1 %1192  ;;  %v2177_v21 = vmul.f32 0.5, %v2161_v56  ;;  %7324 = vst [vmem:[#allocation44_spill] sm:$0xff] %v5460_v24 }
  0xc2   : > { %v5434_v5 = vpop.permute.xlu0 %1172 }
  0xc3   : > { %7322 = vst [vmem:[#allocation42_spill] sm:$0xff] %v5434_v5  ;;  %v5462_v16 = vmul.f32 15.0, %v2177_v21 }
  0xc5   : > { %v7199_v21 = vfloor.f32 %v5462_v16 }
  0xc7   : > { %1433 = vperm.xlu1 %4862, %v5237_v2   ;;  %1438 = vperm.xlu2 %4863, %v5277_v12   ;;  %v933_v2 = vld [vmem:[%s5037_s26 + $0x90] sm:$0xff]  ;;  %v7189_v12 = vmov 1  }
  0xc8   : > { %1428 = vperm.xlu0 %4861, %v5239_v46   ;;  %v2162_v37 = vadd.f32 1.0, %v933_v2 }
  0xc9   : > { %v5444_v55 = vpop.permute.xlu2 %1257  ;;  %v5446_v61 = vpop.permute.xlu1 %1207 }
  0xca   : > { %7323 = vst [vmem:[#allocation43_spill] sm:$0xff] %v5444_v55  ;;  %v5448_v38 = vpop.permute.xlu0 %1202  ;;  %v2178_v39 = vmul.f32 0.5, %v2162_v37  ;;  %v914_v37 = vld [vmem:[%s5248_s0 + $0x18] sm:$0xff]  ;;  %v2184_v55 = vmul.f32 0.5, %v2168_v13 }
  0xcc   : > { %v5484_v2 = vmul.f32 15.0, %v2178_v39  ;;  %v2179_v39 = vmul.f32 0.5, %v2163_v22  ;;  %v2164_v22 = vadd.f32 1.0, %v935_v41  ;;  %v2165_v41 = vadd.f32 1.0, %v936_v26 }
  0xce   : > { %v2180_v31 = vmul.f32 0.5, %v2164_v22  ;;  %v5542_v22 = vld [vmem:[%s7332_s3] ss:$0 sm:$0xff] }
  0xcf   : > { %4864 = vset.pattern.permute.xlu1 %v7189_v12  ;;  %4865 = vset.pattern.permute.xlu2 %v7189_v12  ;;  %7333 = vst [vmem:[#allocation52_spill] sm:$0xff] %v5542_v22 }
  0xd0   : > { %1443 = vperm.xlu0 %4861, %v5268_v10   ;;  %1479 = vperm.xlu1 %4864, %v5073_v35   ;;  %v913_v10 = vld [vmem:[%s5248_s0 + $0x10] sm:$0xff]  ;;  %v5474_v35 = vadd.s32 1, %v5460_v24 }
  0xd1   : > { %1482 = vperm.xlu2 %4865, %v5098_v52   ;;  %v5465_v56 = vpop.permute.xlu1 %1222  ;;  %v5467_v46 = vpop.permute.xlu2 %1303  ;;  %4605 = vmatmul.msk.f32.vlgmr.msrb.gmra.mxu0 %vm982_vm0, %v913_v10  ;;  %v5482_v52 = vsub.f32 %v5462_v16, %v7199_v21  ;;  %v7206_v21 = vfloor.f32 %v5484_v2 }
  0xd2   : > { %v5469_v12 = vpop.permute.xlu0 %1217  ;;  %7325 = vst [vmem:[#allocation45_spill] sm:$0xff] %v5474_v35 }
  0xd3   : > { %7326 = vst [vmem:[#allocation46_spill] sm:$0xff] %v5482_v52 }
  0xd8   : > { %2449 = vperm.xlu0 %4861, %v5474_v35   ;;  %1488 = vperm.xlu1 %4864, %v5094_v48   ;;  %v7204_v48 = vsub.f32 1.0, %v5482_v52 }
  0xd9   : > { %1491 = vperm.xlu2 %4865, %v5064_v32   ;;  %v5487_v10 = vpop.permute.xlu1 %1237  ;;  %v5489_v8 = vpop.permute.xlu2 %1312  ;;  %4606 = vmatmul.msk.f32.gmra.mxu0 %vm982_vm0, %v914_v37  ;;  %v5503_v32 = vcvt.f32.s32 %v7206_v21 }
  0xda   : > { %v5492_v40 = vpop.permute.xlu0 %1232 }
  0xdb   : > { %7327 = vst [vmem:[#allocation47_spill] sm:$0xff] %v5492_v40  ;;  %v5513_v23 = vadd.s32 1, %v5503_v32 }
  0xdd   : > { %7328 = vst [vmem:[#allocation48_spill] sm:$0xff] %v5513_v23 }
  0xe0   : > { %2343 = vperm.xlu0 %4861, %v7204_v48   ;;  %1494 = vperm.xlu1 %4864, %v5086_v45   ;;  %v2195_v48 = vmul.f32 15.0, %v2179_v39  ;;  %v1006_v39 = vpop.f32.mrf.mxu2 }
  0xe1   : > { %1497 = vperm.xlu2 %4865, %v5121_v7   ;;  %v5506_v20 = vpop.permute.xlu1 %1252  ;;  %v5508_v37 = vpop.permute.xlu2 %1321 }
  0xe2   : > { %v5510_v19 = vpop.permute.xlu0 %1247  ;;  %v2211_v45 = vfloor.f32 %v2195_v48 }
  0xe4   : > { %v5525_v35 = vcvt.f32.s32 %v2211_v45  ;;  %v5544_v51 = vsub.f32 %v2195_v48, %v2211_v45 }
  0xe6   : > { %7331 = vst [vmem:[#allocation51_spill] sm:$0xff] %v5525_v35 }
  0xe7   : > { %7334 = vst [vmem:[#allocation53_spill] sm:$0xff] %v5544_v51 }
  0xe8   : > { %2455 = vperm.xlu0 %4861, %v5513_v23   ;;  %1503 = vperm.xlu1 %4864, %v5113_v3   ;;  %v5530_v3 = vmul.f32 15.0, %v2180_v31  ;;  %v2181_v31 = vmul.f32 0.5, %v2165_v41  ;;  %v1009_v26 = vpop.f32.mrf.mxu2 }
  0xe9   : > { %1506 = vperm.xlu2 %4865, %v5136_v25   ;;  %v5519_v7 = vpop.permute.xlu1 %1267  ;;  %v5521_v21 = vpop.permute.xlu2 %1330  ;;  %v1010_v44 = vadd.f32 %v5542_v22, %v1009_v26 }
  0xea   : > { %7329 = vst [vmem:[#allocation49_spill] sm:$0xff] %v5519_v7  ;;  %v5523_v29 = vpop.permute.xlu0 %1262  ;;  %v5556_v4 = vmul.f32 15.0, %v2181_v31 }
  0xeb   : > { %7330 = vst [vmem:[#allocation50_spill] sm:$0xff] %v5523_v29  ;;  %v1013_v41 = vmax.f32 %v1010_v44, 0.0 }
  0xed   : > { %1844 = vmatpush.msra.mxu1 %v1013_v41  ;;  %4781 = vmatpush.msrb.mxu2 %v1013_v41 }
  0xf0   : > { %2282 = vperm.xlu0 %4861, %v5525_v35   ;;  %1512 = vperm.xlu1 %4864, %v5130_v17   ;;  %v7221_v17 = vfloor.f32 %v5530_v3 }
  0xf1   : > { %1515 = vperm.xlu2 %4865, %v5148_v49   ;;  %v5533_v25 = vpop.permute.xlu1 %1309  ;;  %v5535_v23 = vpop.permute.xlu2 %1339  ;;  %v1007_v49 = vadd.f32 %v5542_v22, %v1006_v39  ;;  %v937_v39 = vld [vmem:[%s5037_s26 + $0xb0] sm:$0xff] }
  0xf2   : > { %v5537_v15 = vpop.permute.xlu0 %1306  ;;  %v5554_v18 = vsub.f32 %v5530_v3, %v7221_v17  ;;  %v7223_v17 = vfloor.f32 %v5556_v4  ;;  %v2166_v7 = vadd.f32 1.0, %v937_v39  ;;  %v7339_v39 = vfloor.f32 %v5442_v47 }
  0xf3   : > { %v1012_v33 = vmax.f32 %v1007_v49, 0.0  ;;  %v7337_v49 = vmov 0  }
  0xf4   : > { %v5574_v44 = vcvt.f32.s32 %v7223_v17  ;;  %v2182_v31 = vmul.f32 0.5, %v2166_v7 }
  0xf5   : > { %1845 = vmatpush.msra.mxu1 %v1012_v33  ;;  %4782 = vmatpush.msrb.mxu2 %v1012_v33  ;;  %v5584_v33 = vsub.f32 %v5442_v47, %v7339_v39 }
  0xf6   : > { %v2198_v7 = vmul.f32 15.0, %v2182_v31  ;;  %v7342_v31 = vfloor.f32 %v5462_v16  ;;  %v875_v16 = vlaneseq }
  0xf7   : > { %7340 = vst [vmem:[#allocation56_spill] sm:$0xff] %v5584_v33  ;;  %v7228_v17 = vsub.f32 1.0, %v5584_v33 }
  0xf8   : > { %2529 = vperm.xlu0 %4861, %v5544_v51   ;;  %1521 = vperm.xlu1 %4864, %v5144_v43   ;;  %v7222_v43 = vsub.f32 1.0, %v5554_v18  ;;  %v5607_v40 = vcvt.f32.s32 %v7342_v31 }
  0xf9   : > { %1524 = vperm.xlu2 %4865, %v5165_v60   ;;  %v5559_v48 = vpop.permute.xlu1 %1318  ;;  %v5561_v45 = vpop.permute.xlu2 %1348  ;;  %v7336_v60 = vsub.f32 1.0, %v5158_v53  ;;  %v938_v53 = vld [vmem:[%s5037_s26 + $0xb8] sm:$0xff] }
  0xfa   : > { %7335 = vst [vmem:[#allocation54_spill] sm:$0xff] %v5561_v45  ;;  %v5564_v26 = vpop.permute.xlu0 %1315  ;;  %v2214_v45 = vfloor.f32 %v2198_v7  ;;  %v2167_v29 = vadd.f32 1.0, %v938_v53  ;;  %v5613_v53 = vadd.s32 1, %v5607_v40 }
  0xfb   : > { %7343 = vst [vmem:[#allocation58_spill] sm:$0xff] %v5607_v40 }
  0xfc   : > { %7344 = vst [vmem:[#allocation59_spill] sm:$0xff] %v5613_v53 }
 0x100   : > { %2358 = vperm.xlu0 %4861, %v7222_v43   ;;  %1547 = vperm.xlu1 %4864, %v7336_v60   ;;  %v5590_v60 = vadd.s32 1, %v5574_v44 }
 0x101   : > { %4866 = vset.pattern.permute.xlu2 %v7337_v49  ;;  %v5577_v41 = vpop.permute.xlu1 %1327  ;;  %v5579_v5 = vpop.permute.xlu2 %1378 }
 0x102   : > { %7338 = vst [vmem:[#allocation55_spill] sm:$0xff] %v5577_v41  ;;  %v5586_v43 = vpop.permute.xlu0 %1324  ;;  %2273 = vperm.xlu2 %4866, %v5460_v24  }
 0x103   : > { %7341 = vst [vmem:[#allocation57_spill] sm:$0xff] %v5590_v60 }
 0x108   : > { %2464 = vperm.xlu0 %4861, %v5590_v60   ;;  %4867 = vset.pattern.permute.xlu1 %v7337_v49  ;;  %v5609_v60 = vcvt.f32.s32 %v2214_v45  ;;  %v2183_v49 = vmul.f32 0.5, %v2167_v29  ;;  %v5626_v29 = vsub.f32 %v2198_v7, %v2214_v45  ;;  %v7348_v7 = vfloor.f32 %v5484_v2 }
 0x109   : > { %v5596_v47 = vpop.permute.xlu1 %1336  ;;  %2338 = vperm.xlu1 %4867, %v7228_v17   ;;  %v5600_v39 = vpop.permute.xlu2 %1393 }
 0x10a   : > { %v5602_v24 = vpop.permute.xlu0 %1333  ;;  %2514 = vperm.xlu2 %4866, %v5584_v33   ;;  %v5616_v17 = vmul.f32 15.0, %v2183_v49  ;;  %v5629_v49 = vand.u32 127, %v875_v16  ;;  %v940_v16 = vld [vmem:[%s5037_s26 + $0xc8] sm:$0xff] }
 0x10b   : > { %v2169_v54 = vadd.f32 1.0, %v940_v16 }
 0x10c   : > { %v7235_v41 = vfloor.f32 %v5616_v17  ;;  %vm1174_vm3 = vcmp.eq.s32.totalorder %v5629_v49, %v5366_v28  ;;  %v5649_v28 = vsub.f32 %v5484_v2, %v7348_v7  ;;  %vm1350_vm4 = vcmp.eq.s32.totalorder %v5629_v49, %v5467_v46 }
 0x10d   : > { %vm1175_vm5 = vcmp.eq.s32.totalorder %v5629_v49, %v5389_v30  ;;  %vm1351_vm6 = vcmp.eq.s32.totalorder %v5629_v49, %v5537_v15  ;;  %vm1352_vm7 = vcmp.eq.s32.totalorder %v5629_v49, %v5533_v25  ;;  %vm1176_vm8 = vcmp.eq.s32.totalorder %v5629_v49, %v5364_v1 }
 0x10e   : > { %v5637_v36 = vsub.f32 %v5616_v17, %v7235_v41  ;;  %v7239_v59 = vsub.f32 1.0, %v5649_v28  ;;  %v1271_v15 = vsel %vm1175_vm5, %v5398_v6, 0.0  ;;  %v7352_v25 = vfloor.f32 %v5530_v3 }
 0x10f   : > { %vm1353_vm9 = vcmp.eq.s32.totalorder %v5629_v49, %v5489_v8  ;;  %vm1177_vm10 = vcmp.eq.s32.totalorder %v5629_v49, %v5387_v14  ;;  %vm1183_vm11 = vcmp.eq.s32.totalorder %v5629_v49, %v5411_v58  ;;  %vm1359_vm12 = vcmp.eq.s32.totalorder %v5629_v49, %v5521_v21 }
 0x110   : > { %2291 = vperm.xlu0 %4861, %v5609_v60   ;;  %v1273_v8 = vsel %vm1177_vm10, %v5446_v61, 0.0  ;;  %vm1354_vm13 = vcmp.eq.s32.totalorder %v5629_v49, %v5564_v26  ;;  %vm1360_vm14 = vcmp.eq.s32.totalorder %v5629_v49, %v5602_v24  ;;  %vm1178_vm15 = vcmp.eq.s32.totalorder %v5629_v49, %v5305_v34 }
 0x111   : > { %v5618_v22 = vpop.permute.xlu1 %1345  ;;  %2276 = vperm.xlu1 %4867, %v5607_v40   ;;  %v5621_v33 = vpop.permute.xlu2 %1408  ;;  %v5639_v40 = vmul.f32 15.0, %v2184_v55  ;;  %v1270_v55 = vsel %vm1174_vm3, %v5432_v50, 0.0  ;;  %v2185_v50 = vmul.f32 0.5, %v2169_v54  ;;  %vm1184_vm1 = vcmp.eq.s32.totalorder %v5629_v49, %v5407_v63 }
 0x112   : > { %7345 = vst [vmem:[#allocation60_spill] sm:$0xff] %v5618_v22  ;;  %v5623_v31 = vpop.permute.xlu0 %1342  ;;  %2452 = vperm.xlu2 %4866, %v5613_v53   ;;  %v5641_v53 = vpop.f32.mrf.mxu0  ;;  %vm1355_vm3 = vcmp.eq.s32.totalorder %v5629_v49, %v5559_v48  ;;  %vm1179_vm5 = vcmp.eq.s32.totalorder %v5629_v49, %v5319_v42  ;;  %vm1186_vm10 = vcmp.eq.s32.totalorder %v5629_v49, %v5422_v9 }
 0x113   : > { %7346 = vst [vmem:[#allocation61_spill] sm:$0xff] %v5621_v33  ;;  %v7240_v22 = vfloor.f32 %v5639_v40  ;;  %v2201_v54 = vmul.f32 15.0, %v2185_v50  ;;  %v1448_v50 = vsel %vm1352_vm7, %v5579_v5, 0.0  ;;  %vm1356_vm7 = vcmp.eq.s32.totalorder %v5629_v49, %v5508_v37 }
 0x114   : > { %7347 = vst [vmem:[#allocation62_spill] sm:$0xff] %v5641_v53 }
 0x115   : > { %v5668_v46 = vcvt.f32.s32 %v7240_v22  ;;  %v2217_v6 = vfloor.f32 %v2201_v54  ;;  %v1272_v22 = vsel %vm1176_vm8, %v5448_v38, 0.0  ;;  %vm1362_vm8 = vcmp.eq.s32.totalorder %v5629_v49, %v5535_v23 }
 0x117   : > { %v5681_v16 = vadd.s32 1, %v5668_v46 }
 0x118   : > { %2544 = vperm.xlu0 %4861, %v5626_v29  }
 0x119   : > { %v1374_v45 = vpop.permute.xlu1 %1373  ;;  %2519 = vperm.xlu1 %4867, %v5482_v52   ;;  %v5644_v13 = vpop.permute.xlu2 %1423  ;;  %v7238_v52 = vsub.f32 1.0, %v5637_v36  ;;  %7350 = vst [vmem:[#allocation64_spill] sm:$0xff] %v5681_v16 }
 0x11a   : > { %v1369_v41 = vpop.permute.xlu0 %1368  ;;  %2279 = vperm.xlu2 %4866, %v5503_v32   ;;  %v5670_v2 = vpop.f32.mrf.mxu0 }
 0x11b   : > { %v1446_v53 = vsel %vm1350_vm4, %v1369_v41, 0.0  ;;  %7349 = vst [vmem:[#allocation63_spill] sm:$0xff] %v5670_v2  ;;  %v1447_v41 = vsel %vm1351_vm6, %v1374_v45, 0.0  ;;  %v5685_v45 = vadd.s32 1, %v5525_v35  ;;  %v1464_v2 = vadd.f32 %v1448_v50, %v1272_v22  ;;  %v942_v35 = vld [vmem:[%s5037_s26 + $0xd8] sm:$0xff] }
 0x11c   : > { %v1462_v33 = vadd.f32 %v1446_v53, %v1270_v55  ;;  %v1463_v7 = vadd.f32 %v1447_v41, %v1271_v15  ;;  %v941_v55 = vld [vmem:[%s5037_s26 + $0xd0] sm:$0xff]  ;;  %v2171_v38 = vadd.f32 1.0, %v942_v35  ;;  %v1279_v35 = vsel %vm1183_vm11, %v5487_v10, 0.0 }
 0x11d   : > { %vm1361_vm4 = vcmp.eq.s32.totalorder %v5629_v49, %v5596_v47  ;;  %vm1185_vm6 = vcmp.eq.s32.totalorder %v5629_v49, %v5362_v11  ;;  %v5813_v11 = vadd.s32 1, %v5609_v60  ;;  %vm1357_vm11 = vcmp.eq.s32.totalorder %v5629_v49, %v5586_v43  ;;  %v7363_v43 = vld [vmem:[#allocation41_spill] sm:$0xff] }
 0x11e   : > { %4572 = vmatmul.msk.f32.vlgmr.msra.gmra.mxu1 %vm982_vm0, %v1462_v33  ;;  %v2187_v58 = vmul.f32 0.5, %v2171_v38 }
 0x120   : > { %2373 = vperm.xlu0 %4861, %v7238_v52   ;;  %v7245_v52 = vsub.f32 1.0, %v5544_v51  ;;  %v5752_v21 = vmul.f32 15.0, %v2187_v58  ;;  %v1451_v58 = vsel %vm1355_vm3, %v5600_v39, 0.0  ;;  %v1275_v39 = vsel %vm1179_vm5, %v5469_v12, 0.0 }
 0x121   : > { %v5672_v53 = vpop.permute.xlu1 %1388  ;;  %2348 = vperm.xlu1 %4867, %v7239_v59   ;;  %v5676_v30 = vpop.permute.xlu2 %1438  ;;  %v2170_v59 = vadd.f32 1.0, %v941_v55  ;;  %v5706_v55 = vcvt.f32.s32 %v7352_v25  ;;  %v7247_v12 = vsub.f32 1.0, %v5626_v29 }
 0x122   : > { %v1384_v33 = vpop.permute.xlu0 %1383  ;;  %2524 = vperm.xlu2 %4866, %v5649_v28   ;;  %v5692_v41 = vpop.f32.mrf.mxu0 }
 0x123   : > { %7351 = vst [vmem:[#allocation65_spill] sm:$0xff] %v5692_v41  ;;  %v2186_v5 = vmul.f32 0.5, %v2170_v59  ;;  %v5716_v1 = vadd.s32 1, %v5706_v55  ;;  %v1449_v59 = vsel %vm1353_vm9, %v1384_v33, 0.0  ;;  %vm1180_vm9 = vcmp.eq.s32.totalorder %v5629_v49, %v5400_v27 }
 0x125   : > { %v5718_v51 = vmul.f32 15.0, %v2186_v5  ;;  %v1465_v5 = vadd.f32 %v1449_v59, %v1273_v8  ;;  %v7355_v59 = vfloor.f32 %v5556_v4 }
 0x126   : > { %4573 = vmatmul.msk.f32.gmra.mxu1 %vm982_vm0, %v1463_v7 }
 0x127   : > { %v7251_v25 = vfloor.f32 %v5718_v51  ;;  %v5763_v26 = vsub.f32 %v5556_v4, %v7355_v59  ;;  %v1467_v59 = vadd.f32 %v1451_v58, %v1275_v39  ;;  %v7360_v58 = vfloor.f32 %v5616_v17 }
 0x128   : > { %2473 = vperm.xlu0 %4861, %v5681_v16   ;;  %v5711_v16 = vcvt.f32.s32 %v2217_v6 }
 0x129   : > { %v5695_v15 = vpop.permute.xlu1 %1403  ;;  %2458 = vperm.xlu1 %4867, %v5685_v45   ;;  %v5745_v61 = vsub.f32 %v5718_v51, %v7251_v25  ;;  %v7248_v34 = vsub.f32 1.0, %v5763_v26 }
 0x12a   : > { %v5700_v7 = vpop.permute.xlu0 %1398  ;;  %2353 = vperm.xlu2 %4866, %v7245_v52   ;;  %v5723_v3 = vpop.f32.mrf.mxu0  ;;  %v5738_v52 = vsub.f32 %v2201_v54, %v2217_v6  ;;  %v1450_v54 = vsel %vm1354_vm13, %v5672_v53, 0.0  ;;  %v1274_v53 = vsel %vm1178_vm15, %v5409_v0, 0.0  ;;  %vm1181_vm13 = vcmp.eq.s32.totalorder %v5629_v49, %v5396_v62 }
 0x12b   : > { %v5709_v41 = vpop.permute.xlu2 %1482  ;;  %7353 = vst [vmem:[#allocation66_spill] sm:$0xff] %v5723_v3  ;;  %v1466_v4 = vadd.f32 %v1450_v54, %v1274_v53  ;;  %v1457_v54 = vsel %vm1361_vm4, %v5644_v13, 0.0 }
 0x12e   : > { %4574 = vmatmul.msk.f32.gmra.mxu1 %vm982_vm0, %v1464_v2 }
 0x130   : > { %2300 = vperm.xlu0 %4861, %v5711_v16  }
 0x131   : > { %v1419_v22 = vpop.permute.xlu1 %1418  ;;  %2285 = vperm.xlu1 %4867, %v5706_v55  }
 0x132   : > { %v1414_v2 = vpop.permute.xlu0 %1413  ;;  %2461 = vperm.xlu2 %4866, %v5716_v1   ;;  %v5754_v10 = vpop.f32.mrf.mxu0  ;;  %v1456_v6 = vsel %vm1360_vm14, %v1419_v22, 0.0  ;;  %v1280_v22 = vsel %vm1184_vm1, %v5430_v57, 0.0 }
 0x133   : > { %v1455_v33 = vsel %vm1359_vm12, %v1414_v2, 0.0  ;;  %v5735_v50 = vpop.permute.xlu2 %1491  ;;  %7354 = vst [vmem:[#allocation67_spill] sm:$0xff] %v5754_v10  ;;  %v943_v2 = vld [vmem:[%s5037_s26 + $0xe0] sm:$0xff]  ;;  %vm1363_vm12 = vcmp.eq.s32.totalorder %v5629_v49, %v5623_v31  ;;  %v1277_v31 = vsel %vm1181_vm13, %v7363_v43, 0.0  ;;  %v7367_v43 = vld [vmem:[#allocation52_spill] sm:$0xff] }
 0x134   : > { %v1471_v14 = vadd.f32 %v1455_v33, %v1279_v35  ;;  %v7246_v35 = vsub.f32 1.0, %v5745_v61  ;;  %v1472_v33 = vadd.f32 %v1456_v6, %v1280_v22  ;;  %v1281_v6 = vsel %vm1185_vm6, %v5510_v19, 0.0  ;;  %v944_v22 = vld [vmem:[%s5037_s26 + $0xe8] sm:$0xff] }
 0x136   : > { %4575 = vmatmul.msk.f32.gmra.mxu1 %vm982_vm0, %v1465_v5  ;;  %4581 = vmatmul.msk.f32.vlgmr.msrb.gmra.mxu2 %vm982_vm0, %v1471_v14  ;;  %v7250_v5 = vfloor.f32 %v5752_v21  ;;  %v2172_v14 = vadd.f32 1.0, %v943_v2  ;;  %v1473_v2 = vadd.f32 %v1457_v54, %v1281_v6  ;;  %v1282_v54 = vsel %vm1186_vm10, %v5506_v20, 0.0 }
 0x137   : > { %v1453_v20 = vsel %vm1357_vm11, %v5695_v15, 0.0 }
 0x138   : > { %2559 = vperm.xlu0 %4861, %v5738_v52   ;;  %v5788_v0 = vcvt.f32.s32 %v7250_v5  ;;  %v2188_v57 = vmul.f32 0.5, %v2172_v14  ;;  %v1452_v14 = vsel %vm1356_vm7, %v5700_v7, 0.0  ;;  %v5840_v7 = vcvt.f32.s32 %v7360_v58 }
 0x139   : > { %v5757_v38 = vpop.permute.xlu1 %1433  ;;  %2534 = vperm.xlu1 %4867, %v5554_v18  }
 0x13a   : > { %v1429_v24 = vpop.permute.xlu0 %1428  ;;  %2288 = vperm.xlu2 %4866, %v5574_v44   ;;  %v5790_v63 = vpop.f32.mrf.mxu0  ;;  %v5810_v53 = vadd.s32 1, %v5788_v0  ;;  %v2204_v42 = vmul.f32 15.0, %v2188_v57  ;;  %v5852_v17 = vadd.s32 1, %v5840_v7 }
 0x13b   : > { %v5773_v8 = vpop.permute.xlu2 %1497  ;;  %7357 = vst [vmem:[#allocation69_spill] sm:$0xff] %v5790_v63  ;;  %v1458_v57 = vsel %vm1362_vm8, %v1429_v24, 0.0  ;;  %v1276_v24 = vsel %vm1180_vm9, %v5465_v56, 0.0 }
 0x13c   : > { %7356 = vst [vmem:[#allocation68_spill] sm:$0xff] %v5773_v8  ;;  %v2220_v19 = vfloor.f32 %v2204_v42  ;;  %v1468_v27 = vadd.f32 %v1452_v14, %v1276_v24  ;;  %v1474_v6 = vadd.f32 %v1458_v57, %v1282_v54  ;;  %v1459_v14 = vsel %vm1363_vm12, %v5757_v38, 0.0  ;;  %v7362_v57 = vld [vmem:[#allocation40_spill] sm:$0xff]  ;;  %v7364_v24 = vld [vmem:[#allocation43_spill] sm:$0xff]  ;;  %v7392_v8 = vld [vmem:[#allocation5_spill] sm:$0xff] }
 0x13d   : > { %vm1187_vm14 = vcmp.eq.s32.totalorder %v5629_v49, %v7362_v57  ;;  %v7366_v57 = vld [vmem:[#allocation55_spill] sm:$0xff] }
 0x13e   : > { %4576 = vmatmul.msk.f32.gmra.mxu1 %vm982_vm0, %v1466_v4  ;;  %4582 = vmatmul.msk.f32.gmra.mxu2 %vm982_vm0, %v1472_v33  ;;  %v2173_v4 = vadd.f32 1.0, %v944_v22  ;;  %v5846_v9 = vcvt.f32.s32 %v2220_v19  ;;  %v1283_v54 = vsel %vm1187_vm14, %v7364_v24, 0.0  ;;  %v5877_v38 = vsub.f32 %v2204_v42, %v2220_v19  ;;  %v7368_v24 = vld [vmem:[#allocation60_spill] sm:$0xff] }
 0x13f   : > { %v1475_v62 = vadd.f32 %v1459_v14, %v1283_v54  ;;  %vm1358_vm15 = vcmp.eq.s32.totalorder %v5629_v49, %v7366_v57  ;;  %vm1364_vm1 = vcmp.eq.s32.totalorder %v5629_v49, %v7368_v24  ;;  %v7371_v54 = vfloor.f32 %v5639_v40  ;;  %v7372_v24 = vld [vmem:[#allocation39_spill] sm:$0xff] }
 0x140   : > { %2388 = vperm.xlu0 %4861, %v7246_v35   ;;  %vm1188_vm4 = vcmp.eq.s32.totalorder %v5629_v49, %v7372_v24 }
 0x141   : > { %2363 = vperm.xlu1 %4867, %v7248_v34  }
 0x142   : > { %v5800_v48 = vpop.permute.xlu0 %1443  ;;  %2539 = vperm.xlu2 %4866, %v5763_v26   ;;  %v5803_v47 = vpop.permute.xlu1 %1479 }
 0x143   : > { %v5807_v13 = vpop.permute.xlu2 %1506  ;;  %v5824_v33 = vpop.f32.mrf.mxu0 }
 0x144   : > { %7358 = vst [vmem:[#allocation70_spill] sm:$0xff] %v5807_v13 }
 0x145   : > { %7359 = vst [vmem:[#allocation71_spill] sm:$0xff] %v5824_v33 }
 0x146   : > { %4577 = vmatmul.msk.f32.gmra.mxu1 %vm982_vm0, %v1467_v59  ;;  %4583 = vmatmul.msk.f32.gmra.mxu2 %vm982_vm0, %v1473_v2  ;;  %v2189_v59 = vmul.f32 0.5, %v2173_v4  ;;  %v945_v2 = vld [vmem:[%s5037_s26 + $0xf0] sm:$0xff] }
 0x147   : > { %v2174_v22 = vadd.f32 1.0, %v945_v2 }
 0x148   : > { %2482 = vperm.xlu0 %4861, %v5810_v53   ;;  %v5860_v56 = vmul.f32 15.0, %v2189_v59 }
 0x149   : > { %2467 = vperm.xlu1 %4867, %v5813_v11   ;;  %v2190_v2 = vmul.f32 0.5, %v2174_v22 }
 0x14a   : > { %v5832_v37 = vpop.permute.xlu0 %2449  ;;  %2368 = vperm.xlu2 %4866, %v7247_v12   ;;  %v5836_v23 = vpop.permute.xlu1 %1488  ;;  %v7249_v59 = vfloor.f32 %v5860_v56 }
 0x14b   : > { %v5844_v39 = vpop.permute.xlu2 %1515  ;;  %v5894_v19 = vmul.f32 15.0, %v2190_v2  ;;  %v7373_v2 = vld [vmem:[#allocation47_spill] sm:$0xff]  ;;  %vm2496_vm7 = vcmp.eq.s32.totalorder %v5629_v49, %v5832_v37 }
 0x14c   : > { %7361 = vst [vmem:[#allocation72_spill] sm:$0xff] %v5844_v39  ;;  %v5892_v42 = vsub.f32 %v5860_v56, %v7249_v59 }
 0x14e   : > { %4578 = vmatmul.msk.f32.gmra.mxu1 %vm982_vm0, %v1468_v27  ;;  %4584 = vmatmul.msk.f32.gmra.mxu2 %vm982_vm0, %v1474_v6  ;;  %v2152_v4 = vpop.f32.mrf.mxu0  ;;  %v1469_v27 = vadd.f32 %v1453_v20, %v1277_v31  ;;  %v7369_v20 = vld [vmem:[#allocation61_spill] sm:$0xff]  ;;  %v7370_v31 = vld [vmem:[#allocation32_spill] sm:$0xff] }
 0x14f   : > { %v2153_v35 = vadd.f32 %v7367_v43, %v2152_v4  ;;  %v1454_v14 = vsel %vm1358_vm15, %v7369_v20, 0.0  ;;  %vm1182_vm3 = vcmp.eq.s32.totalorder %v5629_v49, %v7370_v31  ;;  %v1460_v4 = vsel %vm1364_vm1, %v5676_v30, 0.0  ;;  %v7375_v31 = vld [vmem:[#allocation50_spill] sm:$0xff] }
 0x150   : > { %2309 = vperm.xlu0 %4861, %v5846_v9   ;;  %v1278_v20 = vsel %vm1182_vm3, %v7373_v2, 0.0  ;;  %v1284_v34 = vsel %vm1188_vm4, %v7375_v31, 0.0 }
 0x151   : > { %2294 = vperm.xlu1 %4867, %v5840_v7   ;;  %v1470_v59 = vadd.f32 %v1454_v14, %v1278_v20  ;;  %v2158_v5 = vmax.f32 %v2153_v35, 0.0 }
 0x152   : > { %v5869_v58 = vpop.permute.xlu0 %2343  ;;  %2470 = vperm.xlu2 %4866, %v5852_v17   ;;  %v5872_v15 = vpop.permute.xlu1 %1494 }
 0x153   : > { %v5875_v6 = vpop.permute.xlu2 %1524 }
 0x154   : > { %7365 = vst [vmem:[#allocation40_spill] sm:$0xff] %v5875_v6  ;;  %v7376_v6 = vld [vmem:[#allocation54_spill] sm:$0xff] }
 0x155   : > { %vm1365_vm5 = vcmp.eq.s32.totalorder %v5629_v49, %v7376_v6 }
 0x156   : > { %4579 = vmatmul.msk.f32.gmra.mxu1 %vm982_vm0, %v1469_v27  ;;  %4585 = vmatmul.msk.f32.gmra.mxu2 %vm982_vm0, %v1475_v62  ;;  %v2155_v22 = vpop.f32.mrf.mxu0  ;;  %v5903_v27 = vsub.f32 %v5639_v40, %v7371_v54  ;;  %v946_v62 = vld [vmem:[%s5037_s26 + $0xf8] sm:$0xff]  ;;  %v1476_v54 = vadd.f32 %v1460_v4, %v1284_v34  ;;  %v1461_v14 = vsel %vm1365_vm5, %v5800_v48, 0.0  ;;  %s7490_s26 = sld [smem:[#allocation76_spill]] }
 0x157   : > { %v2156_v57 = vadd.f32 %v7367_v43, %v2155_v22  ;;  %v7252_v43 = vsub.f32 1.0, %v5892_v42  ;;  %v7255_v22 = vfloor.f32 %v5894_v19  ;;  %v2175_v24 = vadd.f32 1.0, %v946_v62  ;;  %v7380_v4 = vld [vmem:[#allocation49_spill] sm:$0xff] }
 0x158   : > { %2574 = vperm.xlu0 %4861, %v5877_v38   ;;  %v7254_v2 = vsub.f32 1.0, %v5903_v27 }
 0x159   : > { %2549 = vperm.xlu1 %4867, %v5637_v36   ;;  %v2159_v40 = vmax.f32 %v2156_v57, 0.0  ;;  %v5927_v35 = vcvt.f32.s32 %v7255_v22  ;;  %v2191_v34 = vmul.f32 0.5, %v2175_v24  ;;  %v7386_v22 = vld [vmem:[#allocation2_spill] sm:$0xff] }
 0x15a   : > { %v5910_v12 = vpop.permute.xlu0 %2455  ;;  %2297 = vperm.xlu2 %4866, %v5668_v46   ;;  %v5913_v30 = vpop.permute.xlu1 %1503 }
 0x15b   : > { %7374 = vst [vmem:[#allocation41_spill] sm:$0xff] %v5913_v30  ;;  %2990 = vmatpush.msra.mxu0 %v2159_v40  ;;  %v5941_v31 = vadd.s32 1, %v5927_v35  ;;  %v5943_v48 = vmul.f32 15.0, %v2191_v34  ;;  %v5946_v40 = vadd.s32 1, %v5711_v16  ;;  %vm2498_vm11 = vcmp.eq.s32.totalorder %v5629_v49, %v5910_v12 }
 0x15c   : > { %v2274_v25 = vpop.permute.xlu2 %2273  ;;  %7377 = vst [vmem:[#allocation43_spill] sm:$0xff] %v5927_v35  ;;  %s6652_s1 = scalar_lea.vmem %s7490_s26, %s6643_s6 }
 0x15d   : > { %2991 = vmatpush.msra.mxu0 %v2158_v5  ;;  %7381 = vst [vmem:[#allocation52_spill] sm:$0xff] %v5941_v31  ;;  %v7256_v24 = vfloor.f32 %v5943_v48  ;;  %vm2320_vm8 = vcmp.eq.s32.totalorder %v5629_v49, %v2274_v25 }
 0x15e   : > { %4580 = vmatmul.msk.f32.gmra.mxu1 %vm982_vm0, %v1470_v59  ;;  %4586 = vmatmul.msk.f32.gmra.mxu2 %vm982_vm0, %v1476_v54  ;;  %v7378_v59 = vld [vmem:[#allocation42_spill] sm:$0xff]  ;;  %v7253_v54 = vsub.f32 1.0, %v5738_v52 }
 0x15f   : > { %vm1189_vm6 = vcmp.eq.s32.totalorder %v5629_v49, %v7378_v59  ;;  %v7383_v59 = vfloor.f32 %v5718_v51 }
 0x160   : > { %2403 = vperm.xlu0 %4861, %v7252_v43   ;;  %v1285_v62 = vsel %vm1189_vm6, %v7380_v4, 0.0 }
 0x161   : > { %2378 = vperm.xlu1 %4867, %v7254_v2   ;;  %v1477_v57 = vadd.f32 %v1461_v14, %v1285_v62  ;;  %v5961_v4 = vcvt.f32.s32 %v7383_v59  ;;  %v7385_v2 = vmov 1  }
 0x162   : > { %v5934_v5 = vpop.permute.xlu0 %2282  ;;  %2554 = vperm.xlu2 %4866, %v5903_v27   ;;  %v5937_v6 = vpop.permute.xlu1 %1512 }
 0x163   : > { %7379 = vst [vmem:[#allocation55_spill] sm:$0xff] %v5937_v6  ;;  %v5969_v43 = vadd.s32 1, %v5961_v4  ;;  %vm2323_vm13 = vcmp.eq.s32.totalorder %v5629_v49, %v5934_v5  ;;  %v7397_v5 = vfloor.f32 %v5943_v48 }
 0x164   : > { %v2515_v20 = vpop.permute.xlu2 %2514 }
 0x165   : > { %v2592_v39 = vsel %vm2496_vm7, %v2515_v20, 0.0  ;;  %v6001_v20 = vadd.s32 1, %v5846_v9 }
 0x166   : > { %4587 = vmatmul.msk.f32.gmra.mxu2 %vm982_vm0, %v1477_v57  ;;  %v5966_v57 = vsub.f32 %v5943_v48, %v7256_v24  ;;  %v7387_v24 = vfloor.f32 %v5752_v21 }
 0x168   : > { %2491 = vperm.xlu0 %4861, %v5941_v31   ;;  %7384 = vst [vmem:[#allocation61_spill] sm:$0xff] %v5966_v57 }
 0x169   : > { %2476 = vperm.xlu1 %4867, %v5946_v40  }
 0x16a   : > { %v5953_v14 = vpop.permute.xlu0 %2529  ;;  %2383 = vperm.xlu2 %4866, %v7253_v54   ;;  %v5957_v34 = vpop.permute.xlu1 %1521 }
 0x16b   : > { %7382 = vst [vmem:[#allocation60_spill] sm:$0xff] %v5957_v34  ;;  %v5984_v34 = vsub.f32 %v5752_v21, %v7387_v24  ;;  %v7388_v21 = vld [vmem:[#allocation3_spill] sm:$0xff] }
 0x16c   : > { %v2453_v62 = vpop.permute.xlu2 %2452 }
 0x16d   : > { %v7257_v3 = vsub.f32 1.0, %v5984_v34  ;;  %vm2497_vm10 = vcmp.eq.s32.totalorder %v5629_v49, %v2453_v62 }
 0x170   : > { %2589 = vperm.xlu0 %4861, %v5966_v57  }
 0x171   : > { %2303 = vperm.xlu1 %4867, %v5961_v4  }
 0x172   : > { %v5973_v54 = vpop.permute.xlu0 %2358  ;;  %2479 = vperm.xlu2 %4866, %v5969_v43   ;;  %v5976_v51 = vpop.permute.xlu1 %1547 }
 0x174   : > { %v2280_v59 = vpop.permute.xlu2 %2279 }
 0x175   : > { %vm2322_vm12 = vcmp.eq.s32.totalorder %v5629_v49, %v2280_v59 }
 0x178   : > { %4869 = vset.pattern.permute.xlu0 %v7385_v2 }
 0x179   : > { %1485 = vperm.xlu0 %4869, %v7386_v22   ;;  %2564 = vperm.xlu1 %4867, %v5745_v61  }
 0x17a   : > { %v5986_v33 = vpop.permute.xlu0 %2464  ;;  %2306 = vperm.xlu2 %4866, %v5788_v0  }
 0x17b   : > { %v2339_v63 = vpop.permute.xlu1 %2338  ;;  %vm2501_vm3 = vcmp.eq.s32.totalorder %v5629_v49, %v5986_v33 }
 0x17c   : > { %v2416_v10 = vsel %vm2320_vm8, %v2339_v63, 0.0  ;;  %v2525_v22 = vpop.permute.xlu2 %2524  ;;  %v7389_v63 = vld [vmem:[#allocation4_spill] sm:$0xff] }
 0x17d   : > { %v2608_v6 = vadd.f32 %v2592_v39, %v2416_v10  ;;  %v7259_v10 = vsub.f32 1.0, %v5877_v38 }
 0x17f   : > { %4607 = vmatmul.msk.f32.vlgmr.msra.gmra.mxu0 %vm982_vm0, %v2608_v6  ;;  %v7390_v6 = vfloor.f32 %v5860_v56 }
 0x181   : > { %1500 = vperm.xlu0 %4869, %v7388_v21   ;;  %2393 = vperm.xlu1 %4867, %v7257_v3   ;;  %v6013_v21 = vcvt.f32.s32 %v7390_v6  ;;  %v7395_v6 = vfloor.f32 %v5894_v19 }
 0x182   : > { %v5997_v24 = vpop.permute.xlu0 %2291  ;;  %2569 = vperm.xlu2 %4866, %v5984_v34  }
 0x183   : > { %v2277_v37 = vpop.permute.xlu1 %2276  ;;  %vm2326_vm5 = vcmp.eq.s32.totalorder %v5629_v49, %v5997_v24 }
 0x184   : > { %v2354_v25 = vpop.permute.xlu2 %2353  ;;  %vm2321_vm9 = vcmp.eq.s32.totalorder %v5629_v49, %v2277_v37 }
 0x185   : > { %v2417_v13 = vsel %vm2321_vm9, %v5869_v58, 0.0 }
 0x189   : > { %1509 = vperm.xlu0 %4869, %v7389_v63   ;;  %2485 = vperm.xlu1 %4867, %v6001_v20   ;;  %v6018_v63 = vadd.s32 1, %v6013_v21 }
 0x18a   : > { %v6007_v39 = vpop.permute.xlu0 %2544  ;;  %2398 = vperm.xlu2 %4866, %v7259_v10   ;;  %v6036_v10 = vsub.f32 %v5894_v19, %v7395_v6  ;;  %v7396_v19 = vld [vmem:[#allocation22_spill] sm:$0xff]  ;;  %v6055_v6 = vcvt.f32.s32 %v7397_v5 }
 0x18b   : > { %v2520_v3 = vpop.permute.xlu1 %2519  ;;  %7391 = vst [vmem:[#allocation32_spill] sm:$0xff] %v6018_v63 }
 0x18c   : > { %v2593_v31 = vsel %vm2497_vm10, %v2520_v3, 0.0  ;;  %v2462_v37 = vpop.permute.xlu2 %2461  ;;  %7398 = vst [vmem:[#allocation39_spill] sm:$0xff] %v6055_v6 }
 0x18d   : > { %v2609_v30 = vadd.f32 %v2593_v31, %v2417_v13  ;;  %v2594_v13 = vsel %vm2498_vm11, %v2525_v22, 0.0  ;;  %vm2500_vm1 = vcmp.eq.s32.totalorder %v5629_v49, %v2462_v37 }
 0x18f   : > { %4608 = vmatmul.msk.f32.gmra.mxu0 %vm982_vm0, %v2609_v30  ;;  %v7393_v30 = vld [vmem:[#allocation6_spill] sm:$0xff] }
 0x191   : > { %1518 = vperm.xlu0 %4869, %v7392_v8   ;;  %2312 = vperm.xlu1 %4867, %v6013_v21   ;;  %v7394_v8 = vsub.f32 1.0, %v7393_v30 }
 0x192   : > { %v6023_v56 = vpop.permute.xlu0 %2373  ;;  %2488 = vperm.xlu2 %4866, %v6018_v63  }
 0x193   : > { %v2349_v3 = vpop.permute.xlu1 %2348 }
 0x194   : > { %v2418_v58 = vsel %vm2322_vm12, %v2349_v3, 0.0  ;;  %v2289_v31 = vpop.permute.xlu2 %2288  ;;  %v2419_v3 = vsel %vm2323_vm13, %v2354_v25, 0.0 }
 0x195   : > { %v2610_v62 = vadd.f32 %v2594_v13, %v2418_v58  ;;  %v7260_v58 = vsub.f32 1.0, %v6036_v10  ;;  %vm2325_vm4 = vcmp.eq.s32.totalorder %v5629_v49, %v2289_v31 }
 0x197   : > { %4609 = vmatmul.msk.f32.gmra.mxu0 %vm982_vm0, %v2610_v62 }
 0x199   : > { %1543 = vperm.xlu0 %4869, %v7394_v8   ;;  %2579 = vperm.xlu1 %4867, %v5892_v42  }
 0x19a   : > { %v6038_v12 = vpop.permute.xlu0 %2473  ;;  %2315 = vperm.xlu2 %4866, %v5927_v35   ;;  %v7263_v35 = vsub.f32 1.0, %v5966_v57  ;;  %v954_v57 = vld [vmem:[%s5356_s5 + $0x38] sm:$0xff] }
 0x19b   : > { %v2459_v59 = vpop.permute.xlu1 %2458  ;;  %4596 = vmatmul.msk.f32.vlgmr.msra.gmra.mxu3 %vm1976_vm2, %v954_v57  ;;  %vm2504_vm10 = vcmp.eq.s32.totalorder %v5629_v49, %v6038_v12  ;;  %v7414_v12 = vld [vmem:[#allocation23_spill] sm:$0xff] }
 0x19c   : > { %vm2499_vm14 = vcmp.eq.s32.totalorder %v5629_v49, %v2459_v59  ;;  %v2540_v22 = vpop.permute.xlu2 %2539  ;;  %v6058_v59 = vadd.s32 1, %v6055_v6 }
 0x19d   : > { %v2595_v13 = vsel %vm2499_vm14, %v5953_v14, 0.0  ;;  %v2597_v37 = vsel %vm2501_vm3, %v2540_v22, 0.0 }
 0x19e   : > { %v2611_v62 = vadd.f32 %v2595_v13, %v2419_v3  ;;  %v7399_v3 = vld [vmem:[#allocation25_spill] sm:$0xff] }
 0x1a0   : > { %4610 = vmatmul.msk.f32.gmra.mxu0 %vm982_vm0, %v2611_v62 }
 0x1a1   : > { %1623 = vperm.xlu0 %4869, %v7396_v19   ;;  %2408 = vperm.xlu1 %4867, %v7260_v58  }
 0x1a2   : > { %v6050_v8 = vpop.permute.xlu0 %2300  ;;  %2584 = vperm.xlu2 %4866, %v6036_v10  }
 0x1a3   : > { %v2286_v25 = vpop.permute.xlu1 %2285  ;;  %vm2329_vm11 = vcmp.eq.s32.totalorder %v5629_v49, %v6050_v8 }
 0x1a4   : > { %v2369_v14 = vpop.permute.xlu2 %2368  ;;  %vm2324_vm15 = vcmp.eq.s32.totalorder %v5629_v49, %v2286_v25  ;;  %v7400_v25 = vld [vmem:[#allocation46_spill] sm:$0xff] }
 0x1a5   : > { %v2420_v62 = vsel %vm2324_vm15, %v5973_v54, 0.0  ;;  %v2422_v22 = vsel %vm2326_vm5, %v2369_v14, 0.0  ;;  %v7407_v14 = vld [vmem:[#allocation9_spill] sm:$0xff] }
 0x1a9   : > { %1626 = vperm.xlu0 %4869, %v7399_v3   ;;  %2318 = vperm.xlu1 %4867, %v6055_v6  }
 0x1aa   : > { %v6063_v13 = vpop.permute.xlu0 %2559  ;;  %2494 = vperm.xlu2 %4866, %v6058_v59  }
 0x1ab   : > { %v2535_v48 = vpop.permute.xlu1 %2534 }
 0x1ac   : > { %v2596_v19 = vsel %vm2500_vm1, %v2535_v48, 0.0  ;;  %v2471_v5 = vpop.permute.xlu2 %2470 }
 0x1ad   : > { %v2612_v58 = vadd.f32 %v2596_v19, %v2420_v62  ;;  %v7401_v19 = vld [vmem:[#allocation10_spill] sm:$0xff]  ;;  %vm2503_vm8 = vcmp.eq.s32.totalorder %v5629_v49, %v2471_v5 }
 0x1af   : > { %4611 = vmatmul.msk.f32.gmra.mxu0 %vm982_vm0, %v2612_v58 }
 0x1b1   : > { %2837 = vperm.xlu0 %4869, %v7400_v25   ;;  %4868 = vset.pattern.permute.xlu1 %v7385_v2 }
 0x1b2   : > { %v6072_v3 = vpop.permute.xlu0 %2388  ;;  %2413 = vperm.xlu2 %4866, %v7263_v35   ;;  %1687 = vperm.xlu1 %4868, %v7393_v30   ;;  %v7402_v35 = vld [vmem:[#allocation44_spill] sm:$0xff]  ;;  %v7403_v30 = vld [vmem:[#allocation45_spill] sm:$0xff] }
 0x1b3   : > { %v2364_v54 = vpop.permute.xlu1 %2363 }
 0x1b4   : > { %v2421_v48 = vsel %vm2325_vm4, %v2364_v54, 0.0  ;;  %v2298_v58 = vpop.permute.xlu2 %2297 }
 0x1b5   : > { %v2613_v62 = vadd.f32 %v2597_v37, %v2421_v48  ;;  %v7404_v48 = vsub.f32 1.0, %v5649_v28  ;;  %vm2328_vm9 = vcmp.eq.s32.totalorder %v5629_v49, %v2298_v58 }
 0x1b7   : > { %4612 = vmatmul.msk.f32.gmra.mxu0 %vm982_vm0, %v2613_v62 }
 0x1b9   : > { %1695 = vperm.xlu0 %4869, %v7401_v19  }
 0x1ba   : > { %v6082_v6 = vpop.permute.xlu0 %2482  ;;  %4870 = vset.pattern.permute.xlu2 %v7385_v2  ;;  %2625 = vperm.xlu1 %4868, %v7402_v35   ;;  %v7405_v35 = vld [vmem:[#allocation56_spill] sm:$0xff] }
 0x1bb   : > { %2769 = vperm.xlu2 %4870, %v7403_v30   ;;  %v2468_v33 = vpop.permute.xlu1 %2467  ;;  %v7406_v62 = vsub.f32 1.0, %v7405_v35  ;;  %vm2507_vm15 = vcmp.eq.s32.totalorder %v5629_v49, %v6082_v6 }
 0x1bc   : > { %vm2502_vm6 = vcmp.eq.s32.totalorder %v5629_v49, %v2468_v33  ;;  %v2555_v31 = vpop.permute.xlu2 %2554 }
 0x1bd   : > { %v2598_v54 = vsel %vm2502_vm6, %v6007_v39, 0.0  ;;  %v7408_v39 = vsub.f32 1.0, %v7407_v14 }
 0x1be   : > { %v2614_v37 = vadd.f32 %v2598_v54, %v2422_v22  ;;  %v7409_v22 = vld [vmem:[#allocation7_spill] sm:$0xff]  ;;  %v7410_v54 = vld [vmem:[#allocation58_spill] sm:$0xff] }
 0x1c0   : > { %4613 = vmatmul.msk.f32.gmra.mxu0 %vm982_vm0, %v2614_v37 }
 0x1c1   : > { %2697 = vperm.xlu0 %4869, %v7404_v48  }
 0x1c2   : > { %v6094_v2 = vpop.permute.xlu0 %2309  ;;  %2689 = vperm.xlu1 %4868, %v7406_v62  }
 0x1c3   : > { %2833 = vperm.xlu2 %4870, %v7405_v35   ;;  %v2295_v24 = vpop.permute.xlu1 %2294  ;;  %vm2332_vm3 = vcmp.eq.s32.totalorder %v5629_v49, %v6094_v2  ;;  %v899_v2 = vld [vmem:[%s7127_s10 + $0x28] sm:$0xff] }
 0x1c4   : > { %v2384_v30 = vpop.permute.xlu2 %2383  ;;  %vm2327_vm7 = vcmp.eq.s32.totalorder %v5629_v49, %v2295_v24 }
 0x1c5   : > { %v2423_v48 = vsel %vm2327_vm7, %v6023_v56, 0.0  ;;  %v7412_v56 = vsub.f32 1.0, %v7400_v25  ;;  %v7415_v25 = vsub.f32 1.0, %v7401_v19 }
 0x1c9   : > { %1555 = vperm.xlu0 %4869, %v7408_v39   ;;  %v7411_v39 = vld [vmem:[#allocation59_spill] sm:$0xff] }
 0x1ca   : > { %v6102_v33 = vpop.permute.xlu0 %2574  ;;  %1691 = vperm.xlu1 %4868, %v7409_v22   ;;  %v2600_v22 = vsel %vm2504_vm10, %v2555_v31, 0.0 }
 0x1cb   : > { %2628 = vperm.xlu2 %4870, %v7410_v54   ;;  %v2550_v37 = vpop.permute.xlu1 %2549 }
 0x1cc   : > { %v2599_v62 = vsel %vm2503_vm8, %v2550_v37, 0.0  ;;  %v2480_v35 = vpop.permute.xlu2 %2479  ;;  %v7413_v37 = vld [vmem:[#allocation28_spill] sm:$0xff] }
 0x1cd   : > { %v2615_v63 = vadd.f32 %v2599_v62, %v2423_v48  ;;  %v956_v62 = vld [vmem:[%s5356_s5 + $0x48] sm:$0xff]  ;;  %vm2506_vm14 = vcmp.eq.s32.totalorder %v5629_v49, %v2480_v35  ;;  %v908_v35 = vld [vmem:[%s7127_s10 + $0x70] sm:$0xff] }
 0x1cf   : > { %4614 = vmatmul.msk.f32.gmra.mxu0 %vm982_vm0, %v2615_v63  ;;  %v955_v63 = vld [vmem:[%s5356_s5 + $0x40] sm:$0xff] }
 0x1d0   : > { %4597 = vmatmul.msk.f32.gmra.mxu3 %vm1976_vm2, %v955_v63  ;;  %v909_v63 = vld [vmem:[%s7127_s10 + $0x78] sm:$0xff] }
 0x1d1   : > { %2778 = vperm.xlu0 %4869, %v5685_v45   ;;  %1911 = vmatpush.msra.mxu2 %v909_v63 }
 0x1d2   : > { %v6112_v24 = vpop.permute.xlu0 %2403  ;;  %2772 = vperm.xlu1 %4868, %v7411_v39   ;;  %v2425_v39 = vsel %vm2329_vm11, %v2384_v30, 0.0  ;;  %v957_v30 = vld [vmem:[%s5356_s5 + $0x50] sm:$0xff]  ;;  %3057 = vmatpush.msrb.mxu1 %v909_v63  ;;  %v902_v63 = vld [vmem:[%s7127_s10 + $0x40] sm:$0xff] }
 0x1d3   : > { %2693 = vperm.xlu2 %4870, %v7412_v56   ;;  %v2379_v5 = vpop.permute.xlu1 %2378  ;;  %1912 = vmatpush.msra.mxu2 %v908_v35 }
 0x1d4   : > { %v2424_v57 = vsel %vm2328_vm9, %v2379_v5, 0.0  ;;  %v6120_v54 = vpop.permute.xlu2 %2306  ;;  %3058 = vmatpush.msrb.mxu1 %v908_v35  ;;  %v901_v35 = vld [vmem:[%s7127_s10 + $0x38] sm:$0xff] }
 0x1d5   : > { %v2616_v45 = vadd.f32 %v2600_v22, %v2424_v57  ;;  %v7416_v22 = vld [vmem:[#allocation48_spill] sm:$0xff]  ;;  %vm2331_vm1 = vcmp.eq.s32.totalorder %v5629_v49, %v6120_v54 }
 0x1d6   : > { %v904_v54 = vld [vmem:[%s7127_s10 + $0x50] sm:$0xff] }
 0x1d7   : > { %4615 = vmatmul.msk.f32.gmra.mxu0 %vm982_vm0, %v2616_v45 }
 0x1d8   : > { %4598 = vmatmul.msk.f32.gmra.mxu3 %vm1976_vm2, %v956_v62  ;;  %v906_v62 = vld [vmem:[%s7127_s10 + $0x60] sm:$0xff] }
 0x1d9   : > { %1635 = vperm.xlu0 %4869, %v7413_v37  }
 0x1da   : > { %v6126_v58 = vpop.permute.xlu0 %2491  ;;  %1629 = vperm.xlu1 %4868, %v7414_v12  }
 0x1db   : > { %1551 = vperm.xlu2 %4870, %v7415_v25   ;;  %v2477_v48 = vpop.permute.xlu1 %2476  ;;  %v958_v25 = vld [vmem:[%s5356_s5 + $0x58] sm:$0xff]  ;;  %vm2510_vm7 = vcmp.eq.s32.totalorder %v5629_v49, %v6126_v58 }
 0x1dc   : > { %vm2505_vm12 = vcmp.eq.s32.totalorder %v5629_v49, %v2477_v48  ;;  %v2570_v31 = vpop.permute.xlu2 %2569  ;;  %v907_v48 = vld [vmem:[%s7127_s10 + $0x68] sm:$0xff] }
 0x1dd   : > { %v2601_v56 = vsel %vm2505_vm12, %v6063_v13, 0.0  ;;  %1913 = vmatpush.msra.mxu2 %v907_v48  ;;  %3059 = vmatpush.msrb.mxu1 %v907_v48 }
 0x1de   : > { %v2617_v5 = vadd.f32 %v2601_v56, %v2425_v39  ;;  %v7419_v56 = vld [vmem:[#allocation51_spill] sm:$0xff] }
 0x1df   : > { %1914 = vmatpush.msra.mxu2 %v906_v62  ;;  %3060 = vmatpush.msrb.mxu1 %v906_v62  ;;  %v960_v62 = vld [vmem:[%s5356_s5 + $0x68] sm:$0xff] }
 0x1e0   : > { %4616 = vmatmul.msk.f32.gmra.mxu0 %vm982_vm0, %v2617_v5  ;;  %4599 = vmatmul.msk.f32.gmra.mxu3 %vm1976_vm2, %v957_v30 }
 0x1e1   : > { %2637 = vperm.xlu0 %4869, %v5706_v55  }
 0x1e2   : > { %v6139_v19 = vpop.permute.xlu0 %2589  ;;  %2631 = vperm.xlu1 %4868, %v5503_v32   ;;  %v7417_v32 = vld [vmem:[#allocation24_spill] sm:$0xff] }
 0x1e3   : > { %2775 = vperm.xlu2 %4870, %v7416_v22   ;;  %v2304_v8 = vpop.permute.xlu1 %2303  ;;  %v905_v22 = vld [vmem:[%s7127_s10 + $0x58] sm:$0xff] }
 0x1e4   : > { %v6143_v57 = vpop.permute.xlu2 %2398  ;;  %vm2330_vm13 = vcmp.eq.s32.totalorder %v5629_v49, %v2304_v8  ;;  %v2603_v8 = vsel %vm2507_vm15, %v2570_v31, 0.0  ;;  %1915 = vmatpush.msra.mxu2 %v905_v22  ;;  %3061 = vmatpush.msrb.mxu1 %v905_v22  ;;  %v7420_v31 = vsub.f32 1.0, %v5763_v26  ;;  %v900_v22 = vld [vmem:[%s7127_s10 + $0x30] sm:$0xff] }
 0x1e5   : > { %v2426_v45 = vsel %vm2330_vm13, %v6072_v3, 0.0  ;;  %v7418_v3 = vld [vmem:[#allocation13_spill] sm:$0xff] }
 0x1e6   : > { %1916 = vmatpush.msra.mxu2 %v904_v54  ;;  %3062 = vmatpush.msrb.mxu1 %v904_v54 }
 0x1e8   : > { %4600 = vmatmul.msk.f32.gmra.mxu3 %vm1976_vm2, %v958_v25 }
 0x1e9   : > { %2849 = vperm.xlu0 %4869, %v5554_v18  }
 0x1ea   : > { %2841 = vperm.xlu1 %4868, %v5649_v28  }
 0x1eb   : > { %v6151_v55 = vpop.permute.xlu0 %1485  ;;  %1632 = vperm.xlu2 %4870, %v7417_v32   ;;  %v2565_v13 = vpop.permute.xlu1 %2564  ;;  %v959_v32 = vld [vmem:[%s5356_s5 + $0x60] sm:$0xff] }
 0x1ec   : > { %v2602_v37 = vsel %vm2506_vm14, %v2565_v13, 0.0  ;;  %v6158_v12 = vpop.permute.xlu2 %2488  ;;  %v903_v13 = vld [vmem:[%s7127_s10 + $0x48] sm:$0xff] }
 0x1ed   : > { %v2618_v28 = vadd.f32 %v2602_v37, %v2426_v45  ;;  %1917 = vmatpush.msra.mxu2 %v903_v13  ;;  %3063 = vmatpush.msrb.mxu1 %v903_v13  ;;  %v7421_v45 = vld [vmem:[#allocation53_spill] sm:$0xff]  ;;  %vm2509_vm6 = vcmp.eq.s32.totalorder %v5629_v49, %v6158_v12  ;;  %v7429_v12 = vld [vmem:[#allocation26_spill] sm:$0xff] }
 0x1ee   : > { %v7422_v37 = vsub.f32 1.0, %v7421_v45 }
 0x1ef   : > { %4617 = vmatmul.msk.f32.gmra.mxu0 %vm982_vm0, %v2618_v28  ;;  %1918 = vmatpush.msra.mxu2 %v902_v63 }
 0x1f0   : > { %4601 = vmatmul.msk.f32.gmra.mxu3 %vm1976_vm2, %v959_v32  ;;  %3064 = vmatpush.msrb.mxu1 %v902_v63  ;;  %v7425_v32 = vld [vmem:[#allocation8_spill] sm:$0xff] }
 0x1f1   : > { %1707 = vperm.xlu0 %4869, %v7418_v3   ;;  %1919 = vmatpush.msra.mxu2 %v901_v35  ;;  %v961_v63 = vld [vmem:[%s5356_s5 + $0x70] sm:$0xff] }
 0x1f2   : > { %1699 = vperm.xlu1 %4868, %v7407_v14   ;;  %3065 = vmatpush.msrb.mxu1 %v901_v35  ;;  %v894_v35 = vld [vmem:[%s7127_s10] sm:$0xff] }
 0x1f3   : > { %v6178_v39 = vpop.permute.xlu0 %1500  ;;  %2634 = vperm.xlu2 %4870, %v7419_v56   ;;  %v2394_v5 = vpop.permute.xlu1 %2393  ;;  %v2428_v56 = vsel %vm2332_vm3, %v6143_v57, 0.0  ;;  %1920 = vmatpush.msra.mxu2 %v900_v22  ;;  %v7423_v57 = vld [vmem:[#allocation12_spill] sm:$0xff] }
 0x1f4   : > { %v2427_v30 = vsel %vm2331_vm1, %v2394_v5, 0.0  ;;  %v6184_v14 = vpop.permute.xlu2 %2315  ;;  %3066 = vmatpush.msrb.mxu1 %v900_v22  ;;  %v962_v22 = vld [vmem:[%s5356_s5 + $0x78] sm:$0xff] }
 0x1f5   : > { %v2619_v6 = vadd.f32 %v2603_v8, %v2427_v30  ;;  %1921 = vmatpush.msra.mxu2 %v899_v2  ;;  %v898_v30 = vld [vmem:[%s7127_s10 + $0x20] sm:$0xff]  ;;  %vm2334_vm8 = vcmp.eq.s32.totalorder %v5629_v49, %v6184_v14  ;;  %v7431_v14 = vld [vmem:[#allocation57_spill] sm:$0xff] }
 0x1f6   : > { %3067 = vmatpush.msrb.mxu1 %v899_v2 }
 0x1f7   : > { %4618 = vmatmul.msk.f32.gmra.mxu0 %vm982_vm0, %v2619_v6  ;;  %v7426_v6 = vsub.f32 1.0, %v7425_v32  ;;  %1922 = vmatpush.msra.mxu2 %v898_v30 }
 0x1f8   : > { %4602 = vmatmul.msk.f32.gmra.mxu3 %vm1976_vm2, %v960_v62  ;;  %3068 = vmatpush.msrb.mxu1 %v898_v30 }
 0x1f9   : > { %2709 = vperm.xlu0 %4869, %v7420_v31   ;;  %v897_v31 = vld [vmem:[%s7127_s10 + $0x18] sm:$0xff] }
 0x1fa   : > { %2701 = vperm.xlu1 %4868, %v7422_v37   ;;  %1923 = vmatpush.msra.mxu2 %v897_v31  ;;  %v896_v37 = vld [vmem:[%s7127_s10 + $0x10] sm:$0xff] }
 0x1fb   : > { %v6202_v25 = vpop.permute.xlu0 %1509  ;;  %2845 = vperm.xlu2 %4870, %v7421_v45   ;;  %v2486_v28 = vpop.permute.xlu1 %2485  ;;  %3069 = vmatpush.msrb.mxu1 %v897_v31 }
 0x1fc   : > { %vm2508_vm4 = vcmp.eq.s32.totalorder %v5629_v49, %v2486_v28  ;;  %v2585_v48 = vpop.permute.xlu2 %2584  ;;  %1924 = vmatpush.msra.mxu2 %v896_v37  ;;  %v895_v28 = vld [vmem:[%s7127_s10 + $0x8] sm:$0xff] }
 0x1fd   : > { %v2604_v5 = vsel %vm2508_vm4, %v6102_v33, 0.0  ;;  %v7424_v33 = vsub.f32 1.0, %v7423_v57  ;;  %3070 = vmatpush.msrb.mxu1 %v896_v37 }
 0x1fe   : > { %v2620_v8 = vadd.f32 %v2604_v5, %v2428_v56  ;;  %1925 = vmatpush.msra.mxu2 %v895_v28  ;;  %v7427_v56 = vsub.f32 1.0, %v5554_v18 }
 0x1ff   : > { %3071 = vmatpush.msrb.mxu1 %v895_v28 }
 0x200   : > { %4619 = vmatmul.msk.f32.gmra.mxu0 %vm982_vm0, %v2620_v8  ;;  %4603 = vmatmul.msk.f32.gmra.mxu3 %vm1976_vm2, %v961_v63 }
 0x201   : > { %1567 = vperm.xlu0 %4869, %v7424_v33   ;;  %1926 = vmatpush.msra.mxu2 %v894_v35 }
 0x202   : > { %1559 = vperm.xlu1 %4868, %v7426_v6   ;;  %3072 = vmatpush.msrb.mxu1 %v894_v35  ;;  %v2606_v6 = vsel %vm2510_vm7, %v2585_v48, 0.0 }
 0x203   : > { %v6229_v54 = vpop.permute.xlu0 %1518  ;;  %1703 = vperm.xlu2 %4870, %v7425_v32   ;;  %v2313_v13 = vpop.permute.xlu1 %2312  ;;  %v963_v32 = vld [vmem:[%s5356_s5 + $0x80] sm:$0xff] }
 0x204   : > { %v2495_v45 = vpop.permute.xlu2 %2494  ;;  %vm2333_vm5 = vcmp.eq.s32.totalorder %v5629_v49, %v2313_v13 }
 0x205   : > { %vm2511_vm9 = vcmp.eq.s32.totalorder %v5629_v49, %v2495_v45 }
 0x206   : > { %v2607_v48 = vsel %vm2511_vm9, %v6139_v19, 0.0 }
 0x208   : > { %4604 = vmatmul.msk.f32.gmra.mxu3 %vm1976_vm2, %v962_v22 }
 0x209   : > { %2787 = vperm.xlu0 %4869, %v5813_v11   ;;  %v2429_v11 = vsel %vm2333_vm5, %v6112_v24, 0.0  ;;  %v7430_v24 = vsub.f32 1.0, %v7418_v3 }
 0x20a   : > { %2781 = vperm.xlu1 %4868, %v5716_v1   ;;  %v7428_v1 = vld [vmem:[#allocation31_spill] sm:$0xff] }
 0x20b   : > { %v1544_v62 = vpop.permute.xlu0 %1543  ;;  %2705 = vperm.xlu2 %4870, %v7427_v56   ;;  %v2580_v5 = vpop.permute.xlu1 %2579  ;;  %v6275_v56 = vand.u32 15, %v5629_v49 }
 0x20c   : > { %v2605_v8 = vsel %vm2509_vm6, %v2580_v5, 0.0  ;;  %v2414_v2 = vpop.permute.xlu2 %2413 }
 0x20d   : > { %v2621_v33 = vadd.f32 %v2605_v8, %v2429_v11  ;;  %vm1526_vm11 = vcmp.eq.s32.totalorder %v6275_v56, %v5803_v47  ;;  %v1847_v8 = vpop.f32.mrf.mxu1  ;;  %vm1527_vm14 = vcmp.eq.s32.totalorder %v6275_v56, %v5709_v41  ;;  %vm1528_vm4 = vcmp.eq.s32.totalorder %v6275_v56, %v6151_v55 }
 0x20e   : > { %v1606_v45 = vsel %vm1526_vm11, %v1544_v62, 0.0  ;;  %v7434_v62 = vsub.f32 1.0, %v5903_v27 }
 0x20f   : > { %4620 = vmatmul.msk.f32.gmra.mxu0 %vm982_vm0, %v2621_v33  ;;  %v7433_v33 = vld [vmem:[#allocation16_spill] sm:$0xff] }
 0x210   : > { %4624 = vmatmul.msk.f32.vlgmr.msrb.gmra.mxu3 %vm1976_vm2, %v963_v32 }
 0x211   : > { %1644 = vperm.xlu0 %4869, %v7428_v1  }
 0x212   : > { %1638 = vperm.xlu1 %4868, %v7429_v12   ;;  %v7435_v12 = vsub.f32 1.0, %v5626_v29 }
 0x213   : > { %v1624_v18 = vpop.permute.xlu0 %1623  ;;  %1563 = vperm.xlu2 %4870, %v7430_v24   ;;  %v2409_v30 = vpop.permute.xlu1 %2408 }
 0x214   : > { %v2430_v13 = vsel %vm2334_vm8, %v2409_v30, 0.0  ;;  %vm1670_vm12 = vcmp.eq.s32.totalorder %v6275_v56, %v1624_v18  ;;  %vm1529_vm8 = vcmp.eq.s32.totalorder %v6275_v56, %v5836_v23 }
 0x215   : > { %v2622_v31 = vadd.f32 %v2606_v6, %v2430_v13  ;;  %v2770_v63 = vpop.permute.xlu2 %2769  ;;  %v2993_v6 = vpop.f32.mrf.mxu0 }
 0x217   : > { %4621 = vmatmul.msk.f32.gmra.mxu0 %vm982_vm0, %v2622_v31  ;;  %v7436_v31 = vld [vmem:[#allocation15_spill] sm:$0xff] }
 0x219   : > { %2646 = vperm.xlu0 %4869, %v5840_v7   ;;  %v7432_v7 = vld [vmem:[#allocation27_spill] sm:$0xff] }
 0x21a   : > { %2640 = vperm.xlu1 %4868, %v5574_v44  }
 0x21b   : > { %v1627_v58 = vpop.permute.xlu0 %1626  ;;  %2784 = vperm.xlu2 %4870, %v7431_v14   ;;  %v2319_v3 = vpop.permute.xlu1 %2318  ;;  %v7437_v14 = vsub.f32 1.0, %v7436_v31 }
 0x21c   : > { %vm2335_vm10 = vcmp.eq.s32.totalorder %v5629_v49, %v2319_v3  ;;  %v964_v49 = vld [vmem:[%s5356_s5 + $0x88] sm:$0xff]  ;;  %vm1671_vm15 = vcmp.eq.s32.totalorder %v6275_v56, %v1627_v58  ;;  %v7440_v58 = vsub.f32 1.0, %v5637_v36 }
 0x21d   : > { %v2431_v37 = vsel %vm2335_vm10, %v2414_v2, 0.0  ;;  %v2834_v28 = vpop.permute.xlu2 %2833  ;;  %4625 = vmatmul.msk.f32.gmra.mxu3 %vm1976_vm2, %v964_v49 }
 0x21e   : > { %v2623_v35 = vadd.f32 %v2607_v48, %v2431_v37 }
 0x220   : > { %4622 = vmatmul.msk.f32.gmra.mxu0 %vm982_vm0, %v2623_v35  ;;  %vm2816_vm0 = vcmp.eq.s32.totalorder %v6275_v56, %v2770_v63  ;;  %v7438_v63 = vld [vmem:[#allocation11_spill] sm:$0xff] }
 0x221   : > { %2861 = vperm.xlu0 %4869, %v5637_v36   ;;  %v2896_v24 = vsel %vm2816_vm0, %v2834_v28, 0.0  ;;  %v7439_v3 = vsub.f32 1.0, %v7438_v63  ;;  %v1607_v28 = vsel %vm1527_vm14, %v5976_v51, 0.0  ;;  %v966_v36 = vld [vmem:[%s5356_s5 + $0x98] sm:$0xff]  ;;  %vm1530_vm0 = vcmp.eq.s32.totalorder %v6275_v56, %v5735_v50 }
 0x222   : > { %2853 = vperm.xlu1 %4868, %v5763_v26   ;;  %v7453_v50 = vsub.f32 1.0, %v5745_v61 }
 0x223   : > { %v2838_v44 = vpop.permute.xlu0 %2837  ;;  %1641 = vperm.xlu2 %4870, %v7432_v7  }
 0x224   : > { %v1688_v19 = vpop.permute.xlu1 %1687 }
 0x225   : > { %v1750_v5 = vsel %vm1670_vm12, %v1688_v19, 0.0  ;;  %v2629_v22 = vpop.permute.xlu2 %2628 }
 0x226   : > { %v1766_v11 = vadd.f32 %v1750_v5, %v1606_v45  ;;  %v1850_v45 = vpop.f32.mrf.mxu1  ;;  %vm2673_vm1 = vcmp.eq.s32.totalorder %v6275_v56, %v2629_v22 }
 0x228   : > { %v1895_v2 = vmul.f32 %v1847_v8, %v1766_v11 }
 0x229   : > { %1719 = vperm.xlu0 %4869, %v7433_v33  }
 0x22a   : > { %1711 = vperm.xlu1 %4868, %v7423_v57   ;;  %1927 = vmatmul.f32.vlgmr.msra.gmra.mxu2 %v1895_v2 }
 0x22b   : > { %v1696_v26 = vpop.permute.xlu0 %1695  ;;  %2643 = vperm.xlu2 %4870, %v5609_v60  }
 0x22c   : > { %v2626_v47 = vpop.permute.xlu1 %2625 }
 0x22d   : > { %v2694_v1 = vpop.permute.xlu2 %2693  ;;  %vm2672_vm13 = vcmp.eq.s32.totalorder %v6275_v56, %v2626_v47  ;;  %v2996_v47 = vpop.f32.mrf.mxu0 }
 0x22e   : > { %v2753_v11 = vsel %vm2673_vm1, %v2694_v1, 0.0 }
 0x231   : > { %2721 = vperm.xlu0 %4869, %v7434_v62   ;;  %v7442_v62 = vld [vmem:[#allocation29_spill] sm:$0xff] }
 0x232   : > { %2713 = vperm.xlu1 %4868, %v7435_v12   ;;  %v7443_v12 = vsub.f32 1.0, %v7433_v33 }
 0x233   : > { %v6294_v18 = vpop.permute.xlu0 %2697  ;;  %2857 = vperm.xlu2 %4870, %v5626_v29   ;;  %v965_v29 = vld [vmem:[%s5356_s5 + $0x90] sm:$0xff] }
 0x234   : > { %v2690_v57 = vpop.permute.xlu1 %2689  ;;  %4626 = vmatmul.msk.f32.gmra.mxu3 %vm1976_vm2, %v965_v29 }
 0x235   : > { %v2752_v60 = vsel %vm2672_vm13, %v2690_v57, 0.0  ;;  %v1552_v30 = vpop.permute.xlu2 %1551 }
 0x236   : > { %v2912_v32 = vadd.f32 %v2896_v24, %v2752_v60  ;;  %v1608_v1 = vsel %vm1528_vm4, %v1552_v30, 0.0  ;;  %v6341_v30 = vpop.f32.mrf.mxu3 }
 0x238   : > { %v3041_v13 = vmul.f32 %v2993_v6, %v2912_v32  ;;  %v1853_v32 = vpop.f32.mrf.mxu1 }
 0x239   : > { %1579 = vperm.xlu0 %4869, %v7437_v14  }
 0x23a   : > { %1571 = vperm.xlu1 %4868, %v7439_v3   ;;  %3073 = vmatmul.f32.vlgmr.msrb.gmra.mxu1 %v3041_v13  ;;  %v7444_v13 = vld [vmem:[#allocation64_spill] sm:$0xff] }
 0x23b   : > { %v6302_v48 = vpop.permute.xlu0 %1555  ;;  %1715 = vperm.xlu2 %4870, %v7438_v63  }
 0x23c   : > { %v1692_v37 = vpop.permute.xlu1 %1691  ;;  %4627 = vmatmul.msk.f32.gmra.mxu3 %vm1976_vm2, %v966_v36 }
 0x23d   : > { %v1751_v35 = vsel %vm1671_vm15, %v1692_v37, 0.0  ;;  %v2776_v7 = vpop.permute.xlu2 %2775  ;;  %v967_v37 = vld [vmem:[%s5356_s5 + $0xa0] sm:$0xff]  ;;  %vm1531_vm15 = vcmp.eq.s32.totalorder %v6275_v56, %v5872_v15 }
 0x23e   : > { %v1767_v19 = vadd.f32 %v1751_v35, %v1607_v28  ;;  %vm2818_vm7 = vcmp.eq.s32.totalorder %v6275_v56, %v2776_v7  ;;  %v2999_v35 = vpop.f32.mrf.mxu0  ;;  %v1609_v7 = vsel %vm1529_vm8, %v6302_v48, 0.0 }
 0x240   : > { %v1896_v5 = vmul.f32 %v1850_v45, %v1767_v19 }
 0x241   : > { %2796 = vperm.xlu0 %4869, %v5946_v40   ;;  %v7441_v40 = vld [vmem:[#allocation35_spill] sm:$0xff] }
 0x242   : > { %2790 = vperm.xlu1 %4868, %v5852_v17   ;;  %1930 = vmatmul.f32.gmra.mxu2 %v1896_v5 }
 0x243   : > { %v6314_v41 = vpop.permute.xlu0 %2778  ;;  %2717 = vperm.xlu2 %4870, %v7440_v58  }
 0x244   : > { %v2773_v49 = vpop.permute.xlu1 %2772  ;;  %4628 = vmatmul.msk.f32.gmra.mxu3 %vm1976_vm2, %v967_v37  ;;  %vm2819_vm10 = vcmp.eq.s32.totalorder %v6275_v56, %v6314_v41  ;;  %v968_v41 = vld [vmem:[%s5356_s5 + $0xa8] sm:$0xff] }
 0x245   : > { %vm2817_vm3 = vcmp.eq.s32.totalorder %v6275_v56, %v2773_v49  ;;  %v1633_v51 = vpop.permute.xlu2 %1632 }
 0x246   : > { %v2897_v8 = vsel %vm2817_vm3, %v2838_v44, 0.0  ;;  %vm1673_vm9 = vcmp.eq.s32.totalorder %v6275_v56, %v1633_v51  ;;  %v6365_v51 = vpop.f32.mrf.mxu2 }
 0x247   : > { %v2913_v2 = vadd.f32 %v2897_v8, %v2753_v11  ;;  %v1856_v8 = vpop.f32.mrf.mxu1 }
 0x249   : > { %1653 = vperm.xlu0 %4869, %v7441_v40   ;;  %v3042_v17 = vmul.f32 %v2996_v47, %v2913_v2  ;;  %v7447_v2 = vsub.f32 1.0, %v5984_v34 }
 0x24a   : > { %1647 = vperm.xlu1 %4868, %v7442_v62  }
 0x24b   : > { %v6321_v22 = vpop.permute.xlu0 %1635  ;;  %1575 = vperm.xlu2 %4870, %v7443_v12   ;;  %3076 = vmatmul.f32.gmra.mxu1 %v3042_v17  ;;  %v3002_v12 = vpop.f32.mrf.mxu0 }
 0x24c   : > { %v1630_v57 = vpop.permute.xlu1 %1629  ;;  %vm1674_vm12 = vcmp.eq.s32.totalorder %v6275_v56, %v6321_v22  ;;  %4629 = vmatmul.msk.f32.gmra.mxu3 %vm1976_vm2, %v968_v41 }
 0x24d   : > { %vm1672_vm5 = vcmp.eq.s32.totalorder %v6275_v56, %v1630_v57  ;;  %v2635_v44 = vpop.permute.xlu2 %2634 }
 0x24e   : > { %v1752_v24 = vsel %vm1672_vm5, %v1696_v26, 0.0  ;;  %vm2675_vm11 = vcmp.eq.s32.totalorder %v6275_v56, %v2635_v44 }
 0x24f   : > { %v1768_v60 = vadd.f32 %v1752_v24, %v1608_v1  ;;  %v7449_v1 = vld [vmem:[#allocation18_spill] sm:$0xff] }
 0x250   : > { %v7450_v24 = vsub.f32 1.0, %v7449_v1 }
 0x251   : > { %2655 = vperm.xlu0 %4869, %v5961_v4   ;;  %v1897_v6 = vmul.f32 %v1853_v32, %v1768_v60  ;;  %v7445_v4 = vld [vmem:[#allocation30_spill] sm:$0xff] }
 0x252   : > { %2649 = vperm.xlu1 %4868, %v5668_v46  }
 0x253   : > { %v6332_v33 = vpop.permute.xlu0 %2637  ;;  %2793 = vperm.xlu2 %4870, %v7444_v13   ;;  %1933 = vmatmul.f32.gmra.mxu2 %v1897_v6  ;;  %v6356_v49 = vpop.f32.mrf.mxu3 }
 0x254   : > { %v2632_v14 = vpop.permute.xlu1 %2631  ;;  %vm2676_vm13 = vcmp.eq.s32.totalorder %v6275_v56, %v6332_v33 }
 0x255   : > { %v2846_v55 = vpop.permute.xlu2 %2845  ;;  %vm2674_vm6 = vcmp.eq.s32.totalorder %v6275_v56, %v2632_v14 }
 0x256   : > { %v2754_v63 = vsel %vm2674_vm6, %v6294_v18, 0.0  ;;  %v2899_v47 = vsel %vm2819_vm10, %v2846_v55, 0.0  ;;  %v6385_v55 = vpop.f32.mrf.mxu2 }
 0x259   : > { %2873 = vperm.xlu0 %4869, %v5745_v61  }
 0x25a   : > { %2865 = vperm.xlu1 %4868, %v5903_v27   ;;  %v7446_v27 = vld [vmem:[#allocation19_spill] sm:$0xff] }
 0x25b   : > { %v6338_v26 = vpop.permute.xlu0 %2849  ;;  %1650 = vperm.xlu2 %4870, %v7445_v4   ;;  %v6370_v36 = vpop.f32.mrf.mxu3  ;;  %v7456_v33 = vsub.f32 1.0, %v7446_v27 }
 0x25c   : > { %v2842_v46 = vpop.permute.xlu1 %2841 }
 0x25d   : > { %v2898_v3 = vsel %vm2818_vm7, %v2842_v46, 0.0  ;;  %v1704_v29 = vpop.permute.xlu2 %1703  ;;  %v1859_v46 = vpop.f32.mrf.mxu1 }
 0x25e   : > { %v2914_v28 = vadd.f32 %v2898_v3, %v2754_v63  ;;  %v1754_v6 = vsel %vm1674_vm12, %v1704_v29, 0.0 }
 0x260   : > { %v3043_v19 = vmul.f32 %v2999_v35, %v2914_v28 }
 0x261   : > { %1731 = vperm.xlu0 %4869, %v7446_v27  }
 0x262   : > { %1723 = vperm.xlu1 %4868, %v7436_v31   ;;  %3079 = vmatmul.f32.gmra.mxu1 %v3043_v19  ;;  %v3005_v19 = vpop.f32.mrf.mxu0 }
 0x263   : > { %v6349_v45 = vpop.permute.xlu0 %1707  ;;  %2652 = vperm.xlu2 %4870, %v5711_v16   ;;  %v7448_v16 = vsub.f32 1.0, %v5738_v52  ;;  %v6388_v3 = vpop.f32.mrf.mxu3 }
 0x264   : > { %v1700_v18 = vpop.permute.xlu1 %1699 }
 0x265   : > { %v1753_v5 = vsel %vm1673_vm9, %v1700_v18, 0.0  ;;  %v2706_v58 = vpop.permute.xlu2 %2705  ;;  %v7454_v18 = vld [vmem:[#allocation38_spill] sm:$0xff]  ;;  %v1862_v27 = vpop.f32.mrf.mxu1  ;;  %vm1533_vm9 = vcmp.eq.s32.totalorder %v6275_v56, %v6178_v39 }
 0x266   : > { %v1769_v11 = vadd.f32 %v1753_v5, %v1609_v7  ;;  %v7455_v7 = vld [vmem:[#allocation33_spill] sm:$0xff] }
 0x268   : > { %v1898_v31 = vmul.f32 %v1856_v8, %v1769_v11 }
 0x269   : > { %2733 = vperm.xlu0 %4869, %v7447_v2  }
 0x26a   : > { %2725 = vperm.xlu1 %4868, %v7448_v16   ;;  %1936 = vmatmul.f32.gmra.mxu2 %v1898_v31  ;;  %v3008_v41 = vpop.f32.mrf.mxu0 }
 0x26b   : > { %v6362_v23 = vpop.permute.xlu0 %2709  ;;  %2869 = vperm.xlu2 %4870, %v5738_v52   ;;  %v7451_v52 = vld [vmem:[#allocation14_spill] sm:$0xff]  ;;  %v6409_v11 = vpop.f32.mrf.mxu3 }
 0x26c   : > { %v2702_v48 = vpop.permute.xlu1 %2701  ;;  %v7452_v60 = vsub.f32 1.0, %v7451_v52 }
 0x26d   : > { %v2755_v40 = vsel %vm2675_vm11, %v2702_v48, 0.0  ;;  %v1564_v17 = vpop.permute.xlu2 %1563 }
 0x26e   : > { %v2915_v62 = vadd.f32 %v2899_v47, %v2755_v40  ;;  %v1611_v31 = vsel %vm1531_vm15, %v1564_v17, 0.0  ;;  %vm3438_vm15 = vcmask 261120  }
 0x270   : > { %v3044_v57 = vmul.f32 %v3002_v12, %v2915_v62 }
 0x271   : > { %1591 = vperm.xlu0 %4869, %v7450_v24  }
 0x272   : > { %1583 = vperm.xlu1 %4868, %v7452_v60   ;;  %3082 = vmatmul.f32.gmra.mxu1 %v3044_v57 }
 0x273   : > { %v6376_v32 = vpop.permute.xlu0 %1567  ;;  %1727 = vperm.xlu2 %4870, %v7451_v52   ;;  %v6426_v17 = vpop.f32.mrf.mxu3  ;;  %v970_v52 = vld [vmem:[%s5356_s5 + $0xb8] sm:$0xff] }
 0x274   : > { %v1560_v44 = vpop.permute.xlu1 %1559 }
 0x275   : > { %v1610_v13 = vsel %vm1530_vm0, %v1560_v44, 0.0  ;;  %v2785_v14 = vpop.permute.xlu2 %2784  ;;  %vm3369_vm0 = vcmask 1042432  }
 0x276   : > { %v1770_v4 = vadd.f32 %v1754_v6, %v1610_v13  ;;  %vm2821_vm4 = vcmp.eq.s32.totalorder %v6275_v56, %v2785_v14  ;;  %v7458_v6 = vld [vmem:[#allocation21_spill] sm:$0xff]  ;;  %v3317_v14 = vld [vmem:[%s7129_s12 + $0x10] sm:$0xff] }
 0x277   : > { %v3318_v13 = vld [vmem:[%s7129_s12 + $0x18] sm:$0xff] }
 0x278   : > { %v1899_v63 = vmul.f32 %v1859_v46, %v1770_v4  ;;  %3499 = vmatpush.msrb.mxu0 %v3318_v13  ;;  %v7459_v4 = vld [vmem:[#allocation68_spill] sm:$0xff] }
 0x279   : > { %2805 = vperm.xlu0 %4869, %v6001_v20   ;;  %v2756_v20 = vsel %vm2676_vm13, %v2706_v58, 0.0  ;;  %v969_v58 = vld [vmem:[%s5356_s5 + $0xb0] sm:$0xff]  ;;  %vm1532_vm5 = vcmp.eq.s32.totalorder %v6275_v56, %v7459_v4  ;;  %v6506_v4 = vld [vmem:[%s7128_s11] ss:$0 sm:$0xff] }
 0x27a   : > { %2799 = vperm.xlu1 %4868, %v5969_v43   ;;  %1939 = vmatmul.f32.gmra.mxu2 %v1899_v63  ;;  %v6401_v43 = vpop.f32.mrf.mxu2  ;;  %v1612_v63 = vsel %vm1532_vm5, %v6376_v32, 0.0  ;;  %v7460_v32 = vsub.f32 1.0, %v6036_v10 }
 0x27b   : > { %v6391_v22 = vpop.permute.xlu0 %2787  ;;  %2729 = vperm.xlu2 %4870, %v7453_v50   ;;  %4630 = vmatmul.msk.f32.gmra.mxu3 %vm1976_vm2, %v969_v58  ;;  %v6440_v44 = vpop.f32.mrf.mxu3 }
 0x27c   : > { %v2782_v29 = vpop.permute.xlu1 %2781  ;;  %3500 = vmatpush.msrb.mxu0 %v3317_v14  ;;  %vm2822_vm7 = vcmp.eq.s32.totalorder %v6275_v56, %v6391_v22  ;;  %v7464_v22 = vld [vmem:[#allocation17_spill] sm:$0xff] }
 0x27d   : > { %vm2820_vm14 = vcmp.eq.s32.totalorder %v6275_v56, %v2782_v29  ;;  %v6398_v37 = vpop.permute.xlu2 %1641 }
 0x27e   : > { %v2900_v28 = vsel %vm2820_vm14, %v6338_v26, 0.0  ;;  %vm1676_vm6 = vcmp.eq.s32.totalorder %v6275_v56, %v6398_v37  ;;  %v3315_v37 = vld [vmem:[%s7129_s12] sm:$0xff] }
 0x27f   : > { %v2916_v35 = vadd.f32 %v2900_v28, %v2756_v20 }
 0x281   : > { %1662 = vperm.xlu0 %4869, %v7454_v18   ;;  %v3045_v61 = vmul.f32 %v3005_v19, %v2916_v35  ;;  %v7461_v18 = vsub.f32 1.0, %v5877_v38 }
 0x282   : > { %1656 = vperm.xlu1 %4868, %v7455_v7   ;;  %v6420_v47 = vpop.f32.mrf.mxu2 }
 0x283   : > { %v6405_v5 = vpop.permute.xlu0 %1644  ;;  %1587 = vperm.xlu2 %4870, %v7456_v33   ;;  %3085 = vmatmul.f32.gmra.mxu1 %v3045_v61  ;;  %v6468_v19 = vpop.f32.mrf.mxu3 }
 0x284   : > { %v1639_v8 = vpop.permute.xlu1 %1638  ;;  %4631 = vmatmul.msk.f32.gmra.mxu3 %vm1976_vm2, %v970_v52  ;;  %vm1677_vm10 = vcmp.eq.s32.totalorder %v6275_v56, %v6405_v5  ;;  %v7467_v5 = vsub.f32 1.0, %v5892_v42 }
 0x285   : > { %vm1675_vm1 = vcmp.eq.s32.totalorder %v6275_v56, %v1639_v8  ;;  %v6416_v26 = vpop.permute.xlu2 %2643 }
 0x286   : > { %v1755_v2 = vsel %vm1675_vm1, %v6349_v45, 0.0  ;;  %vm2678_vm8 = vcmp.eq.s32.totalorder %v6275_v56, %v6416_v26 }
 0x287   : > { %v1771_v16 = vadd.f32 %v1755_v2, %v1611_v31  ;;  %v3011_v2 = vpop.f32.mrf.mxu0 }
 0x289   : > { %2664 = vperm.xlu0 %4869, %v6013_v21   ;;  %v1900_v48 = vmul.f32 %v1862_v27, %v1771_v16  ;;  %v7457_v21 = vld [vmem:[#allocation34_spill] sm:$0xff] }
 0x28a   : > { %2658 = vperm.xlu1 %4868, %v5788_v0   ;;  %v6432_v45 = vpop.f32.mrf.mxu2 }
 0x28b   : > { %v6423_v40 = vpop.permute.xlu0 %2646  ;;  %2802 = vperm.xlu2 %4870, %v5810_v53   ;;  %1942 = vmatmul.f32.gmra.mxu2 %v1900_v48  ;;  %v6486_v26 = vpop.f32.mrf.mxu3 }
 0x28c   : > { %v2641_v15 = vpop.permute.xlu1 %2640  ;;  %vm2679_vm11 = vcmp.eq.s32.totalorder %v6275_v56, %v6423_v40 }
 0x28d   : > { %v2858_v62 = vpop.permute.xlu2 %2857  ;;  %vm2677_vm3 = vcmp.eq.s32.totalorder %v6275_v56, %v2641_v15 }
 0x28e   : > { %v2757_v53 = vsel %vm2677_vm3, %v6362_v23, 0.0  ;;  %v1865_v23 = vpop.f32.mrf.mxu1  ;;  %v2902_v33 = vsel %vm2822_vm7, %v2858_v62, 0.0 }
 0x291   : > { %2885 = vperm.xlu0 %4869, %v5892_v42  }
 0x292   : > { %2877 = vperm.xlu1 %4868, %v5984_v34   ;;  %v6459_v20 = vpop.f32.mrf.mxu2 }
 0x293   : > { %1659 = vperm.xlu2 %4870, %v7457_v21   ;;  %v6436_v12 = vpop.permute.xlu0 %2861  ;;  %v7465_v21 = vsub.f32 1.0, %v7464_v22 }
 0x294   : > { %v2854_v0 = vpop.permute.xlu1 %2853 }
 0x295   : > { %v2901_v57 = vsel %vm2821_vm4, %v2854_v0, 0.0  ;;  %v1716_v24 = vpop.permute.xlu2 %1715  ;;  %v971_v0 = vld [vmem:[%s5356_s5 + $0xc0] sm:$0xff] }
 0x296   : > { %v2917_v60 = vadd.f32 %v2901_v57, %v2757_v53  ;;  %v1868_v7 = vpop.f32.mrf.mxu1  ;;  %v1757_v53 = vsel %vm1677_vm10, %v1716_v24, 0.0  ;;  %4632 = vmatmul.msk.f32.gmra.mxu3 %vm1976_vm2, %v971_v0  ;;  %v7468_v24 = vld [vmem:[#allocation62_spill] sm:$0xff] }
 0x298   : > { %v3046_v34 = vmul.f32 %v3008_v41, %v2917_v60 }
 0x299   : > { %1743 = vperm.xlu0 %4869, %v7458_v6  }
 0x29a   : > { %1735 = vperm.xlu1 %4868, %v7449_v1   ;;  %3088 = vmatmul.f32.gmra.mxu1 %v3046_v34  ;;  %v6477_v27 = vpop.f32.mrf.mxu2 }
 0x29b   : > { %2661 = vperm.xlu2 %4870, %v5846_v9   ;;  %v3316_v9 = vld [vmem:[%s7129_s12 + $0x8] sm:$0xff]  ;;  %v6461_v28 = vpop.permute.xlu0 %1719 }
 0x29c   : > { %v1712_v46 = vpop.permute.xlu1 %1711  ;;  %3501 = vmatpush.msrb.mxu0 %v3316_v9 }
 0x29d   : > { %v1756_v50 = vsel %vm1676_vm6, %v1712_v46, 0.0  ;;  %v2718_v1 = vpop.permute.xlu2 %2717 }
 0x29e   : > { %v1772_v29 = vadd.f32 %v1756_v50, %v1612_v63  ;;  %3502 = vmatpush.msrb.mxu0 %v3315_v37  ;;  %v1871_v41 = vpop.f32.mrf.mxu1  ;;  %v3187_v63 = vpop.f32.mrf.mxu3  ;;  %v2759_v50 = vsel %vm2679_vm11, %v2718_v1, 0.0  ;;  %v972_v1 = vld [vmem:[%s5356_s5 + $0xc8] sm:$0xff] }
 0x29f   : > { %v3014_v37 = vpop.f32.mrf.mxu0  ;;  %4633 = vmatmul.msk.f32.gmra.mxu3 %vm1976_vm2, %v972_v1 }
 0x2a0   : > { %v1901_v35 = vmul.f32 %v1865_v23, %v1772_v29  ;;  %v7466_v23 = vld [vmem:[#allocation32_spill] sm:$0xff] }
 0x2a1   : > { %2745 = vperm.xlu0 %4869, %v7460_v32  }
 0x2a2   : > { %2737 = vperm.xlu1 %4868, %v7461_v18   ;;  %1945 = vmatmul.f32.gmra.mxu2 %v1901_v35 }
 0x2a3   : > { %2881 = vperm.xlu2 %4870, %v5877_v38   ;;  %v6479_v48 = vpop.permute.xlu0 %2721  ;;  %v7462_v38 = vld [vmem:[#allocation20_spill] sm:$0xff] }
 0x2a4   : > { %v2714_v61 = vpop.permute.xlu1 %2713  ;;  %v7463_v15 = vsub.f32 1.0, %v7462_v38 }
 0x2a5   : > { %v2758_v58 = vsel %vm2678_vm8, %v2714_v61, 0.0  ;;  %v1576_v8 = vpop.permute.xlu2 %1575  ;;  %v7469_v61 = vmov 0   ;;  %vm1536_vm8 = vcmp.eq.s32.totalorder %v6275_v56, %v6202_v25 }
 0x2a6   : > { %v2918_v31 = vadd.f32 %v2902_v33, %v2758_v58  ;;  %v7471_v33 = vsub.f32 1.0, %v7458_v6 }
 0x2a8   : > { %v3047_v16 = vmul.f32 %v3011_v2, %v2918_v31 }
 0x2a9   : > { %1603 = vperm.xlu0 %4869, %v7463_v15  }
 0x2aa   : > { %1595 = vperm.xlu1 %4868, %v7465_v21   ;;  %3091 = vmatmul.f32.gmra.mxu1 %v3047_v16  ;;  %v7472_v16 = vld [vmem:[#allocation41_spill] sm:$0xff] }
 0x2ab   : > { %1739 = vperm.xlu2 %4870, %v7464_v22   ;;  %v6498_v39 = vpop.permute.xlu0 %1579  ;;  %vm1534_vm13 = vcmp.eq.s32.totalorder %v6275_v56, %v7472_v16 }
 0x2ac   : > { %v1572_v62 = vpop.permute.xlu1 %1571  ;;  %v1614_v22 = vsel %vm1534_vm13, %v1576_v8, 0.0  ;;  %v3552_v8 = vld [vmem:[%s7131_s14] sm:$0x7] }
 0x2ad   : > { %v1613_v57 = vsel %vm1533_vm9, %v1572_v62, 0.0  ;;  %v6493_v52 = vpop.permute.xlu2 %2793  ;;  %v1928_v13 = vpop.f32.mrf.mxu2  ;;  %4673 = vmatpush.msk.msra.mxu1 %vm3369_vm0, %v3552_v8 }
 0x2ae   : > { %v1773_v60 = vadd.f32 %v1757_v53, %v1613_v57  ;;  %v2047_v14 = vadd.f32 %v7468_v24, %v1928_v13  ;;  %v7473_v57 = vld [vmem:[#allocation43_spill] sm:$0xff]  ;;  %vm2824_vm3 = vcmp.eq.s32.totalorder %v6275_v56, %v6493_v52 }
 0x2af   : > { %v7477_v52 = vld [vmem:[#allocation39_spill] sm:$0xff] }
 0x2b0   : > { %v1902_v34 = vmul.f32 %v1868_v7, %v1773_v60  ;;  %v2097_v35 = vadd.f32 %v6506_v4, %v2047_v14  ;;  %v7470_v7 = vld [vmem:[#allocation36_spill] sm:$0xff]  ;;  %v3190_v14 = vpop.f32.mrf.mxu3 }
 0x2b1   : > { %2814 = vperm.xlu0 %4869, %v6058_v59   ;;  %v7474_v60 = vld [vmem:[#allocation52_spill] sm:$0xff] }
 0x2b2   : > { %2808 = vperm.xlu1 %4868, %v7466_v23   ;;  %1948 = vmatmul.f32.gmra.mxu2 %v1902_v34  ;;  %v2113_v58 = vmax.f32 %v2097_v35, 0.0 }
 0x2b3   : > { %2741 = vperm.xlu2 %4870, %v7467_v5   ;;  %v6528_v15 = vpop.permute.xlu0 %2796  ;;  %v7475_v5 = vld [vmem:[#allocation63_spill] sm:$0xff] }
 0x2b4   : > { %v2791_v46 = vpop.permute.xlu1 %2790  ;;  %vm2825_vm6 = vcmp.eq.s32.totalorder %v6275_v56, %v6528_v15 }
 0x2b5   : > { %vm2823_vm12 = vcmp.eq.s32.totalorder %v6275_v56, %v2791_v46  ;;  %v6511_v59 = vpop.permute.xlu2 %1650 }
 0x2b6   : > { %v2903_v42 = vsel %vm2823_vm12, %v6436_v12, 0.0  ;;  %v3319_v12 = vld [vmem:[%s7130_s13] sm:$0x7]  ;;  %vm1679_vm5 = vcmp.eq.s32.totalorder %v6275_v56, %v6511_v59 }
 0x2b7   : > { %v2919_v9 = vadd.f32 %v2903_v42, %v2759_v50  ;;  %v3074_v29 = vpop.f32.mrf.mxu1  ;;  %4640 = vmatpush.msk.msrb.mxu2 %vm3369_vm0, %v3319_v12  ;;  %v7476_v42 = vld [vmem:[#allocation37_spill] sm:$0xff] }
 0x2b8   : > { %v3188_v32 = vadd.f32 %v3187_v63, %v3074_v29 }
 0x2b9   : > { %v3048_v18 = vmul.f32 %v3014_v37, %v2919_v9  ;;  %4871 = vset.pattern.permute.xlu0 %v7469_v61  ;;  %v973_v61 = vld [vmem:[%s5356_s5 + $0xd0] sm:$0xff] }
 0x2ba   : > { %v3235_v40 = vadd.f32 %v6506_v4, %v3188_v32  ;;  %1665 = vperm.xlu1 %4868, %v7470_v7   ;;  %4634 = vmatmul.msk.f32.gmra.mxu3 %vm1976_vm2, %v973_v61  ;;  %v3017_v7 = vpop.f32.mrf.mxu0 }
 0x2bb   : > { %1599 = vperm.xlu2 %4870, %v7471_v33   ;;  %3094 = vmatmul.f32.gmra.mxu1 %v3048_v18 }
 0x2bc   : > { %v3251_v31 = vmax.f32 %v3235_v40, 0.0  ;;  %v1648_v2 = vpop.permute.xlu1 %1647 }
 0x2bd   : > { %vm1678_vm14 = vcmp.eq.s32.totalorder %v6275_v56, %v1648_v2  ;;  %v6531_v6 = vpop.permute.xlu2 %2652 }
 0x2be   : > { %v3267_v21 = vmax.f32 %v2113_v58, %v3251_v31  ;;  %v1758_v62 = vsel %vm1678_vm14, %v6461_v28, 0.0  ;;  %v6541_v28 = vpop.permute.xlu0 %1653  ;;  %vm2681_vm7 = vcmp.eq.s32.totalorder %v6275_v56, %v6531_v6 }
 0x2bf   : > { %v1774_v0 = vadd.f32 %v1758_v62, %v1614_v22  ;;  %v7479_v62 = vld [vmem:[#allocation61_spill] sm:$0xff]  ;;  %vm1680_vm9 = vcmp.eq.s32.totalorder %v6275_v56, %v6541_v28 }
 0x2c0   : > { %4657 = vmatmul.msk.f32.vlgmr.msrb.gmra.mxu0 %vm3438_vm15, %v3267_v21 }
 0x2c1   : > { %v1903_v53 = vmul.f32 %v1871_v41, %v1774_v0 }
 0x2c2   : > { %2667 = vperm.xlu1 %4868, %v7473_v57  }
 0x2c3   : > { %2811 = vperm.xlu2 %4870, %v7474_v60   ;;  %1951 = vmatmul.f32.gmra.mxu2 %v1903_v53 }
 0x2c4   : > { %v2650_v34 = vpop.permute.xlu1 %2649 }
 0x2c5   : > { %v2870_v13 = vpop.permute.xlu2 %2869  ;;  %v1931_v23 = vpop.f32.mrf.mxu2  ;;  %vm2680_vm1 = vcmp.eq.s32.totalorder %v6275_v56, %v2650_v34 }
 0x2c6   : > { %v2050_v24 = vadd.f32 %v7475_v5, %v1931_v23  ;;  %v2760_v29 = vsel %vm2680_vm1, %v6479_v48, 0.0  ;;  %v2656_v12 = vpop.permute.xlu0 %2655  ;;  %v7478_v48 = vld [vmem:[#allocation70_spill] sm:$0xff]  ;;  %v2905_v57 = vsel %vm2825_vm6, %v2870_v13, 0.0  ;;  %v3193_v34 = vpop.f32.mrf.mxu3 }
 0x2c7   : > { %vm1535_vm4 = vcmp.eq.s32.totalorder %v6275_v56, %v7478_v48  ;;  %v3020_v5 = vpop.f32.mrf.mxu0  ;;  %vm2682_vm10 = vcmp.eq.s32.totalorder %v6275_v56, %v2656_v12 }
 0x2c8   : > { %v3077_v41 = vpop.f32.mrf.mxu1  ;;  %v2098_v46 = vadd.f32 %v6506_v4, %v2050_v24  ;;  %v1615_v58 = vsel %vm1535_vm4, %v6498_v39, 0.0  ;;  %v7481_v39 = vld [vmem:[#allocation65_spill] sm:$0xff] }
 0x2c9   : > { %v3191_v63 = vadd.f32 %v3190_v14, %v3077_v41 }
 0x2ca   : > { %2889 = vperm.xlu1 %4868, %v6036_v10   ;;  %v2114_v37 = vmax.f32 %v2098_v46, 0.0 }
 0x2cb   : > { %v3236_v50 = vadd.f32 %v6506_v4, %v3191_v63  ;;  %1668 = vperm.xlu2 %4870, %v7476_v42   ;;  %v974_v63 = vld [vmem:[%s5356_s5 + $0xd8] sm:$0xff] }
 0x2cc   : > { %v2866_v9 = vpop.permute.xlu1 %2865  ;;  %4635 = vmatmul.msk.f32.gmra.mxu3 %vm1976_vm2, %v974_v63 }
 0x2cd   : > { %v3252_v35 = vmax.f32 %v3236_v50, 0.0  ;;  %v2904_v32 = vsel %vm2824_vm3, %v2866_v9, 0.0  ;;  %v1728_v18 = vpop.permute.xlu2 %1727 }
 0x2ce   : > { %v2920_v40 = vadd.f32 %v2904_v32, %v2760_v29  ;;  %v2874_v0 = vpop.permute.xlu0 %2873  ;;  %v1760_v50 = vsel %vm1680_vm9, %v1728_v18, 0.0  ;;  %v3196_v18 = vpop.f32.mrf.mxu3 }
 0x2cf   : > { %v3268_v10 = vmax.f32 %v2114_v37, %v3252_v35 }
 0x2d0   : > { %v3049_v33 = vmul.f32 %v3017_v7, %v2920_v40  ;;  %v7482_v7 = vld [vmem:[#allocation66_spill] sm:$0xff] }
 0x2d1   : > { %4658 = vmatmul.msk.f32.gmra.mxu0 %vm3438_vm15, %v3268_v10 }
 0x2d2   : > { %1747 = vperm.xlu1 %4868, %v7462_v38   ;;  %3097 = vmatmul.f32.gmra.mxu1 %v3049_v33  ;;  %v7480_v38 = vsub.f32 1.0, %v7479_v62 }
 0x2d3   : > { %2670 = vperm.xlu2 %4870, %v7477_v52  }
 0x2d4   : > { %v1724_v1 = vpop.permute.xlu1 %1723 }
 0x2d5   : > { %v1759_v31 = vsel %vm1679_vm5, %v1724_v1, 0.0  ;;  %v2730_v2 = vpop.permute.xlu2 %2729  ;;  %v3023_v1 = vpop.f32.mrf.mxu0 }
 0x2d6   : > { %v1775_v16 = vadd.f32 %v1759_v31, %v1615_v58  ;;  %v1934_v21 = vpop.f32.mrf.mxu2  ;;  %v1732_v42 = vpop.permute.xlu0 %1731  ;;  %v2762_v61 = vsel %vm2682_vm10, %v2730_v2, 0.0  ;;  %v7483_v2 = vld [vmem:[#allocation55_spill] sm:$0xff] }
 0x2d7   : > { %v2053_v59 = vadd.f32 %v7481_v39, %v1934_v21  ;;  %vm1537_vm12 = vcmp.eq.s32.totalorder %v6275_v56, %v7483_v2 }
 0x2d8   : > { %v1904_v22 = vmul.f32 %v6365_v51, %v1775_v16 }
 0x2d9   : > { %v2099_v14 = vadd.f32 %v6506_v4, %v2053_v59 }
 0x2da   : > { %2749 = vperm.xlu1 %4868, %v7480_v38   ;;  %1954 = vmatmul.f32.gmra.mxu2 %v1904_v22  ;;  %v975_v22 = vld [vmem:[%s5356_s5 + $0xe0] sm:$0xff] }
 0x2db   : > { %2893 = vperm.xlu2 %4870, %v7479_v62   ;;  %v2115_v6 = vmax.f32 %v2099_v14, 0.0  ;;  %4636 = vmatmul.msk.f32.gmra.mxu3 %vm1976_vm2, %v975_v22 }
 0x2dc   : > { %v2726_v53 = vpop.permute.xlu1 %2725 }
 0x2dd   : > { %v2761_v60 = vsel %vm2681_vm7, %v2726_v53, 0.0  ;;  %v1588_v51 = vpop.permute.xlu2 %1587  ;;  %vm1539_vm7 = vcmp.eq.s32.totalorder %v6275_v56, %v6229_v54 }
 0x2de   : > { %v2921_v23 = vadd.f32 %v2905_v57, %v2761_v60  ;;  %v2734_v33 = vpop.permute.xlu0 %2733 }
 0x2df   : > { %v3080_v24 = vpop.f32.mrf.mxu1 }
 0x2e0   : > { %v3194_v8 = vadd.f32 %v3193_v34, %v3080_v24  ;;  %v3050_v41 = vmul.f32 %v3020_v5, %v2921_v23  ;;  %v7484_v24 = vld [vmem:[#allocation67_spill] sm:$0xff] }
 0x2e2   : > { %v3237_v15 = vadd.f32 %v6506_v4, %v3194_v8  ;;  %3100 = vmatmul.f32.gmra.mxu1 %v3050_v41  ;;  %v3199_v8 = vpop.f32.mrf.mxu3 }
 0x2e4   : > { %v3253_v13 = vmax.f32 %v3237_v15, 0.0  ;;  %v1584_v46 = vpop.permute.xlu1 %1583 }
 0x2e5   : > { %v1616_v9 = vsel %vm1536_vm8, %v1584_v46, 0.0  ;;  %v2803_v35 = vpop.permute.xlu2 %2802 }
 0x2e6   : > { %v3269_v29 = vmax.f32 %v2115_v6, %v3253_v13  ;;  %v1776_v37 = vadd.f32 %v1760_v50, %v1616_v9  ;;  %v1592_v57 = vpop.permute.xlu0 %1591  ;;  %vm2827_vm1 = vcmp.eq.s32.totalorder %v6275_v56, %v2803_v35 }
 0x2e8   : > { %4659 = vmatmul.msk.f32.gmra.mxu0 %vm3438_vm15, %v3269_v29  ;;  %v1905_v32 = vmul.f32 %v6385_v55, %v1776_v37  ;;  %v976_v29 = vld [vmem:[%s5356_s5 + $0xe8] sm:$0xff] }
 0x2e9   : > { %4637 = vmatmul.msk.f32.gmra.mxu3 %vm1976_vm2, %v976_v29 }
 0x2ea   : > { %1957 = vmatmul.f32.gmra.mxu2 %v1905_v32  ;;  %v3026_v32 = vpop.f32.mrf.mxu0 }
 0x2ec   : > { %v2800_v25 = vpop.permute.xlu1 %2799 }
 0x2ed   : > { %vm2826_vm11 = vcmp.eq.s32.totalorder %v6275_v56, %v2800_v25  ;;  %v1937_v28 = vpop.f32.mrf.mxu2  ;;  %v1660_v58 = vpop.permute.xlu2 %1659 }
 0x2ee   : > { %v2906_v40 = vsel %vm2826_vm11, %v2874_v0, 0.0  ;;  %v2056_v10 = vadd.f32 %v7482_v7, %v1937_v28  ;;  %v1617_v0 = vsel %vm1537_vm12, %v1588_v51, 0.0  ;;  %v2806_v6 = vpop.permute.xlu0 %2805  ;;  %vm1682_vm4 = vcmp.eq.s32.totalorder %v6275_v56, %v1660_v58  ;;  %v3202_v58 = vpop.f32.mrf.mxu3 }
 0x2ef   : > { %v2922_v52 = vadd.f32 %v2906_v40, %v2762_v61  ;;  %v3083_v48 = vpop.f32.mrf.mxu1  ;;  %vm2828_vm5 = vcmp.eq.s32.totalorder %v6275_v56, %v2806_v6 }
 0x2f0   : > { %v2100_v55 = vadd.f32 %v6506_v4, %v2056_v10  ;;  %v3197_v31 = vadd.f32 %v3196_v18, %v3083_v48  ;;  %v7485_v18 = vld [vmem:[#allocation72_spill] sm:$0xff] }
 0x2f1   : > { %v3051_v16 = vmul.f32 %v3023_v1, %v2922_v52  ;;  %vm1538_vm3 = vcmp.eq.s32.totalorder %v6275_v56, %v7485_v18  ;;  %v7486_v1 = vld [vmem:[#allocation69_spill] sm:$0xff] }
 0x2f2   : > { %v3238_v12 = vadd.f32 %v6506_v4, %v3197_v31  ;;  %v2116_v21 = vmax.f32 %v2100_v55, 0.0  ;;  %v1618_v61 = vsel %vm1538_vm3, %v1592_v57, 0.0  ;;  %v3029_v22 = vpop.f32.mrf.mxu0 }
 0x2f3   : > { %3103 = vmatmul.f32.gmra.mxu1 %v3051_v16 }
 0x2f4   : > { %v3254_v62 = vmax.f32 %v3238_v12, 0.0  ;;  %v1657_v38 = vpop.permute.xlu1 %1656 }
 0x2f5   : > { %vm1681_vm13 = vcmp.eq.s32.totalorder %v6275_v56, %v1657_v38  ;;  %v2662_v34 = vpop.permute.xlu2 %2661 }
 0x2f6   : > { %v3270_v39 = vmax.f32 %v2116_v21, %v3254_v62  ;;  %v1761_v59 = vsel %vm1681_vm13, %v1732_v42, 0.0  ;;  %v1663_v40 = vpop.permute.xlu0 %1662  ;;  %vm2684_vm6 = vcmp.eq.s32.totalorder %v6275_v56, %v2662_v34  ;;  %v977_v34 = vld [vmem:[%s5356_s5 + $0xf0] sm:$0xff] }
 0x2f7   : > { %v1777_v53 = vadd.f32 %v1761_v59, %v1617_v0  ;;  %vm1683_vm8 = vcmp.eq.s32.totalorder %v6275_v56, %v1663_v40  ;;  %4638 = vmatmul.msk.f32.gmra.mxu3 %vm1976_vm2, %v977_v34 }
 0x2f8   : > { %4660 = vmatmul.msk.f32.gmra.mxu0 %vm3438_vm15, %v3270_v39 }
 0x2f9   : > { %v1906_v60 = vmul.f32 %v6401_v43, %v1777_v53 }
 0x2fb   : > { %1960 = vmatmul.f32.gmra.mxu2 %v1906_v60 }
 0x2fc   : > { %v2659_v23 = vpop.permute.xlu1 %2658 }
 0x2fd   : > { %v1940_v5 = vpop.f32.mrf.mxu2  ;;  %vm2683_vm14 = vcmp.eq.s32.totalorder %v6275_v56, %v2659_v23  ;;  %v2882_v43 = vpop.permute.xlu2 %2881 }
 0x2fe   : > { %v2059_v14 = vadd.f32 %v7484_v24, %v1940_v5  ;;  %v2763_v63 = vsel %vm2683_vm14, %v2734_v33, 0.0  ;;  %v2908_v16 = vsel %vm2828_vm5, %v2882_v43, 0.0  ;;  %v2665_v62 = vpop.permute.xlu0 %2664  ;;  %v3205_v6 = vpop.f32.mrf.mxu3  ;;  %vm3320_vm5 = vcmask 23552  }
 0x2ff   : > { %vm2685_vm9 = vcmp.eq.s32.totalorder %v6275_v56, %v2665_v62 }
 0x300   : > { %v3086_v41 = vpop.f32.mrf.mxu1  ;;  %v2101_v15 = vadd.f32 %v6506_v4, %v2059_v14 }
 0x301   : > { %v3200_v51 = vadd.f32 %v3199_v8, %v3086_v41 }
 0x302   : > { %v2117_v50 = vmax.f32 %v2101_v15, 0.0 }
 0x303   : > { %v3239_v13 = vadd.f32 %v6506_v4, %v3200_v51 }
 0x304   : > { %v2878_v46 = vpop.permute.xlu1 %2877 }
 0x305   : > { %v3255_v42 = vmax.f32 %v3239_v13, 0.0  ;;  %v2907_v9 = vsel %vm2827_vm1, %v2878_v46, 0.0  ;;  %v1740_v10 = vpop.permute.xlu2 %1739  ;;  %v7487_v46 = vld [vmem:[#allocation71_spill] sm:$0xff] }
 0x306   : > { %v2923_v37 = vadd.f32 %v2907_v9, %v2763_v63  ;;  %v1763_v23 = vsel %vm1683_vm8, %v1740_v10, 0.0  ;;  %v2886_v41 = vpop.permute.xlu0 %2885  ;;  %v3032_v9 = vpop.f32.mrf.mxu0  ;;  %vm4056_vm8 = vcmask 236544  }
 0x307   : > { %v3271_v25 = vmax.f32 %v2117_v50, %v3255_v42 }
 0x308   : > { %v3052_v28 = vmul.f32 %v3026_v32, %v2923_v37 }
 0x309   : > { %4661 = vmatmul.msk.f32.gmra.mxu0 %vm3438_vm15, %v3271_v25 }
 0x30a   : > { %3106 = vmatmul.f32.gmra.mxu1 %v3052_v28  ;;  %v978_v28 = vld [vmem:[%s5356_s5 + $0xf8] sm:$0xff] }
 0x30b   : > { %4639 = vmatmul.msk.f32.gmra.mxu3 %vm1976_vm2, %v978_v28 }
 0x30c   : > { %v1736_v35 = vpop.permute.xlu1 %1735 }
 0x30d   : > { %v1762_v7 = vsel %vm1682_vm4, %v1736_v35, 0.0  ;;  %v2742_v2 = vpop.permute.xlu2 %2741 }
 0x30e   : > { %v1778_v33 = vadd.f32 %v1762_v7, %v1618_v61  ;;  %v1943_v48 = vpop.f32.mrf.mxu2  ;;  %v2765_v13 = vsel %vm2685_vm9, %v2742_v2, 0.0  ;;  %v1744_v25 = vpop.permute.xlu0 %1743  ;;  %v7488_v7 = vld [vmem:[#allocation60_spill] sm:$0xff]  ;;  %vm4435_vm9 = vcmask 0  }
 0x30f   : > { %v2062_v55 = vadd.f32 %v7486_v1, %v1943_v48  ;;  %vm1540_vm11 = vcmp.eq.s32.totalorder %v6275_v56, %v7488_v7 }
 0x310   : > { %v1907_v52 = vmul.f32 %v6420_v47, %v1778_v33 }
 0x311   : > { %v2102_v47 = vadd.f32 %v6506_v4, %v2062_v55 }
 0x312   : > { %1963 = vmatmul.f32.gmra.mxu2 %v1907_v52 }
 0x313   : > { %v2118_v53 = vmax.f32 %v2102_v47, 0.0 }
 0x314   : > { %v2738_v31 = vpop.permute.xlu1 %2737 }
 0x315   : > { %v2764_v12 = vsel %vm2684_vm6, %v2738_v31, 0.0  ;;  %v1600_v15 = vpop.permute.xlu2 %1599  ;;  %vm3983_vm6 = vcmask 1043456  }
 0x316   : > { %v2924_v21 = vadd.f32 %v2908_v16, %v2764_v12  ;;  %v1620_v10 = vsel %vm1540_vm11, %v1600_v15, 0.0  ;;  %v2746_v31 = vpop.permute.xlu0 %2745  ;;  %v3728_v15 = vld [vmem:[%s7133_s16 + $0x38] sm:$0xff] }
 0x317   : > { %v3089_v38 = vpop.f32.mrf.mxu1  ;;  %3790 = vmatpush.msra.mxu3 %v3728_v15 }
 0x318   : > { %v3203_v0 = vadd.f32 %v3202_v58, %v3089_v38  ;;  %v3053_v39 = vmul.f32 %v3029_v22, %v2924_v21  ;;  %v3208_v22 = vpop.f32.mrf.mxu3 }
 0x31a   : > { %v3240_v59 = vadd.f32 %v6506_v4, %v3203_v0  ;;  %3109 = vmatmul.f32.gmra.mxu1 %v3053_v39 }
 0x31c   : > { %v3256_v57 = vmax.f32 %v3240_v59, 0.0  ;;  %v1596_v60 = vpop.permute.xlu1 %1595 }
 0x31d   : > { %v1619_v5 = vsel %vm1539_vm7, %v1596_v60, 0.0  ;;  %v2812_v18 = vpop.permute.xlu2 %2811  ;;  %vm3733_vm7 = vcmask 523264  }
 0x31e   : > { %v3272_v24 = vmax.f32 %v2118_v53, %v3256_v57  ;;  %v1779_v14 = vadd.f32 %v1763_v23, %v1619_v5  ;;  %vm2830_vm13 = vcmp.eq.s32.totalorder %v6275_v56, %v2812_v18  ;;  %v3035_v57 = vpop.f32.mrf.mxu0  ;;  %v1604_v60 = vpop.permute.xlu0 %1603  ;;  %v7489_v5 = vld [vmem:[#allocation40_spill] sm:$0xff] }
 0x31f   : > { %vm1541_vm14 = vcmp.eq.s32.totalorder %v6275_v56, %v7489_v5  ;;  %v3725_v5 = vld [vmem:[%s7133_s16 + $0x20] sm:$0xff] }
 0x320   : > { %4662 = vmatmul.msk.f32.gmra.mxu0 %vm3438_vm15, %v3272_v24  ;;  %v1908_v8 = vmul.f32 %v6432_v45, %v1779_v14  ;;  %v1621_v14 = vsel %vm1541_vm14, %v1604_v60, 0.0 }
 0x322   : > { %1966 = vmatmul.f32.gmra.mxu2 %v1908_v8 }
 0x324   : > { %v2809_v54 = vpop.permute.xlu1 %2808 }
 0x325   : > { %vm2829_vm10 = vcmp.eq.s32.totalorder %v6275_v56, %v2809_v54  ;;  %v1946_v51 = vpop.f32.mrf.mxu2  ;;  %v1669_v12 = vpop.permute.xlu2 %1668 }
 0x326   : > { %v2909_v43 = vsel %vm2829_vm10, %v2886_v41, 0.0  ;;  %v2065_v63 = vadd.f32 %v7487_v46, %v1946_v51  ;;  %vm1685_vm1 = vcmp.eq.s32.totalorder %v6275_v56, %v1669_v12  ;;  %v2815_v51 = vpop.permute.xlu0 %2814 }
 0x327   : > { %v2925_v50 = vadd.f32 %v2909_v43, %v2765_v13  ;;  %v3092_v42 = vpop.f32.mrf.mxu1  ;;  %vm2831_vm3 = vcmp.eq.s32.totalorder %v6275_v56, %v2815_v51  ;;  %v6729_v51 = vld [vmem:[%s6652_s1 + $0x38] sm:$0xff] }
 0x328   : > { %v2103_v45 = vadd.f32 %v6506_v4, %v2065_v63  ;;  %v3206_v29 = vadd.f32 %v3205_v6, %v3092_v42 }
 0x329   : > { %v3054_v37 = vmul.f32 %v3032_v9, %v2925_v50  ;;  %v3211_v50 = vpop.f32.mrf.mxu3  ;;  %v3038_v9 = vpop.f32.mrf.mxu0 }
 0x32a   : > { %v3241_v32 = vadd.f32 %v6506_v4, %v3206_v29  ;;  %v2119_v35 = vmax.f32 %v2103_v45, 0.0  ;;  %v6655_v29 = vld [vmem:[%s6652_s1] sm:$0xff] }
 0x32b   : > { %3112 = vmatmul.f32.gmra.mxu1 %v3054_v37 }
 0x32c   : > { %v3257_v61 = vmax.f32 %v3241_v32, 0.0  ;;  %v1666_v40 = vpop.permute.xlu1 %1665 }
 0x32d   : > { %vm1684_vm12 = vcmp.eq.s32.totalorder %v6275_v56, %v1666_v40  ;;  %v2671_v34 = vpop.permute.xlu2 %2670  ;;  %v3727_v40 = vld [vmem:[%s7133_s16 + $0x30] sm:$0xff] }
 0x32e   : > { %v3273_v33 = vmax.f32 %v2119_v35, %v3257_v61  ;;  %v1764_v52 = vsel %vm1684_vm12, %v1744_v25, 0.0  ;;  %vm2687_vm4 = vcmp.eq.s32.totalorder %v6275_v56, %v2671_v34  ;;  %v6668_v35 = vld [vmem:[%s6652_s1 + $0x8] sm:$0xff]  ;;  %v3299_v61 = vld [vmem:[%s6665_s30] sm:$0xff]  ;;  %3791 = vmatpush.msra.mxu3 %v3727_v40 }
 0x32f   : > { %v1780_v48 = vadd.f32 %v1764_v52, %v1620_v10  ;;  %v6710_v34 = vld [vmem:[%s6652_s1 + $0x28] sm:$0xff] }
 0x330   : > { %4663 = vmatmul.msk.f32.gmra.mxu0 %vm3438_vm15, %v3273_v33 }
 0x331   : > { %v1909_v1 = vmul.f32 %v6459_v20, %v1780_v48  ;;  %v3214_v10 = vpop.f32.mrf.mxu3  ;;  %v6680_v48 = vld [vmem:[%s6652_s1 + $0x10] sm:$0xff] }
 0x333   : > { %1969 = vmatmul.f32.gmra.mxu2 %v1909_v1  ;;  %v3300_v1 = vld [vmem:[%s6665_s30 + $0x8] sm:$0xff] }
 0x334   : > { %v2668_v55 = vpop.permute.xlu1 %2667 }
 0x335   : > { %v1949_v16 = vpop.f32.mrf.mxu2  ;;  %vm2686_vm2 = vcmp.eq.s32.totalorder %v6275_v56, %v2668_v55  ;;  %v2894_v13 = vpop.permute.xlu2 %2893 }
 0x336   : > { %v2068_v58 = vadd.f32 %v6341_v30, %v1949_v16  ;;  %v2766_v20 = vsel %vm2686_vm2, %v2746_v31, 0.0 }
 0x338   : > { %v3095_v21 = vpop.f32.mrf.mxu1  ;;  %v2104_v62 = vadd.f32 %v6506_v4, %v2068_v58 }
 0x339   : > { %v3209_v38 = vadd.f32 %v3208_v22, %v3095_v21  ;;  %v6692_v21 = vld [vmem:[%s6652_s1 + $0x18] sm:$0xff] }
 0x33a   : > { %v2120_v0 = vmax.f32 %v2104_v62, 0.0  ;;  %v3301_v62 = vld [vmem:[%s6665_s30 + $0x10] sm:$0xff] }
 0x33b   : > { %v3242_v2 = vadd.f32 %v6506_v4, %v3209_v38 }
 0x33c   : > { %v2890_v47 = vpop.permute.xlu1 %2889 }
 0x33d   : > { %v3258_v39 = vmax.f32 %v3242_v2, 0.0  ;;  %v2910_v59 = vsel %vm2830_vm13, %v2890_v47, 0.0  ;;  %v3217_v47 = vpop.f32.mrf.mxu3 }
 0x33e   : > { %v2926_v53 = vadd.f32 %v2910_v59, %v2766_v20  ;;  %v6701_v20 = vld [vmem:[%s6652_s1 + $0x20] sm:$0xff] }
 0x33f   : > { %v3274_v30 = vmax.f32 %v2120_v0, %v3258_v39  ;;  %v3302_v0 = vld [vmem:[%s6665_s30 + $0x18] sm:$0xff] }
 0x340   : > { %v3055_v23 = vmul.f32 %v3035_v57, %v2926_v53 }
 0x341   : > { %4664 = vmatmul.msk.f32.gmra.mxu0 %vm3438_vm15, %v3274_v30 }
 0x342   : > { %3115 = vmatmul.f32.gmra.mxu1 %v3055_v23  ;;  %v3303_v23 = vld [vmem:[%s6665_s30 + $0x20] sm:$0xff] }
 0x344   : > { %v1748_v24 = vpop.permute.xlu1 %1747 }
 0x345   : > { %v1765_v8 = vsel %vm1685_vm1, %v1748_v24, 0.0  ;;  %v6721_v24 = vld [vmem:[%s6652_s1 + $0x30] sm:$0xff] }
 0x346   : > { %v1781_v41 = vadd.f32 %v1765_v8, %v1621_v14  ;;  %v1952_v6 = vpop.f32.mrf.mxu2  ;;  %v3304_v14 = vld [vmem:[%s6665_s30 + $0x28] sm:$0xff] }
 0x347   : > { %v2071_v43 = vadd.f32 %v6356_v49, %v1952_v6  ;;  %v3305_v6 = vld [vmem:[%s6665_s30 + $0x30] sm:$0xff] }
 0x348   : > { %v1910_v54 = vmul.f32 %v6477_v27, %v1781_v41  ;;  %v2911_v27 = vsel %vm2831_vm3, %v2894_v13, 0.0 }
 0x349   : > { %v2105_v56 = vadd.f32 %v6506_v4, %v2071_v43 }
 0x34a   : > { %1972 = vmatmul.f32.gmra.mxu2 %v1910_v54 }
 0x34b   : > { %v2121_v25 = vmax.f32 %v2105_v56, 0.0 }
 0x34c   : > { %v2750_v46 = vpop.permute.xlu1 %2749 }
 0x34d   : > { %v2767_v63 = vsel %vm2687_vm4, %v2750_v46, 0.0 }
 0x34e   : > { %v2927_v42 = vadd.f32 %v2911_v27, %v2767_v63 }
 0x34f   : > { %v3098_v45 = vpop.f32.mrf.mxu1  ;;  %v3220_v15 = vpop.f32.mrf.mxu3 }
 0x350   : > { %v3056_v49 = vmul.f32 %v3038_v9, %v2927_v42  ;;  %v3212_v37 = vadd.f32 %v3211_v50, %v3098_v45  ;;  %v6741_v42 = vld [vmem:[%s6652_s1 + $0x40] sm:$0xff]  ;;  %v3306_v9 = vld [vmem:[%s6665_s30 + $0x38] sm:$0xff] }
 0x352   : > { %v3243_v32 = vadd.f32 %v6506_v4, %v3212_v37  ;;  %3118 = vmatmul.f32.gmra.mxu1 %v3056_v49  ;;  %4641 = vmatmul.msk.f32.vlgmr.msrb.gmra.mxu2 %vm3320_vm5, %v6655_v29 }
 0x354   : > { %v3259_v28 = vmax.f32 %v3243_v32, 0.0  ;;  %v6750_v32 = vld [vmem:[%s6652_s1 + $0x48] sm:$0xff] }
 0x356   : > { %v3275_v18 = vmax.f32 %v2121_v25, %v3259_v28  ;;  %v3307_v25 = vld [vmem:[%s6665_s30 + $0x40] sm:$0xff] }
 0x358   : > { %4665 = vmatmul.msk.f32.gmra.mxu0 %vm3438_vm15, %v3275_v18 }
 0x35a   : > { %4642 = vmatmul.msk.f32.gmra.mxu2 %vm3320_vm5, %v6668_v35  ;;  %4674 = vmatmul.msk.f32.vlgmr.msra.gmra.mxu1 %vm3320_vm5, %v3299_v61 }
 0x35d   : > { %v1955_v7 = vpop.f32.mrf.mxu2 }
 0x35e   : > { %v2074_v33 = vadd.f32 %v6370_v36, %v1955_v7  ;;  %v3726_v36 = vld [vmem:[%s7133_s16 + $0x28] sm:$0xff]  ;;  %v3223_v56 = vpop.f32.mrf.mxu3 }
 0x35f   : > { %v3101_v52 = vpop.f32.mrf.mxu1  ;;  %3792 = vmatpush.msra.mxu3 %v3726_v36 }
 0x360   : > { %v2106_v55 = vadd.f32 %v6506_v4, %v2074_v33  ;;  %v3215_v31 = vadd.f32 %v3214_v10, %v3101_v52  ;;  %v6762_v33 = vld [vmem:[%s6652_s1 + $0x50] sm:$0xff]  ;;  %v3308_v52 = vld [vmem:[%s6665_s30 + $0x48] sm:$0xff] }
 0x361   : > { %3793 = vmatpush.msra.mxu3 %v3725_v5  ;;  %v6802_v5 = vld [vmem:[%s6652_s1 + $0x70] sm:$0xff] }
 0x362   : > { %v3244_v16 = vadd.f32 %v6506_v4, %v3215_v31  ;;  %4643 = vmatmul.msk.f32.gmra.mxu2 %vm3320_vm5, %v6680_v48  ;;  %4675 = vmatmul.msk.f32.gmra.mxu1 %vm3320_vm5, %v3300_v1  ;;  %v2122_v12 = vmax.f32 %v2106_v55, 0.0 }
 0x364   : > { %v3260_v58 = vmax.f32 %v3244_v16, 0.0  ;;  %v3722_v16 = vld [vmem:[%s7133_s16 + $0x8] sm:$0xff] }
 0x366   : > { %v3276_v22 = vmax.f32 %v2122_v12, %v3260_v58  ;;  %v6774_v12 = vld [vmem:[%s6652_s1 + $0x58] sm:$0xff]  ;;  %v3309_v58 = vld [vmem:[%s6665_s30 + $0x50] sm:$0xff] }
 0x368   : > { %4666 = vmatmul.msk.f32.gmra.mxu0 %vm3438_vm15, %v3276_v22 }
 0x36a   : > { %4644 = vmatmul.msk.f32.gmra.mxu2 %vm3320_vm5, %v6692_v21  ;;  %4676 = vmatmul.msk.f32.gmra.mxu1 %vm3320_vm5, %v3301_v62 }
 0x36c   : > { %v3226_v31 = vpop.f32.mrf.mxu3 }
 0x36d   : > { %v1958_v38 = vpop.f32.mrf.mxu2 }
 0x36e   : > { %v2077_v2 = vadd.f32 %v6388_v3, %v1958_v38 }
 0x370   : > { %v3104_v39 = vpop.f32.mrf.mxu1  ;;  %v2107_v59 = vadd.f32 %v6506_v4, %v2077_v2 }
 0x371   : > { %v3218_v53 = vadd.f32 %v3217_v47, %v3104_v39  ;;  %v3310_v39 = vld [vmem:[%s6665_s30 + $0x58] sm:$0xff] }
 0x372   : > { %4645 = vmatmul.msk.f32.gmra.mxu2 %vm3320_vm5, %v6701_v20  ;;  %4677 = vmatmul.msk.f32.gmra.mxu1 %vm3320_vm5, %v3302_v0  ;;  %v2123_v60 = vmax.f32 %v2107_v59, 0.0  ;;  %v6783_v0 = vld [vmem:[%s6652_s1 + $0x60] sm:$0xff] }
 0x373   : > { %v3245_v57 = vadd.f32 %v6506_v4, %v3218_v53  ;;  %v3721_v59 = vld [vmem:[%s7133_s16] sm:$0xff]  ;;  %v6794_v53 = vld [vmem:[%s6652_s1 + $0x68] sm:$0xff] }
 0x375   : > { %v3261_v30 = vmax.f32 %v3245_v57, 0.0  ;;  %v3311_v57 = vld [vmem:[%s6665_s30 + $0x60] sm:$0xff] }
 0x377   : > { %v3277_v3 = vmax.f32 %v2123_v60, %v3261_v30 }
 0x379   : > { %4667 = vmatmul.msk.f32.gmra.mxu0 %vm3438_vm15, %v3277_v3 }
 0x37a   : > { %4646 = vmatmul.msk.f32.gmra.mxu2 %vm3320_vm5, %v6710_v34  ;;  %4678 = vmatmul.msk.f32.gmra.mxu1 %vm3320_vm5, %v3303_v23  ;;  %v3229_v3 = vpop.f32.mrf.mxu3 }
 0x37e   : > { %v1961_v8 = vpop.f32.mrf.mxu2 }
 0x37f   : > { %v2080_v41 = vadd.f32 %v6409_v11, %v1961_v8  ;;  %v3724_v11 = vld [vmem:[%s7133_s16 + $0x18] sm:$0xff] }
 0x380   : > { %3794 = vmatpush.msra.mxu3 %v3724_v11  ;;  %v3864_v11 = vld [vmem:[%s7135_s18] sm:$0xf] }
 0x381   : > { %v2108_v13 = vadd.f32 %v6506_v4, %v2080_v41  ;;  %4723 = vmatpush.msk.msra.mxu0 %vm3983_vm6, %v3864_v11 }
 0x382   : > { %4647 = vmatmul.msk.f32.gmra.mxu2 %vm3320_vm5, %v6721_v24  ;;  %4679 = vmatmul.msk.f32.gmra.mxu1 %vm3320_vm5, %v3304_v14  ;;  %v3312_v14 = vld [vmem:[%s6665_s30 + $0x68] sm:$0xff] }
 0x383   : > { %v2124_v27 = vmax.f32 %v2108_v13, 0.0 }
 0x387   : > { %v3107_v54 = vpop.f32.mrf.mxu1 }
 0x388   : > { %v3221_v43 = vadd.f32 %v3220_v15, %v3107_v54 }
 0x38a   : > { %v3246_v46 = vadd.f32 %v6506_v4, %v3221_v43  ;;  %4648 = vmatmul.msk.f32.gmra.mxu2 %vm3320_vm5, %v6729_v51  ;;  %4680 = vmatmul.msk.f32.gmra.mxu1 %vm3320_vm5, %v3305_v6  ;;  %v3313_v43 = vld [vmem:[%s6665_s30 + $0x70] sm:$0xff] }
 0x38c   : > { %v3262_v63 = vmax.f32 %v3246_v46, 0.0  ;;  %v6816_v46 = vld [vmem:[%s6652_s1 + $0x78] sm:$0xff]  ;;  %s7492_s1 = sld [smem:[#allocation78_spill]] }
 0x38e   : > { %v3278_v50 = vmax.f32 %v2124_v27, %v3262_v63  ;;  %v4055_v27 = vld [vmem:[%s7137_s20 + $0x18] sm:$0x1f] }
 0x390   : > { %4668 = vmatmul.msk.f32.gmra.mxu0 %vm3438_vm15, %v3278_v50  ;;  %v3232_v50 = vpop.f32.mrf.mxu3 }
 0x392   : > { %4649 = vmatmul.msk.f32.gmra.mxu2 %vm3320_vm5, %v6741_v42  ;;  %4681 = vmatmul.msk.f32.gmra.mxu1 %vm3320_vm5, %v3306_v9  ;;  %s6906_s26 = scalar_lea.vmem %s7492_s1, %s6643_s6  ;;  %s874_s1 = scalar_lea.vmem %s7142_s25, %s7495_s2 }
 0x395   : > { %v1964_v45 = vpop.f32.mrf.mxu2 }
 0x396   : > { %v2083_v49 = vadd.f32 %v6426_v17, %v1964_v45  ;;  %v3723_v17 = vld [vmem:[%s7133_s16 + $0x10] sm:$0xff] }
 0x397   : > { %v3110_v37 = vpop.f32.mrf.mxu1  ;;  %3795 = vmatpush.msra.mxu3 %v3723_v17 }
 0x398   : > { %v2109_v28 = vadd.f32 %v6506_v4, %v2083_v49  ;;  %v3224_v18 = vadd.f32 %v3223_v56, %v3110_v37  ;;  %v3314_v56 = vld [vmem:[%s6665_s30 + $0x78] sm:$0xff] }
 0x399   : > { %3796 = vmatpush.msra.mxu3 %v3722_v16 }
 0x39a   : > { %v3247_v61 = vadd.f32 %v6506_v4, %v3224_v18  ;;  %4650 = vmatmul.msk.f32.gmra.mxu2 %vm3320_vm5, %v6750_v32  ;;  %4682 = vmatmul.msk.f32.gmra.mxu1 %vm3320_vm5, %v3307_v25  ;;  %v2125_v40 = vmax.f32 %v2109_v28, 0.0 }
 0x39b   : > { %3797 = vmatpush.msra.mxu3 %v3721_v59  ;;  %v4054_v59 = vld [vmem:[%s7137_s20 + $0x10] sm:$0xff] }
 0x39c   : > { %v3263_v7 = vmax.f32 %v3247_v61, 0.0  ;;  %v3504_v61 = vpop.f32.mrf.mxu0 }
 0x39e   : > { %v3279_v10 = vmax.f32 %v2125_v40, %v3263_v7 }
 0x3a0   : > { %4669 = vmatmul.msk.f32.gmra.mxu0 %vm3438_vm15, %v3279_v10 }
 0x3a2   : > { %4651 = vmatmul.msk.f32.gmra.mxu2 %vm3320_vm5, %v6762_v33  ;;  %4683 = vmatmul.msk.f32.gmra.mxu1 %vm3320_vm5, %v3308_v52 }
 0x3a5   : > { %v1967_v1 = vpop.f32.mrf.mxu2 }
 0x3a6   : > { %v2086_v55 = vadd.f32 %v6440_v44, %v1967_v1  ;;  %v3507_v1 = vpop.f32.mrf.mxu0 }
 0x3a8   : > { %v3113_v22 = vpop.f32.mrf.mxu1  ;;  %v2110_v36 = vadd.f32 %v6506_v4, %v2086_v55 }
 0x3a9   : > { %v3227_v62 = vadd.f32 %v3226_v31, %v3113_v22 }
 0x3aa   : > { %4652 = vmatmul.msk.f32.gmra.mxu2 %vm3320_vm5, %v6774_v12  ;;  %4684 = vmatmul.msk.f32.gmra.mxu1 %vm3320_vm5, %v3309_v58  ;;  %v2126_v38 = vmax.f32 %v2110_v36, 0.0 }
 0x3ab   : > { %v3248_v44 = vadd.f32 %v6506_v4, %v3227_v62 }
 0x3ad   : > { %v3264_v2 = vmax.f32 %v3248_v44, 0.0 }
 0x3ae   : > { %v3510_v62 = vpop.f32.mrf.mxu0 }
 0x3af   : > { %v3280_v47 = vmax.f32 %v2126_v38, %v3264_v2 }
 0x3b1   : > { %4670 = vmatmul.msk.f32.gmra.mxu0 %vm3438_vm15, %v3280_v47 }
 0x3b2   : > { %4653 = vmatmul.msk.f32.gmra.mxu2 %vm3320_vm5, %v6783_v0  ;;  %4685 = vmatmul.msk.f32.gmra.mxu1 %vm3320_vm5, %v3310_v39 }
 0x3b6   : > { %v1970_v60 = vpop.f32.mrf.mxu2 }
 0x3b7   : > { %v2089_v30 = vadd.f32 %v6468_v19, %v1970_v60  ;;  %v3865_v19 = vld [vmem:[%s7136_s19] sm:$0x7] }
 0x3b8   : > { %4706 = vmatpush.msk.msra.mxu2 %vm3369_vm0, %v3865_v19  ;;  %vm4105_vm0 = vcmask 1044480  }
 0x3b9   : > { %v2111_v8 = vadd.f32 %v6506_v4, %v2089_v30  ;;  %4740 = vmatpush.msk.msrb.mxu1 %vm4105_vm0, %v4055_v27 }
 0x3ba   : > { %4654 = vmatmul.msk.f32.gmra.mxu2 %vm3320_vm5, %v6794_v53  ;;  %4686 = vmatmul.msk.f32.gmra.mxu1 %vm3320_vm5, %v3311_v57  ;;  %v3513_v57 = vpop.f32.mrf.mxu0 }
 0x3bb   : > { %v2127_v54 = vmax.f32 %v2111_v8, 0.0  ;;  %4122 = vmatpush.msrb.mxu1 %v4054_v59 }
 0x3bf   : > { %v3116_v23 = vpop.f32.mrf.mxu1 }
 0x3c0   : > { %v3230_v41 = vadd.f32 %v3229_v3, %v3116_v23 }
 0x3c2   : > { %v3249_v15 = vadd.f32 %v6506_v4, %v3230_v41  ;;  %4655 = vmatmul.msk.f32.gmra.mxu2 %vm3320_vm5, %v6802_v5  ;;  %4687 = vmatmul.msk.f32.gmra.mxu1 %vm3320_vm5, %v3312_v14 }
 0x3c4   : > { %v3265_v6 = vmax.f32 %v3249_v15, 0.0 }
 0x3c6   : > { %v3281_v13 = vmax.f32 %v2127_v54, %v3265_v6 }
 0x3c8   : > { %4671 = vmatmul.msk.f32.gmra.mxu0 %vm3438_vm15, %v3281_v13 }
 0x3ca   : > { %4688 = vmatmul.msk.f32.gmra.mxu1 %vm3320_vm5, %v3313_v43  ;;  %4656 = vmatmul.msk.f32.gmra.mxu2 %vm3320_vm5, %v6816_v46 }
 0x3cd   : > { %v1973_v63 = vpop.f32.mrf.mxu2 }
 0x3ce   : > { %v2092_v9 = vadd.f32 %v6486_v26, %v1973_v63  ;;  %v6838_v26 = vld [vmem:[%s7132_s15] ss:$0 sm:$0xff] }
 0x3cf   : > { %v3119_v45 = vpop.f32.mrf.mxu1 }
 0x3d0   : > { %v2112_v49 = vadd.f32 %v6506_v4, %v2092_v9  ;;  %v3233_v37 = vadd.f32 %v3232_v50, %v3119_v45 }
 0x3d2   : > { %v3250_v25 = vadd.f32 %v6506_v4, %v3233_v37  ;;  %4689 = vmatmul.msk.f32.gmra.mxu1 %vm3320_vm5, %v3314_v56  ;;  %4707 = vmatmul.msk.f32.vlgmr.msra.gmra.mxu2 %vm3320_vm5, %v6655_v29  ;;  %v2128_v28 = vmax.f32 %v2112_v49, 0.0 }
 0x3d4   : > { %v3266_v18 = vmax.f32 %v3250_v25, 0.0 }
 0x3d5   : > { %v3390_v17 = vpop.f32.mrf.mxu2 }
 0x3d6   : > { %v3282_v40 = vmax.f32 %v2128_v28, %v3266_v18  ;;  %v3505_v7 = vadd.f32 %v3504_v61, %v3390_v17  ;;  %v4053_v28 = vld [vmem:[%s7137_s20 + $0x8] sm:$0xff] }
 0x3d7   : > { %v3621_v10 = vpop.f32.mrf.mxu1  ;;  %4123 = vmatpush.msrb.mxu1 %v4053_v28  ;;  %v4260_v28 = vld [vmem:[%s7140_s23 + $0x38] sm:$0xff] }
 0x3d8   : > { %v3669_v52 = vadd.f32 %v3621_v10, %v3505_v7  ;;  %4672 = vmatmul.msk.f32.gmra.mxu0 %vm3438_vm15, %v3282_v40  ;;  %vm3934_vm15 = vcmask 31744   ;;  %4321 = vmatpush.msrb.mxu3 %v4260_v28 }
 0x3da   : > { %v3689_v4 = vadd.f32 %v6838_v26, %v3669_v52  ;;  %4708 = vmatmul.msk.f32.gmra.mxu2 %vm3320_vm5, %v6668_v35 }
 0x3dc   : > { %v3705_v29 = vmax.f32 %v3689_v4, 0.0 }
 0x3dd   : > { %v3393_v55 = vpop.f32.mrf.mxu2 }
 0x3de   : > { %v3508_v31 = vadd.f32 %v3507_v1, %v3393_v55  ;;  %4690 = vmatmul.msk.f32.vlgmr.msra.gmra.mxu3 %vm3733_vm7, %v3705_v29 }
 0x3df   : > { %v3624_v16 = vpop.f32.mrf.mxu1 }
 0x3e0   : > { %v3670_v58 = vadd.f32 %v3624_v16, %v3508_v31 }
 0x3e2   : > { %v3690_v22 = vadd.f32 %v6838_v26, %v3670_v58  ;;  %4709 = vmatmul.msk.f32.gmra.mxu2 %vm3320_vm5, %v6680_v48 }
 0x3e4   : > { %v3706_v36 = vmax.f32 %v3690_v22, 0.0 }
 0x3e5   : > { %v3396_v44 = vpop.f32.mrf.mxu2 }
 0x3e6   : > { %v3511_v38 = vadd.f32 %v3510_v62, %v3396_v44  ;;  %4691 = vmatmul.msk.f32.gmra.mxu3 %vm3733_vm7, %v3706_v36 }
 0x3e7   : > { %v3627_v35 = vpop.f32.mrf.mxu1 }
 0x3e8   : > { %v3671_v2 = vadd.f32 %v3627_v35, %v3511_v38 }
 0x3ea   : > { %v3691_v47 = vadd.f32 %v6838_v26, %v3671_v2  ;;  %4710 = vmatmul.msk.f32.gmra.mxu2 %vm3320_vm5, %v6692_v21  ;;  %v3516_v21 = vpop.f32.mrf.mxu0 }
 0x3ec   : > { %v3707_v39 = vmax.f32 %v3691_v47, 0.0 }
 0x3ed   : > { %v3399_v48 = vpop.f32.mrf.mxu2 }
 0x3ee   : > { %v3514_v60 = vadd.f32 %v3513_v57, %v3399_v48  ;;  %4692 = vmatmul.msk.f32.gmra.mxu3 %vm3733_vm7, %v3707_v39  ;;  %v4052_v57 = vld [vmem:[%s7137_s20] sm:$0xff] }
 0x3ef   : > { %v3630_v30 = vpop.f32.mrf.mxu1  ;;  %4124 = vmatpush.msrb.mxu1 %v4052_v57 }
 0x3f0   : > { %v3672_v3 = vadd.f32 %v3630_v30, %v3514_v60 }
 0x3f2   : > { %v3692_v23 = vadd.f32 %v6838_v26, %v3672_v3  ;;  %4711 = vmatmul.msk.f32.gmra.mxu2 %vm3320_vm5, %v6701_v20  ;;  %v3519_v13 = vpop.f32.mrf.mxu0 }
 0x3f4   : > { %v3708_v14 = vmax.f32 %v3692_v23, 0.0 }
 0x3f5   : > { %v3402_v8 = vpop.f32.mrf.mxu2 }
 0x3f6   : > { %v3517_v41 = vadd.f32 %v3516_v21, %v3402_v8  ;;  %4693 = vmatmul.msk.f32.gmra.mxu3 %vm3733_vm7, %v3708_v14 }
 0x3f7   : > { %v3633_v15 = vpop.f32.mrf.mxu1 }
 0x3f8   : > { %v3673_v54 = vadd.f32 %v3633_v15, %v3517_v41 }
 0x3fa   : > { %v3693_v6 = vadd.f32 %v6838_v26, %v3673_v54  ;;  %4712 = vmatmul.msk.f32.gmra.mxu2 %vm3320_vm5, %v6710_v34  ;;  %v3522_v9 = vpop.f32.mrf.mxu0 }
 0x3fc   : > { %v3709_v19 = vmax.f32 %v3693_v6, 0.0 }
 0x3fd   : > { %v3405_v43 = vpop.f32.mrf.mxu2 }
 0x3fe   : > { %v3520_v11 = vadd.f32 %v3519_v13, %v3405_v43  ;;  %4694 = vmatmul.msk.f32.gmra.mxu3 %vm3733_vm7, %v3709_v19 }
 0x3ff   : > { %v3636_v20 = vpop.f32.mrf.mxu1 }
 0x400   : > { %v3674_v27 = vadd.f32 %v3636_v20, %v3520_v11 }
 0x402   : > { %v3694_v63 = vadd.f32 %v6838_v26, %v3674_v27  ;;  %4713 = vmatmul.msk.f32.gmra.mxu2 %vm3320_vm5, %v6721_v24  ;;  %v3525_v18 = vpop.f32.mrf.mxu0  ;;  %v3847_v27 = vld [vmem:[%s6906_s26] sm:$0xff] }
 0x403   : > { %4724 = vmatmul.msk.f32.vlgmr.msra.gmra.mxu0 %vm3934_vm15, %v3847_v27 }
 0x404   : > { %v3710_v50 = vmax.f32 %v3694_v63, 0.0 }
 0x405   : > { %v3408_v45 = vpop.f32.mrf.mxu2 }
 0x406   : > { %v3523_v56 = vadd.f32 %v3522_v9, %v3408_v45  ;;  %4695 = vmatmul.msk.f32.gmra.mxu3 %vm3733_vm7, %v3710_v50 }
 0x407   : > { %v3639_v34 = vpop.f32.mrf.mxu1 }
 0x408   : > { %v3675_v49 = vadd.f32 %v3639_v34, %v3523_v56 }
 0x40a   : > { %v3695_v37 = vadd.f32 %v6838_v26, %v3675_v49  ;;  %4714 = vmatmul.msk.f32.gmra.mxu2 %vm3320_vm5, %v6729_v51  ;;  %v3528_v51 = vpop.f32.mrf.mxu0  ;;  %v3848_v49 = vld [vmem:[%s6906_s26 + $0x8] sm:$0xff] }
 0x40b   : > { %4725 = vmatmul.msk.f32.gmra.mxu0 %vm3934_vm15, %v3848_v49 }
 0x40c   : > { %v3711_v25 = vmax.f32 %v3695_v37, 0.0  ;;  %v3863_v37 = vld [vmem:[%s871_s28] sm:$0x1] }
 0x40d   : > { %v3411_v24 = vpop.f32.mrf.mxu2  ;;  %4193 = vperm.xlu0 %4871, %v3863_v37  }
 0x40e   : > { %v3526_v61 = vadd.f32 %v3525_v18, %v3411_v24  ;;  %4696 = vmatmul.msk.f32.gmra.mxu3 %vm3733_vm7, %v3711_v25  ;;  %v3849_v25 = vld [vmem:[%s6906_s26 + $0x10] sm:$0xff] }
 0x40f   : > { %v3642_v17 = vpop.f32.mrf.mxu1 }
 0x410   : > { %v3676_v40 = vadd.f32 %v3642_v17, %v3526_v61 }
 0x412   : > { %v3696_v7 = vadd.f32 %v6838_v26, %v3676_v40  ;;  %4715 = vmatmul.msk.f32.gmra.mxu2 %vm3320_vm5, %v6741_v42  ;;  %v3531_v16 = vpop.f32.mrf.mxu0 }
 0x413   : > { %4726 = vmatmul.msk.f32.gmra.mxu0 %vm3934_vm15, %v3849_v25 }
 0x414   : > { %v3712_v10 = vmax.f32 %v3696_v7, 0.0  ;;  %v3850_v7 = vld [vmem:[%s6906_s26 + $0x18] sm:$0xff] }
 0x415   : > { %v3414_v52 = vpop.f32.mrf.mxu2 }
 0x416   : > { %v3529_v4 = vadd.f32 %v3528_v51, %v3414_v52  ;;  %4697 = vmatmul.msk.f32.gmra.mxu3 %vm3733_vm7, %v3712_v10  ;;  %v6936_v51 = vld [vmem:[%s7134_s17] ss:$0 sm:$0xff] }
 0x417   : > { %v3645_v29 = vpop.f32.mrf.mxu1 }
 0x418   : > { %v3677_v1 = vadd.f32 %v3645_v29, %v3529_v4  ;;  %v3851_v29 = vld [vmem:[%s6906_s26 + $0x20] sm:$0xff] }
 0x41a   : > { %v3697_v55 = vadd.f32 %v6838_v26, %v3677_v1  ;;  %4716 = vmatmul.msk.f32.gmra.mxu2 %vm3320_vm5, %v6750_v32  ;;  %v3534_v38 = vpop.f32.mrf.mxu0 }
 0x41b   : > { %4727 = vmatmul.msk.f32.gmra.mxu0 %vm3934_vm15, %v3850_v7 }
 0x41c   : > { %v3713_v31 = vmax.f32 %v3697_v55, 0.0 }
 0x41d   : > { %v3417_v58 = vpop.f32.mrf.mxu2 }
 0x41e   : > { %v3532_v22 = vadd.f32 %v3531_v16, %v3417_v58  ;;  %4698 = vmatmul.msk.f32.gmra.mxu3 %vm3733_vm7, %v3713_v31  ;;  %v3852_v31 = vld [vmem:[%s6906_s26 + $0x28] sm:$0xff] }
 0x41f   : > { %v3648_v42 = vpop.f32.mrf.mxu1 }
 0x420   : > { %v3678_v36 = vadd.f32 %v3648_v42, %v3532_v22  ;;  %v3853_v22 = vld [vmem:[%s6906_s26 + $0x30] sm:$0xff]  ;;  %v4258_v42 = vld [vmem:[%s7140_s23 + $0x28] sm:$0xff] }
 0x422   : > { %v3698_v62 = vadd.f32 %v6838_v26, %v3678_v36  ;;  %4717 = vmatmul.msk.f32.gmra.mxu2 %vm3320_vm5, %v6762_v33  ;;  %v3537_v48 = vpop.f32.mrf.mxu0 }
 0x423   : > { %4728 = vmatmul.msk.f32.gmra.mxu0 %vm3934_vm15, %v3851_v29 }
 0x424   : > { %v3714_v44 = vmax.f32 %v3698_v62, 0.0 }
 0x425   : > { %v3420_v35 = vpop.f32.mrf.mxu2 }
 0x426   : > { %v3535_v2 = vadd.f32 %v3534_v38, %v3420_v35  ;;  %4699 = vmatmul.msk.f32.gmra.mxu3 %vm3733_vm7, %v3714_v44  ;;  %v3854_v44 = vld [vmem:[%s6906_s26 + $0x38] sm:$0xff] }
 0x427   : > { %v3651_v32 = vpop.f32.mrf.mxu1 }
 0x428   : > { %v3679_v47 = vadd.f32 %v3651_v32, %v3535_v2  ;;  %v3855_v2 = vld [vmem:[%s6906_s26 + $0x40] sm:$0xff] }
 0x429   : > { %v4257_v32 = vld [vmem:[%s7140_s23 + $0x20] sm:$0xff] }
 0x42a   : > { %v3699_v39 = vadd.f32 %v6838_v26, %v3679_v47  ;;  %4718 = vmatmul.msk.f32.gmra.mxu2 %vm3320_vm5, %v6774_v12  ;;  %v3540_v14 = vpop.f32.mrf.mxu0 }
 0x42b   : > { %4729 = vmatmul.msk.f32.gmra.mxu0 %vm3934_vm15, %v3852_v31 }
 0x42c   : > { %v3715_v59 = vmax.f32 %v3699_v39, 0.0 }
 0x42d   : > { %v3423_v33 = vpop.f32.mrf.mxu2 }
 0x42e   : > { %v3538_v60 = vadd.f32 %v3537_v48, %v3423_v33  ;;  %4700 = vmatmul.msk.f32.gmra.mxu3 %vm3733_vm7, %v3715_v59  ;;  %v3856_v59 = vld [vmem:[%s6906_s26 + $0x48] sm:$0xff]  ;;  %v3857_v33 = vld [vmem:[%s6906_s26 + $0x50] sm:$0xff] }
 0x42f   : > { %v3654_v30 = vpop.f32.mrf.mxu1 }
 0x430   : > { %v3680_v3 = vadd.f32 %v3654_v30, %v3538_v60  ;;  %v4256_v60 = vld [vmem:[%s7140_s23 + $0x18] sm:$0xff] }
 0x432   : > { %v3700_v23 = vadd.f32 %v6838_v26, %v3680_v3  ;;  %4719 = vmatmul.msk.f32.gmra.mxu2 %vm3320_vm5, %v6783_v0  ;;  %v3543_v19 = vpop.f32.mrf.mxu0 }
 0x433   : > { %4730 = vmatmul.msk.f32.gmra.mxu0 %vm3934_vm15, %v3853_v22 }
 0x434   : > { %v3716_v12 = vmax.f32 %v3700_v23, 0.0  ;;  %v3858_v23 = vld [vmem:[%s6906_s26 + $0x58] sm:$0xff] }
 0x435   : > { %v3426_v21 = vpop.f32.mrf.mxu2 }
 0x436   : > { %v3541_v8 = vadd.f32 %v3540_v14, %v3426_v21  ;;  %4701 = vmatmul.msk.f32.gmra.mxu3 %vm3733_vm7, %v3716_v12  ;;  %v3859_v21 = vld [vmem:[%s6906_s26 + $0x60] sm:$0xff] }
 0x437   : > { %v3657_v41 = vpop.f32.mrf.mxu1 }
 0x438   : > { %v3681_v15 = vadd.f32 %v3657_v41, %v3541_v8  ;;  %v4255_v8 = vld [vmem:[%s7140_s23 + $0x10] sm:$0xff] }
 0x43a   : > { %v3701_v54 = vadd.f32 %v6838_v26, %v3681_v15  ;;  %4720 = vmatmul.msk.f32.gmra.mxu2 %vm3320_vm5, %v6794_v53 }
 0x43b   : > { %4731 = vmatmul.msk.f32.gmra.mxu0 %vm3934_vm15, %v3854_v44 }
 0x43c   : > { %v3717_v6 = vmax.f32 %v3701_v54, 0.0  ;;  %v3860_v54 = vld [vmem:[%s6906_s26 + $0x68] sm:$0xff] }
 0x43d   : > { %v3429_v13 = vpop.f32.mrf.mxu2 }
 0x43e   : > { %v3544_v43 = vadd.f32 %v3543_v19, %v3429_v13  ;;  %4702 = vmatmul.msk.f32.gmra.mxu3 %vm3733_vm7, %v3717_v6  ;;  %v3861_v13 = vld [vmem:[%s6906_s26 + $0x70] sm:$0xff] }
 0x43f   : > { %v3660_v0 = vpop.f32.mrf.mxu1 }
 0x440   : > { %v3682_v11 = vadd.f32 %v3660_v0, %v3544_v43  ;;  %v4254_v43 = vld [vmem:[%s7140_s23 + $0x8] sm:$0xff] }
 0x442   : > { %v3702_v20 = vadd.f32 %v6838_v26, %v3682_v11  ;;  %4721 = vmatmul.msk.f32.gmra.mxu2 %vm3320_vm5, %v6802_v5 }
 0x443   : > { %4732 = vmatmul.msk.f32.gmra.mxu0 %vm3934_vm15, %v3855_v2 }
 0x444   : > { %v3718_v53 = vmax.f32 %v3702_v20, 0.0 }
 0x445   : > { %v3432_v63 = vpop.f32.mrf.mxu2  ;;  %v3546_v50 = vpop.f32.mrf.mxu0 }
 0x446   : > { %v3547_v9 = vadd.f32 %v3546_v50, %v3432_v63  ;;  %4703 = vmatmul.msk.f32.gmra.mxu3 %vm3733_vm7, %v3718_v53  ;;  %v3862_v50 = vld [vmem:[%s6906_s26 + $0x78] sm:$0xff] }
 0x447   : > { %v3663_v45 = vpop.f32.mrf.mxu1 }
 0x448   : > { %v3683_v56 = vadd.f32 %v3663_v45, %v3547_v9  ;;  %v4253_v9 = vld [vmem:[%s7140_s23] sm:$0xff] }
 0x44a   : > { %v3703_v34 = vadd.f32 %v6838_v26, %v3683_v56  ;;  %4722 = vmatmul.msk.f32.gmra.mxu2 %vm3320_vm5, %v6816_v46 }
 0x44b   : > { %4733 = vmatmul.msk.f32.gmra.mxu0 %vm3934_vm15, %v3856_v59 }
 0x44c   : > { %v3719_v5 = vmax.f32 %v3703_v34, 0.0 }
 0x44d   : > { %v3435_v18 = vpop.f32.mrf.mxu2 }
 0x44e   : > { %4704 = vmatmul.msk.f32.gmra.mxu3 %vm3733_vm7, %v3719_v5 }
 0x44f   : > { %v3666_v61 = vpop.f32.mrf.mxu1 }
 0x453   : > { %4734 = vmatmul.msk.f32.gmra.mxu0 %vm3934_vm15, %v3857_v33 }
 0x455   : > { %v3549_v24 = vpop.f32.mrf.mxu0  ;;  %v3886_v20 = vpop.f32.mrf.mxu2 }
 0x456   : > { %v3550_v17 = vadd.f32 %v3549_v24, %v3435_v18 }
 0x458   : > { %v3684_v46 = vadd.f32 %v3666_v61, %v3550_v17  ;;  %v4190_v61 = vld [vmem:[%s7138_s21] sm:$0x1] }
 0x45a   : > { %v3704_v40 = vadd.f32 %v6838_v26, %v3684_v46  ;;  %v4259_v26 = vld [vmem:[%s7140_s23 + $0x30] sm:$0xff] }
 0x45b   : > { %4322 = vmatpush.msrb.mxu3 %v4259_v26  ;;  %4735 = vmatmul.msk.f32.gmra.mxu0 %vm3934_vm15, %v3858_v23 }
 0x45c   : > { %v3720_v10 = vmax.f32 %v3704_v40, 0.0 }
 0x45d   : > { %4323 = vmatpush.msrb.mxu3 %v4258_v42  ;;  %v3889_v45 = vpop.f32.mrf.mxu2 }
 0x45e   : > { %4705 = vmatmul.msk.f32.gmra.mxu3 %vm3733_vm7, %v3720_v10 }
 0x45f   : > { %4324 = vmatpush.msrb.mxu3 %v4257_v32 }
 0x461   : > { %v3799_v52 = vpop.f32.mrf.mxu3  ;;  %4325 = vmatpush.msrb.mxu3 %v4256_v60 }
 0x462   : > { %v3800_v4 = vadd.f32 %v6936_v51, %v3799_v52 }
 0x463   : > { %4736 = vmatmul.msk.f32.gmra.mxu0 %vm3934_vm15, %v3859_v21  ;;  %4326 = vmatpush.msrb.mxu3 %v4255_v8 }
 0x464   : > { %4741 = vmatmul.msk.f32.vlgmr.msrb.gmra.mxu1 %vm4056_vm8, %v3800_v4 }
 0x465   : > { %4327 = vmatpush.msrb.mxu3 %v4254_v43  ;;  %v3892_v25 = vpop.f32.mrf.mxu2 }
 0x467   : > { %4328 = vmatpush.msrb.mxu3 %v4253_v9 }
 0x469   : > { %v3802_v1 = vpop.f32.mrf.mxu3 }
 0x46a   : > { %v3803_v55 = vadd.f32 %v6936_v51, %v3802_v1  ;;  %v7022_v1 = vld [vmem:[%s7139_s22] ss:$0 sm:$0xff] }
 0x46b   : > { %4737 = vmatmul.msk.f32.gmra.mxu0 %vm3934_vm15, %v3860_v54 }
 0x46c   : > { %4742 = vmatmul.msk.f32.gmra.mxu1 %vm4056_vm8, %v3803_v55 }
 0x46d   : > { %v3895_v46 = vpop.f32.mrf.mxu2 }
 0x471   : > { %v3805_v16 = vpop.f32.mrf.mxu3 }
 0x472   : > { %v3806_v58 = vadd.f32 %v6936_v51, %v3805_v16 }
 0x473   : > { %4738 = vmatmul.msk.f32.gmra.mxu0 %vm3934_vm15, %v3861_v13 }
 0x474   : > { %4743 = vmatmul.msk.f32.gmra.mxu1 %vm4056_vm8, %v3806_v58 }
 0x475   : > { %v3898_v58 = vpop.f32.mrf.mxu2 }
 0x479   : > { %v3808_v36 = vpop.f32.mrf.mxu3 }
 0x47a   : > { %v3809_v62 = vadd.f32 %v6936_v51, %v3808_v36 }
 0x47b   : > { %4739 = vmatmul.msk.f32.gmra.mxu0 %vm3934_vm15, %v3862_v50 }
 0x47c   : > { %4744 = vmatmul.msk.f32.gmra.mxu1 %vm4056_vm8, %v3809_v62 }
 0x47d   : > { %v3901_v2 = vpop.f32.mrf.mxu2 }
 0x47f   : > { %v4194_v18 = vpop.permute.xlu0 %4193 }
 0x480   : > { %v4004_v27 = vpop.f32.mrf.mxu0  ;;  %v4196_v24 = vperm.slane %v4194_v18, 0 }
 0x481   : > { %v3811_v38 = vpop.f32.mrf.mxu3  ;;  %v4005_v7 = vadd.f32 %v4004_v27, %v3886_v20 }
 0x482   : > { %v3812_v35 = vadd.f32 %v6936_v51, %v3811_v38  ;;  %v4197_v17 = vmul.f32 %v4196_v24, %v4190_v61 }
 0x484   : > { %4745 = vmatmul.msk.f32.gmra.mxu1 %vm4056_vm8, %v3812_v35  ;;  %v7016_v10 = vperm.slane %v4197_v17, 0 }
 0x488   : > { %v4007_v34 = vpop.f32.mrf.mxu0 }
 0x489   : > { %v3814_v47 = vpop.f32.mrf.mxu3  ;;  %v4008_v16 = vadd.f32 %v4007_v34, %v3889_v45 }
 0x48a   : > { %v3815_v39 = vadd.f32 %v6936_v51, %v3814_v47 }
 0x48c   : > { %4746 = vmatmul.msk.f32.gmra.mxu1 %vm4056_vm8, %v3815_v39 }
 0x490   : > { %v4010_v28 = vpop.f32.mrf.mxu0 }
 0x491   : > { %v3817_v57 = vpop.f32.mrf.mxu3  ;;  %v4011_v38 = vadd.f32 %v4010_v28, %v3892_v25 }
 0x492   : > { %v3818_v48 = vadd.f32 %v6936_v51, %v3817_v57 }
 0x494   : > { %4747 = vmatmul.msk.f32.gmra.mxu1 %vm4056_vm8, %v3818_v48 }
 0x498   : > { %v4013_v40 = vpop.f32.mrf.mxu0 }
 0x499   : > { %v3820_v30 = vpop.f32.mrf.mxu3  ;;  %v4014_v48 = vadd.f32 %v4013_v40, %v3895_v46 }
 0x49a   : > { %v3821_v3 = vadd.f32 %v6936_v51, %v3820_v30 }
 0x49c   : > { %4748 = vmatmul.msk.f32.gmra.mxu1 %vm4056_vm8, %v3821_v3  ;;  %v3904_v3 = vpop.f32.mrf.mxu2 }
 0x4a0   : > { %v4016_v22 = vpop.f32.mrf.mxu0 }
 0x4a1   : > { %v3823_v12 = vpop.f32.mrf.mxu3  ;;  %v4017_v21 = vadd.f32 %v4016_v22, %v3898_v58 }
 0x4a2   : > { %v3824_v14 = vadd.f32 %v6936_v51, %v3823_v12 }
 0x4a4   : > { %4749 = vmatmul.msk.f32.gmra.mxu1 %vm4056_vm8, %v3824_v14 }
 0x4a8   : > { %v4019_v47 = vpop.f32.mrf.mxu0 }
 0x4a9   : > { %v3826_v41 = vpop.f32.mrf.mxu3  ;;  %v4020_v43 = vadd.f32 %v4019_v47, %v3901_v2 }
 0x4aa   : > { %v3827_v15 = vadd.f32 %v6936_v51, %v3826_v41 }
 0x4ac   : > { %4750 = vmatmul.msk.f32.gmra.mxu1 %vm4056_vm8, %v3827_v15 }
 0x4b0   : > { %v4022_v23 = vpop.f32.mrf.mxu0 }
 0x4b1   : > { %v3829_v6 = vpop.f32.mrf.mxu3 }
 0x4b2   : > { %v3830_v19 = vadd.f32 %v6936_v51, %v3829_v6  ;;  %v3907_v6 = vpop.f32.mrf.mxu2 }
 0x4b4   : > { %4751 = vmatmul.msk.f32.gmra.mxu1 %vm4056_vm8, %v3830_v19 }
 0x4b8   : > { %v4025_v19 = vpop.f32.mrf.mxu0 }
 0x4b9   : > { %v3832_v0 = vpop.f32.mrf.mxu3 }
 0x4ba   : > { %v3833_v11 = vadd.f32 %v6936_v51, %v3832_v0  ;;  %v3910_v50 = vpop.f32.mrf.mxu2 }
 0x4bc   : > { %4752 = vmatmul.msk.f32.gmra.mxu1 %vm4056_vm8, %v3833_v11 }
 0x4c0   : > { %v4028_v9 = vpop.f32.mrf.mxu0 }
 0x4c1   : > { %v3835_v53 = vpop.f32.mrf.mxu3  ;;  %v4029_v40 = vadd.f32 %v4028_v9, %v3910_v50 }
 0x4c2   : > { %v3836_v63 = vadd.f32 %v6936_v51, %v3835_v53  ;;  %v3913_v28 = vpop.f32.mrf.mxu2 }
 0x4c4   : > { %4753 = vmatmul.msk.f32.gmra.mxu1 %vm4056_vm8, %v3836_v63  ;;  %v4023_v63 = vadd.f32 %v4022_v23, %v3904_v3 }
 0x4c8   : > { %v4031_v24 = vpop.f32.mrf.mxu0 }
 0x4c9   : > { %v3838_v56 = vpop.f32.mrf.mxu3 }
 0x4ca   : > { %v3839_v49 = vadd.f32 %v6936_v51, %v3838_v56 }
 0x4cc   : > { %4754 = vmatmul.msk.f32.gmra.mxu1 %vm4056_vm8, %v3839_v49 }
 0x4d1   : > { %v3841_v37 = vpop.f32.mrf.mxu3 }
 0x4d2   : > { %v3842_v5 = vadd.f32 %v6936_v51, %v3841_v37 }
 0x4d4   : > { %4755 = vmatmul.msk.f32.gmra.mxu1 %vm4056_vm8, %v3842_v5  ;;  %v4026_v5 = vadd.f32 %v4025_v19, %v3907_v6 }
 0x4e1   : > { %v3844_v52 = vpop.f32.mrf.mxu3  ;;  %v4126_v4 = vpop.f32.mrf.mxu1 }
 0x4e2   : > { %v3845_v29 = vadd.f32 %v6936_v51, %v3844_v52  ;;  %v4174_v26 = vadd.f32 %v4126_v4, %v4005_v7 }
 0x4e4   : > { %v4201_v55 = vadd.f32 %v7016_v10, %v4174_v26  ;;  %4756 = vmatmul.msk.f32.gmra.mxu1 %vm4056_vm8, %v3845_v29  ;;  %v3916_v29 = vpop.f32.mrf.mxu2  ;;  %v4034_v26 = vpop.f32.mrf.mxu0 }
 0x4e6   : > { %v4221_v31 = vadd.f32 %v7022_v1, %v4201_v55 }
 0x4e8   : > { %v4237_v42 = vmax.f32 %v4221_v31, 0.0 }
 0x4e9   : > { %v4129_v36 = vpop.f32.mrf.mxu1 }
 0x4ea   : > { %v4175_v62 = vadd.f32 %v4129_v36, %v4008_v16  ;;  %4757 = vmatmul.msk.f32.vlgmr.msrb.gmra.mxu3 %vm3733_vm7, %v4237_v42  ;;  %v4032_v16 = vadd.f32 %v4031_v24, %v3913_v28 }
 0x4ec   : > { %v4202_v51 = vadd.f32 %v7016_v10, %v4175_v62  ;;  %v3919_v62 = vpop.f32.mrf.mxu2 }
 0x4ee   : > { %v4222_v44 = vadd.f32 %v7022_v1, %v4202_v51  ;;  %v4037_v51 = vpop.f32.mrf.mxu0 }
 0x4f0   : > { %v4238_v35 = vmax.f32 %v4222_v44, 0.0 }
 0x4f1   : > { %v4132_v32 = vpop.f32.mrf.mxu1 }
 0x4f2   : > { %v4176_v39 = vadd.f32 %v4132_v32, %v4011_v38  ;;  %4758 = vmatmul.msk.f32.gmra.mxu3 %vm3733_vm7, %v4238_v35  ;;  %v4035_v38 = vadd.f32 %v4034_v26, %v3916_v29 }
 0x4f4   : > { %v4203_v59 = vadd.f32 %v7016_v10, %v4176_v39 }
 0x4f6   : > { %v4223_v57 = vadd.f32 %v7022_v1, %v4203_v59  ;;  %v4038_v59 = vadd.f32 %v4037_v51, %v3919_v62 }
 0x4f8   : > { %v4239_v33 = vmax.f32 %v4223_v57, 0.0  ;;  %v3922_v57 = vpop.f32.mrf.mxu2 }
 0x4f9   : > { %v4135_v60 = vpop.f32.mrf.mxu1 }
 0x4fa   : > { %v4177_v30 = vadd.f32 %v4135_v60, %v4014_v48  ;;  %4759 = vmatmul.msk.f32.gmra.mxu3 %vm3733_vm7, %v4239_v33  ;;  %v4040_v48 = vpop.f32.mrf.mxu0 }
 0x4fc   : > { %v4204_v12 = vadd.f32 %v7016_v10, %v4177_v30 }
 0x4fe   : > { %v4224_v14 = vadd.f32 %v7022_v1, %v4204_v12  ;;  %v4041_v12 = vadd.f32 %v4040_v48, %v3922_v57 }
 0x500   : > { %v4240_v8 = vmax.f32 %v4224_v14, 0.0 }
 0x501   : > { %v4138_v41 = vpop.f32.mrf.mxu1 }
 0x502   : > { %v4178_v15 = vadd.f32 %v4138_v41, %v4017_v21  ;;  %4760 = vmatmul.msk.f32.gmra.mxu3 %vm3733_vm7, %v4240_v8  ;;  %v3925_v21 = vpop.f32.mrf.mxu2  ;;  %v4043_v41 = vpop.f32.mrf.mxu0 }
 0x503   : > { %v4044_v19 = vadd.f32 %v4043_v41, %v3925_v21 }
 0x504   : > { %v4205_v54 = vadd.f32 %v7016_v10, %v4178_v15 }
 0x506   : > { %v4225_v13 = vadd.f32 %v7022_v1, %v4205_v54 }
 0x508   : > { %v4241_v0 = vmax.f32 %v4225_v13, 0.0 }
 0x509   : > { %v4141_v11 = vpop.f32.mrf.mxu1 }
 0x50a   : > { %v4179_v20 = vadd.f32 %v4141_v11, %v4020_v43  ;;  %4761 = vmatmul.msk.f32.gmra.mxu3 %vm3733_vm7, %v4241_v0  ;;  %v3928_v11 = vpop.f32.mrf.mxu2 }
 0x50c   : > { %v4206_v27 = vadd.f32 %v7016_v10, %v4179_v20  ;;  %v4046_v20 = vpop.f32.mrf.mxu0 }
 0x50e   : > { %v4226_v53 = vadd.f32 %v7022_v1, %v4206_v27 }
 0x510   : > { %v4242_v45 = vmax.f32 %v4226_v53, 0.0 }
 0x511   : > { %v4144_v56 = vpop.f32.mrf.mxu1 }
 0x512   : > { %v4180_v34 = vadd.f32 %v4144_v56, %v4023_v63  ;;  %4762 = vmatmul.msk.f32.gmra.mxu3 %vm3733_vm7, %v4242_v45  ;;  %v4047_v63 = vadd.f32 %v4046_v20, %v3928_v11 }
 0x514   : > { %v4207_v49 = vadd.f32 %v7016_v10, %v4180_v34 }
 0x516   : > { %v4227_v37 = vadd.f32 %v7022_v1, %v4207_v49 }
 0x518   : > { %v4243_v25 = vmax.f32 %v4227_v37, 0.0  ;;  %v3931_v37 = vpop.f32.mrf.mxu2 }
 0x519   : > { %v4147_v18 = vpop.f32.mrf.mxu1 }
 0x51a   : > { %v4181_v61 = vadd.f32 %v4147_v18, %v4026_v5  ;;  %4763 = vmatmul.msk.f32.gmra.mxu3 %vm3733_vm7, %v4243_v25  ;;  %v4049_v5 = vpop.f32.mrf.mxu0 }
 0x51b   : > { %v4050_v25 = vadd.f32 %v4049_v5, %v3931_v37 }
 0x51c   : > { %v4208_v17 = vadd.f32 %v7016_v10, %v4181_v61 }
 0x51e   : > { %v4228_v46 = vadd.f32 %v7022_v1, %v4208_v17 }
 0x520   : > { %v4244_v7 = vmax.f32 %v4228_v46, 0.0 }
 0x521   : > { %v4150_v52 = vpop.f32.mrf.mxu1 }
 0x522   : > { %v4182_v4 = vadd.f32 %v4150_v52, %v4029_v40  ;;  %4764 = vmatmul.msk.f32.gmra.mxu3 %vm3733_vm7, %v4244_v7  ;;  %v7076_v40 = vld [vmem:[%s7141_s24] ss:$0 sm:$0xff] }
 0x524   : > { %v4209_v55 = vadd.f32 %v7016_v10, %v4182_v4 }
 0x526   : > { %v4229_v31 = vadd.f32 %v7022_v1, %v4209_v55 }
 0x528   : > { %v4245_v58 = vmax.f32 %v4229_v31, 0.0 }
 0x529   : > { %v4153_v22 = vpop.f32.mrf.mxu1 }
 0x52a   : > { %v4183_v42 = vadd.f32 %v4153_v22, %v4032_v16  ;;  %4765 = vmatmul.msk.f32.gmra.mxu3 %vm3733_vm7, %v4245_v58 }
 0x52c   : > { %v4210_v36 = vadd.f32 %v7016_v10, %v4183_v42 }
 0x52e   : > { %v4230_v44 = vadd.f32 %v7022_v1, %v4210_v36 }
 0x530   : > { %v4246_v35 = vmax.f32 %v4230_v44, 0.0 }
 0x531   : > { %v4156_v2 = vpop.f32.mrf.mxu1 }
 0x532   : > { %v4184_v32 = vadd.f32 %v4156_v2, %v4035_v38  ;;  %4766 = vmatmul.msk.f32.gmra.mxu3 %vm3733_vm7, %v4246_v35 }
 0x534   : > { %v4211_v47 = vadd.f32 %v7016_v10, %v4184_v32 }
 0x536   : > { %v4231_v39 = vadd.f32 %v7022_v1, %v4211_v47 }
 0x538   : > { %v4247_v33 = vmax.f32 %v4231_v39, 0.0 }
 0x539   : > { %v4159_v60 = vpop.f32.mrf.mxu1 }
 0x53a   : > { %v4185_v30 = vadd.f32 %v4159_v60, %v4038_v59  ;;  %4767 = vmatmul.msk.f32.gmra.mxu3 %vm3733_vm7, %v4247_v33 }
 0x53c   : > { %v4212_v3 = vadd.f32 %v7016_v10, %v4185_v30 }
 0x53e   : > { %v4232_v23 = vadd.f32 %v7022_v1, %v4212_v3 }
 0x540   : > { %v4248_v14 = vmax.f32 %v4232_v23, 0.0 }
 0x541   : > { %v4162_v8 = vpop.f32.mrf.mxu1 }
 0x542   : > { %v4186_v15 = vadd.f32 %v4162_v8, %v4041_v12  ;;  %4768 = vmatmul.msk.f32.gmra.mxu3 %vm3733_vm7, %v4248_v14 }
 0x544   : > { %v4213_v54 = vadd.f32 %v7016_v10, %v4186_v15 }
 0x546   : > { %v4233_v6 = vadd.f32 %v7022_v1, %v4213_v54 }
 0x548   : > { %v4249_v13 = vmax.f32 %v4233_v6, 0.0 }
 0x549   : > { %v4165_v43 = vpop.f32.mrf.mxu1 }
 0x54a   : > { %v4187_v0 = vadd.f32 %v4165_v43, %v4044_v19  ;;  %4769 = vmatmul.msk.f32.gmra.mxu3 %vm3733_vm7, %v4249_v13 }
 0x54c   : > { %v4214_v27 = vadd.f32 %v7016_v10, %v4187_v0 }
 0x54e   : > { %v4234_v53 = vadd.f32 %v7022_v1, %v4214_v27 }
 0x550   : > { %v4250_v50 = vmax.f32 %v4234_v53, 0.0 }
 0x551   : > { %v4168_v9 = vpop.f32.mrf.mxu1 }
 0x552   : > { %v4188_v45 = vadd.f32 %v4168_v9, %v4047_v63  ;;  %4770 = vmatmul.msk.f32.gmra.mxu3 %vm3733_vm7, %v4250_v50 }
 0x554   : > { %v4215_v56 = vadd.f32 %v7016_v10, %v4188_v45 }
 0x556   : > { %v4235_v34 = vadd.f32 %v7022_v1, %v4215_v56 }
 0x558   : > { %v4251_v49 = vmax.f32 %v4235_v34, 0.0 }
 0x55a   : > { %4771 = vmatmul.msk.f32.gmra.mxu3 %vm3733_vm7, %v4251_v49 }
 0x561   : > { %v4171_v28 = vpop.f32.mrf.mxu1 }
 0x562   : > { %v4189_v18 = vadd.f32 %v4171_v28, %v4050_v25 }
 0x564   : > { %v4216_v24 = vadd.f32 %v7016_v10, %v4189_v18 }
 0x566   : > { %v4236_v61 = vadd.f32 %v7022_v1, %v4216_v24 }
 0x568   : > { %v4252_v17 = vmax.f32 %v4236_v61, 0.0 }
 0x56a   : > { %4772 = vmatmul.msk.f32.gmra.mxu3 %vm3733_vm7, %v4252_v17 }
 0x56d   : > { %v4330_v46 = vpop.f32.mrf.mxu3 }
 0x56e   : > { %v4331_v7 = vadd.f32 %v7076_v40, %v4330_v46 }
 0x570   : > { %v4378_v4 = vmul.f32 %v4331_v7, %v4331_v7 }
 0x572   : > { %v4394_v10 = vsel %vm3934_vm15, %v4378_v4, 0.0 }
 0x575   : > { %v4333_v52 = vpop.f32.mrf.mxu3 }
 0x576   : > { %v4334_v29 = vadd.f32 %v7076_v40, %v4333_v52 }
 0x578   : > { %v4379_v26 = vmul.f32 %v4334_v29, %v4334_v29 }
 0x57a   : > { %v4395_v1 = vsel %vm3934_vm15, %v4379_v26, 0.0 }
 0x57b   : > { %v4396_v55 = vadd.f32 %v4395_v1, %v4394_v10 }
 0x57d   : > { %v4336_v31 = vpop.f32.mrf.mxu3 }
 0x57e   : > { %v4337_v16 = vadd.f32 %v7076_v40, %v4336_v31 }
 0x580   : > { %v4380_v58 = vmul.f32 %v4337_v16, %v4337_v16 }
 0x582   : > { %v4397_v22 = vsel %vm3934_vm15, %v4380_v58, 0.0 }
 0x583   : > { %v4398_v42 = vadd.f32 %v4397_v22, %v4396_v55 }
 0x585   : > { %v4339_v36 = vpop.f32.mrf.mxu3 }
 0x586   : > { %v4340_v62 = vadd.f32 %v7076_v40, %v4339_v36 }
 0x588   : > { %v4381_v51 = vmul.f32 %v4340_v62, %v4340_v62 }
 0x58a   : > { %v4399_v44 = vsel %vm3934_vm15, %v4381_v51, 0.0 }
 0x58b   : > { %v4400_v38 = vadd.f32 %v4399_v44, %v4398_v42 }
 0x58d   : > { %v4342_v35 = vpop.f32.mrf.mxu3 }
 0x58e   : > { %v4343_v2 = vadd.f32 %v7076_v40, %v4342_v35 }
 0x590   : > { %v4382_v32 = vmul.f32 %v4343_v2, %v4343_v2 }
 0x592   : > { %v4401_v47 = vsel %vm3934_vm15, %v4382_v32, 0.0 }
 0x593   : > { %v4402_v39 = vadd.f32 %v4401_v47, %v4400_v38 }
 0x595   : > { %v4345_v59 = vpop.f32.mrf.mxu3 }
 0x596   : > { %v4346_v12 = vadd.f32 %v7076_v40, %v4345_v59 }
 0x598   : > { %v4383_v21 = vmul.f32 %v4346_v12, %v4346_v12 }
 0x59a   : > { %v4403_v6 = vsel %vm3934_vm15, %v4383_v21, 0.0 }
 0x59b   : > { %v4404_v20 = vadd.f32 %v4403_v6, %v4402_v39 }
 0x59d   : > { %v4348_v57 = vpop.f32.mrf.mxu3 }
 0x59e   : > { %v4349_v14 = vadd.f32 %v7076_v40, %v4348_v57 }
 0x5a0   : > { %v4384_v15 = vmul.f32 %v4349_v14, %v4349_v14 }
 0x5a2   : > { %v4405_v43 = vsel %vm3934_vm15, %v4384_v15, 0.0 }
 0x5a3   : > { %v4406_v50 = vadd.f32 %v4405_v43, %v4404_v20 }
 0x5a5   : > { %v4351_v48 = vpop.f32.mrf.mxu3 }
 0x5a6   : > { %v4352_v8 = vadd.f32 %v7076_v40, %v4351_v48 }
 0x5a8   : > { %v4385_v19 = vmul.f32 %v4352_v8, %v4352_v8 }
 0x5aa   : > { %v4407_v27 = vsel %vm3934_vm15, %v4385_v19, 0.0 }
 0x5ab   : > { %v4408_v34 = vadd.f32 %v4407_v27, %v4406_v50 }
 0x5ad   : > { %v4354_v33 = vpop.f32.mrf.mxu3 }
 0x5ae   : > { %v4355_v54 = vadd.f32 %v7076_v40, %v4354_v33 }
 0x5b0   : > { %v4386_v0 = vmul.f32 %v4355_v54, %v4355_v54 }
 0x5b2   : > { %v4409_v9 = vsel %vm3934_vm15, %v4386_v0, 0.0 }
 0x5b3   : > { %v4410_v28 = vadd.f32 %v4409_v9, %v4408_v34 }
 0x5b5   : > { %v4357_v60 = vpop.f32.mrf.mxu3 }
 0x5b6   : > { %v4358_v13 = vadd.f32 %v7076_v40, %v4357_v60 }
 0x5b8   : > { %v4387_v53 = vmul.f32 %v4358_v13, %v4358_v13 }
 0x5ba   : > { %v4411_v37 = vsel %vm3934_vm15, %v4387_v53, 0.0 }
 0x5bb   : > { %v4412_v17 = vadd.f32 %v4411_v37, %v4410_v28 }
 0x5bd   : > { %v4360_v30 = vpop.f32.mrf.mxu3 }
 0x5be   : > { %v4361_v11 = vadd.f32 %v7076_v40, %v4360_v30 }
 0x5c0   : > { %v4388_v45 = vmul.f32 %v4361_v11, %v4361_v11 }
 0x5c2   : > { %v4413_v18 = vsel %vm3934_vm15, %v4388_v45, 0.0 }
 0x5c3   : > { %v4414_v52 = vadd.f32 %v4413_v18, %v4412_v17 }
 0x5c5   : > { %v4363_v3 = vpop.f32.mrf.mxu3 }
 0x5c6   : > { %v4364_v63 = vadd.f32 %v7076_v40, %v4363_v3 }
 0x5c8   : > { %v4389_v5 = vmul.f32 %v4364_v63, %v4364_v63 }
 0x5ca   : > { %v4415_v46 = vsel %vm3934_vm15, %v4389_v5, 0.0 }
 0x5cb   : > { %v4416_v26 = vadd.f32 %v4415_v46, %v4414_v52 }
 0x5cd   : > { %v4366_v23 = vpop.f32.mrf.mxu3 }
 0x5ce   : > { %v4367_v56 = vadd.f32 %v7076_v40, %v4366_v23 }
 0x5d0   : > { %v4390_v24 = vmul.f32 %v4367_v56, %v4367_v56 }
 0x5d2   : > { %v4417_v4 = vsel %vm3934_vm15, %v4390_v24, 0.0 }
 0x5d3   : > { %v4418_v1 = vadd.f32 %v4417_v4, %v4416_v26 }
 0x5d5   : > { %v4369_v41 = vpop.f32.mrf.mxu3 }
 0x5d6   : > { %v4370_v25 = vadd.f32 %v7076_v40, %v4369_v41 }
 0x5d8   : > { %v4391_v7 = vmul.f32 %v4370_v25, %v4370_v25 }
 0x5da   : > { %v4419_v10 = vsel %vm3934_vm15, %v4391_v7, 0.0 }
 0x5db   : > { %v4420_v58 = vadd.f32 %v4419_v10, %v4418_v1 }
 0x5dd   : > { %v4372_v49 = vpop.f32.mrf.mxu3 }
 0x5de   : > { %v4373_v61 = vadd.f32 %v7076_v40, %v4372_v49 }
 0x5e0   : > { %v4392_v29 = vmul.f32 %v4373_v61, %v4373_v61 }
 0x5e2   : > { %v4421_v31 = vsel %vm3934_vm15, %v4392_v29, 0.0 }
 0x5e3   : > { %v4422_v42 = vadd.f32 %v4421_v31, %v4420_v58 }
 0x5ed   : > { %v4375_v55 = vpop.f32.mrf.mxu3 }
 0x5ee   : > { %v4376_v16 = vadd.f32 %v7076_v40, %v4375_v55 }
 0x5f0   : > { %v4393_v22 = vmul.f32 %v4376_v16, %v4376_v16 }
 0x5f2   : > { %v4423_v36 = vsel %vm3934_vm15, %v4393_v22, 0.0 }
 0x5f3   : > { %v4424_v62 = vadd.f32 %v4423_v36, %v4422_v42 }
 0x5f5   : > { %4425 = vadd.xlane.f32.xlu1 %v4424_v62 }
 0x668   : > { %v4426_v51 = vpop.xlane.xlu1 %4425 }
 0x669   : > { %v4427_v44 = vrot.slane %v4426_v51, 4 }
 0x66b   : > { %v4428_v38 = vadd.f32 %v4427_v44, %v4426_v51 }
 0x66d   : > { %v4429_v35 = vrot.slane %v4428_v38, 2 }
 0x66f   : > { %v4430_v2 = vadd.f32 %v4429_v35, %v4428_v38 }
 0x671   : > { %v4431_v32 = vrot.slane %v4430_v2, 1 }
 0x673   : > { %v4432_v47 = vadd.f32 %v4431_v32, %v4430_v2 }
 0x675   : > { %4849 = vpush %v4432_v47 }
 0x6a6   : > { %s4850_s6 = spop %4849 }
 0x6a7   : > { %v4434_v40 = vstv %s4850_s6 }
 0x6a8   : > { %4436 = vst.msk [vmem:[%s874_s1] sm:$0x1] %vm4435_vm9, %v4434_v40 }
 0x6a9 PF: > { %s35_s29 = sadd.s32 1, %s4884_s29  }
 0x6aa   : > { %p32_p4 = scmp.ge.s32.totalorder %s35_s29, 4  }
 0x6ac   :  { %34 = sbr.rel (!%p32_p4) target bundleno = 11 (0xb), region = 168 }

</bundles_post_ra>
